<compile_context>
chip_gen: v7x
topology: tpu7x:2x2x1
jax: 0.10.0
libtpu: 0.0.40
codegen_flags: <defaults>
</compile_context>

<pallas_src>
import numpy as np
import jax
import jax.numpy as jnp
from jax.experimental import pallas as pl
from jax.experimental.pallas import tpu as pltpu

# ---------------- configuration ----------------
DISTANCE  = 1.0
D_IN      = 3
D_OUT     = 5
D_HIDDEN  = 32
N_LAYERS  = 4
SKIP_IN   = (2,)
SCALE     = 2.0
DIMS      = [D_IN] + [D_HIDDEN] * N_LAYERS + [D_OUT]     # [3,32,32,32,32,5]
NUM_LIN   = len(DIMS) - 1                                 # 5 linear layers
SQRT2     = float(np.sqrt(2.0))
BETA      = 100.0      # torch.nn.Softplus(beta=100)
SP_THRESH = 20.0       # torch Softplus default threshold (beta*x > 20 -> linear)

# (out_dim, in_dim) per linear layer, mirroring the __init__ logic.
LAYER_SHAPES = []
for _l in range(NUM_LIN):
    _in = DIMS[_l]
    _out = DIMS[_l + 1] - DIMS[0] if (_l + 1) in SKIP_IN else DIMS[_l + 1]
    LAYER_SHAPES.append((_out, _in))          # [(32,3),(29,32),(32,32),(32,32),(5,32)]


def _softplus_beta100(x):
    """torch.nn.Softplus(beta=100, threshold=20) — used by the pure-JAX ref."""
    bx = x * BETA
    safe = jnp.minimum(bx, SP_THRESH)            # keep untaken branch finite
    return jnp.where(bx > SP_THRESH, x, jnp.log1p(jnp.exp(safe)) / BETA)


def _act(y):
    """Beta-folded Softplus: y == beta * pre_act, returns beta * softplus(pre)."""
    return jnp.where(y > SP_THRESH, y, jnp.log1p(jnp.exp(jnp.minimum(y, SP_THRESH))))


# ---------------- Pallas kernel ----------------
def sdf_kernel(x_ref, win_ref, whid_ref, b_ref, out_ref):
    """x_ref:   (D_IN, TILE_N)          raw points (lane axis = points)
    win_ref:  (2, 32, D_IN)             [W0', W2b'] input-consuming weights
    whid_ref: (4, 32, 32)               [W1', W2a', W3', W4'] zero-padded
    b_ref:    (NUM_LIN, 32, 1)          beta/scale-folded biases
    out_ref:  (D_OUT, TILE_N)

    All constants (sqrt(2), scale, beta) are folded into the slabs at pack
    time; padding is with exact zeros so results are bit-identical to the
    unpadded math.  No value slices except the final D_OUT-row store."""
    inputs = x_ref[...]                                            # (3, TN)

    def dot(w, v):
        return jnp.dot(w, v, preferred_element_type=jnp.float32)

    a = _act(dot(win_ref[0], inputs) + b_ref[0])                   # layer 0
    a = _act(dot(whid_ref[0], a) + b_ref[1])                       # layer 1
    # layer 2 (skip): (W2/sqrt2) @ cat([h1; inputs]) == W2a'@a + W2b'@inputs
    a = _act(dot(whid_ref[1], a) + dot(win_ref[1], inputs) + b_ref[2])
    a = _act(dot(whid_ref[2], a) + b_ref[3])                       # layer 3
    y = dot(whid_ref[3], a) + b_ref[4]                             # layer 4 (linear)

    out_ref[...] = y[:D_OUT, :].astype(out_ref.dtype)


# ---------------- wrappers ----------------
def _round_up(n, m):
    return ((n + m - 1) // m) * m


def sdf_forward_dn(x_dn, w_in, w_hid, b_slab, tile_n=8192):
    """Fast path: x_dn is (D_IN, N) with points on the fast axis.  Returns
    (D_OUT, N).  No wrapper-side transpose/pad — ragged N is handled with a
    cdiv grid and a padded out_shape (one slice at the end, only if ragged)."""
    d, n = x_dn.shape
    assert d == D_IN, x_dn.shape
    # Prefer >= 2 grid steps (v7x has 2 TensorCores; a 1-step grid idles one)
    # and don't over-pad tiny inputs.  tile_n stays a multiple of 128.
    tile_n = max(128, min(tile_n, _round_up(pl.cdiv(n, 2), 128)))
    num_tiles = pl.cdiv(n, tile_n)
    n_padded = num_tiles * tile_n

    out = pl.pallas_call(
        sdf_kernel,
        out_shape=jax.ShapeDtypeStruct((D_OUT, n_padded), jnp.float32),
        grid_spec=pltpu.PrefetchScalarGridSpec(
            num_scalar_prefetch=0,
            grid=(num_tiles,),
            in_specs=[
                pl.BlockSpec((D_IN, tile_n), lambda i: (0, i)),      # x tile
                pl.BlockSpec(w_in.shape, lambda i: (0, 0, 0)),       # resident
                pl.BlockSpec(w_hid.shape, lambda i: (0, 0, 0)),      # resident
                pl.BlockSpec(b_slab.shape, lambda i: (0, 0, 0)),     # resident
            ],
            out_specs=pl.BlockSpec((D_OUT, tile_n), lambda i: (0, i)),
        ),
        compiler_params=pltpu.CompilerParams(
            dimension_semantics=("parallel",),   # shards grid across TCs on v7x
            # vmem_limit_bytes only needed if tile_n >= ~32K on v5e.
        ),
    )(x_dn.astype(jnp.float32), w_in, w_hid, b_slab)
    return out if n_padded == n else out[:, :n]


def sdf_forward(x, w_in, w_hid, b_slab, tile_n=8192):
    """PyTorch-interface wrapper: x (N, D_IN) -> (N, D_OUT).  The two
    transposes are extra HBM passes; callers that can keep the (D_IN, N)
    layout should use sdf_forward_dn directly."""
    return sdf_forward_dn(x.T, w_in, w_hid, b_slab, tile_n=tile_n).T


# ---------------- deterministic parameter init (mirrors __init__) ----------------
def init_params(key):
    """Raw PyTorch-shaped params: weights[l] is (out, in), biases[l] is (out,)."""
    weights, biases = [], []
    for l in range(NUM_LIN):
        out_dim, in_dim = LAYER_SHAPES[l]
        key, sub = jax.random.split(key)
        if l == NUM_LIN - 1:
            # geometric init of last layer (distance > 0, inside_outside=False)
            mean = np.sqrt(np.pi) / np.sqrt(DIMS[l])
            w = mean + 1e-4 * jax.random.normal(sub, (out_dim, in_dim), jnp.float32)
            b = jnp.full((out_dim,), -DISTANCE, jnp.float32)   # init.constant_(bias, -distance)
        else:
            # multires == 0 path: normal(0, sqrt(2)/sqrt(out_dim)), bias = 0
            std = np.sqrt(2.0) / np.sqrt(out_dim)
            w = std * jax.random.normal(sub, (out_dim, in_dim), jnp.float32)
            b = jnp.zeros((out_dim,), jnp.float32)
        # weight_norm(lin) at init: effective weight == w, so use it directly.
        weights.append(w)
        biases.append(b)
    return weights, biases


def pack_params(raw_weights, raw_biases):
    """Fold sqrt(2), scale and Softplus-beta constants and pack into three
    resident, uniformly-padded slabs (no per-tile / per-layer value slicing)."""
    w0, w1, w2, w3, w4 = [w.astype(jnp.float32) for w in raw_weights]
    b0, b1, b2, b3, b4 = [b.astype(jnp.float32) for b in raw_biases]

    # split the skip layer: W2 @ cat([h1; inputs]) == W2a @ h1 + W2b @ inputs
    d_prev = LAYER_SHAPES[2][1] - D_IN                     # 29
    w2a, w2b = w2[:, :d_prev], w2[:, d_prev:]

    # beta / sqrt(2) / scale folding (see derivation in the file header)
    w0f, b0f = BETA * w0, BETA * b0
    w1f, b1f = w1, BETA * b1
    w2af = w2a / SQRT2
    w2bf = (BETA / SQRT2) * w2b
    b2f = BETA * b2
    w3f, b3f = w3, BETA * b3
    w4f, b4f = w4 / BETA, b4
    w4f = w4f.at[0, :].divide(SCALE)                       # output row-0 / scale
    b4f = b4f.at[0].divide(SCALE)

    def pad_w(w, shape):
        out = jnp.zeros(shape, jnp.float32)
        return out.at[: w.shape[0], : w.shape[1]].set(w)

    def pad_b(b):
        out = jnp.zeros((D_HIDDEN, 1), jnp.float32)
        return out.at[: b.shape[0], 0].set(b)

    # Zero padding is exact: padded W1'/b1' rows produce g(0)=log(2) garbage in
    # a's padded rows, but W2a's padded (zero) columns annihilate them; W4's
    # padded rows are sliced off at the store.
    w_in = jnp.stack([pad_w(w0f, (D_HIDDEN, D_IN)),
                      pad_w(w2bf, (D_HIDDEN, D_IN))])                 # (2, 32, 3)
    w_hid = jnp.stack([pad_w(w1f, (D_HIDDEN, D_HIDDEN)),
                       pad_w(w2af, (D_HIDDEN, D_HIDDEN)),
                       pad_w(w3f, (D_HIDDEN, D_HIDDEN)),
                       pad_w(w4f, (D_HIDDEN, D_HIDDEN))])             # (4, 32, 32)
    b_slab = jnp.stack([pad_b(b0f), pad_b(b1f), pad_b(b2f),
                        pad_b(b3f), pad_b(b4f)])                       # (5, 32, 1)
    return w_in, w_hid, b_slab


# ---------------- pure-JAX reference (PyTorch semantics, unfolded params) ----------------
def sdf_reference(x, raw_weights, raw_biases):
    inputs = x
    h = inputs
    for l in range(NUM_LIN):
        if l in SKIP_IN:
            h = jnp.concatenate([h, inputs], axis=-1) / SQRT2
        h = h @ raw_weights[l].T + raw_biases[l]
        if l < NUM_LIN - 1:
            h = _softplus_beta100(h)
    return jnp.concatenate([h[:, :1] / SCALE, h[:, 1:]], axis=-1)


if __name__ == "__main__":
    key = jax.random.PRNGKey(0)
    kx, kp = jax.random.split(key)

    raw_w, raw_b = init_params(kp)
    w_in, w_hid, b_slab = pack_params(raw_w, raw_b)

    # Small-but-representative point batch; tile_n chosen so the grid has 2
    # steps (exercises the pipeline / both v7x TensorCores).  Production
    # default is tile_n=8192.
    N = 2048
    x = jax.random.normal(kx, (N, D_IN), dtype=jnp.float32)

    out = jax.block_until_ready(sdf_forward(x, w_in, w_hid, b_slab, tile_n=1024))
    ref = sdf_reference(x, raw_w, raw_b)
    assert out.shape == (N, D_OUT), out.shape
    assert bool(jnp.allclose(out, ref, atol=5e-5, rtol=1e-4)), \
        float(jnp.max(jnp.abs(out - ref)))

    # Ragged N: exercises the cdiv grid + padded out_shape path
    # (no input padding, single output slice at the end).
    N2 = 1900
    out2 = jax.block_until_ready(sdf_forward(x[:N2], w_in, w_hid, b_slab, tile_n=1024))
    assert out2.shape == (N2, D_OUT), out2.shape
    assert bool(jnp.allclose(out2, ref[:N2], atol=5e-5, rtol=1e-4)), \
        float(jnp.max(jnp.abs(out2 - ref[:N2])))

    print("KERNEL_OK")
</pallas_src>

<mosaic_0001>
module attributes {stable_mosaic.version = 11 : i64} {
  func.func @sdf_kernel(%arg0: i32, %arg1: memref<3x1024xf32, #tpu.memory_space<vmem>>, %arg2: memref<2x32x3xf32, #tpu.memory_space<vmem>>, %arg3: memref<4x32x32xf32, #tpu.memory_space<vmem>>, %arg4: memref<5x32x1xf32, #tpu.memory_space<vmem>>, %arg5: memref<5x1024xf32, #tpu.memory_space<vmem>>) attributes {dimension_semantics = [#tpu.dimension_semantics<parallel>], iteration_bounds = array<i64: 2>, scalar_prefetch = 0 : i64, scratch_operands = 0 : i64, tpu.core_type = #tpu.core_type<tc>, window_params = [{transform_indices = @transform_0, window_bounds = array<i64: 3, 1024>}, {pipeline_mode = #tpu.pipeline_mode<synchronous>, transform_indices = @transform_1, window_bounds = array<i64: 2, 32, 3>}, {pipeline_mode = #tpu.pipeline_mode<synchronous>, transform_indices = @transform_2, window_bounds = array<i64: 4, 32, 32>}, {pipeline_mode = #tpu.pipeline_mode<synchronous>, transform_indices = @transform_3, window_bounds = array<i64: 5, 32, 1>}, {transform_indices = @transform_4, window_bounds = array<i64: 5, 1024>}]} {
    %c0 = arith.constant 0 : index
    %c0_0 = arith.constant 0 : index
    %0 = vector.load %arg1[%c0, %c0_0] : memref<3x1024xf32, #tpu.memory_space<vmem>>, vector<3x1024xf32>
    %c0_1 = arith.constant 0 : index
    %c0_2 = arith.constant 0 : index
    %c0_3 = arith.constant 0 : index
    %1 = vector.load %arg2[%c0_1, %c0_2, %c0_3] : memref<2x32x3xf32, #tpu.memory_space<vmem>>, vector<1x32x3xf32>
    %2 = vector.shape_cast %1 : vector<1x32x3xf32> to vector<32x3xf32>
    %cst = arith.constant dense<0.000000e+00> : vector<32x1024xf32>
    %3 = tpu.matmul %2, %0, %cst {dimension_numbers = #tpu.dot_dimension_numbers<[1], [0], [0], [1], [0, 0, 1, 1], [], []>} : vector<32x3xf32>, vector<3x1024xf32>, vector<32x1024xf32> -> vector<32x1024xf32>
    %c0_4 = arith.constant 0 : index
    %c0_5 = arith.constant 0 : index
    %c0_6 = arith.constant 0 : index
    %4 = vector.load %arg4[%c0_4, %c0_5, %c0_6] : memref<5x32x1xf32, #tpu.memory_space<vmem>>, vector<1x32x1xf32>
    %5 = vector.shape_cast %4 : vector<1x32x1xf32> to vector<32x1xf32>
    %6 = vector.broadcast %5 : vector<32x1xf32> to vector<32x1024xf32>
    %7 = arith.addf %3, %6 : vector<32x1024xf32>
    %cst_7 = arith.constant 2.000000e+01 : f32
    %8 = vector.broadcast %cst_7 : f32 to vector<32x1024xf32>
    %9 = arith.cmpf ogt, %7, %8 : vector<32x1024xf32>
    %cst_8 = arith.constant 2.000000e+01 : f32
    %10 = vector.broadcast %cst_8 : f32 to vector<32x1024xf32>
    %11 = arith.minimumf %7, %10 : vector<32x1024xf32>
    %12 = math.exp %11 : vector<32x1024xf32>
    %13 = math.log1p %12 : vector<32x1024xf32>
    %14 = arith.select %9, %7, %13 : vector<32x1024xi1>, vector<32x1024xf32>
    %c0_9 = arith.constant 0 : index
    %c0_10 = arith.constant 0 : index
    %c0_11 = arith.constant 0 : index
    %15 = vector.load %arg3[%c0_9, %c0_10, %c0_11] : memref<4x32x32xf32, #tpu.memory_space<vmem>>, vector<1x32x32xf32>
    %16 = vector.shape_cast %15 : vector<1x32x32xf32> to vector<32x32xf32>
    %cst_12 = arith.constant dense<0.000000e+00> : vector<32x1024xf32>
    %17 = tpu.matmul %16, %14, %cst_12 {dimension_numbers = #tpu.dot_dimension_numbers<[1], [0], [0], [1], [0, 0, 1, 1], [], []>} : vector<32x32xf32>, vector<32x1024xf32>, vector<32x1024xf32> -> vector<32x1024xf32>
    %c1 = arith.constant 1 : index
    %c0_13 = arith.constant 0 : index
    %c0_14 = arith.constant 0 : index
    %18 = vector.load %arg4[%c1, %c0_13, %c0_14] : memref<5x32x1xf32, #tpu.memory_space<vmem>>, vector<1x32x1xf32>
    %19 = vector.shape_cast %18 : vector<1x32x1xf32> to vector<32x1xf32>
    %20 = vector.broadcast %19 : vector<32x1xf32> to vector<32x1024xf32>
    %21 = arith.addf %17, %20 : vector<32x1024xf32>
    %cst_15 = arith.constant 2.000000e+01 : f32
    %22 = vector.broadcast %cst_15 : f32 to vector<32x1024xf32>
    %23 = arith.cmpf ogt, %21, %22 : vector<32x1024xf32>
    %cst_16 = arith.constant 2.000000e+01 : f32
    %24 = vector.broadcast %cst_16 : f32 to vector<32x1024xf32>
    %25 = arith.minimumf %21, %24 : vector<32x1024xf32>
    %26 = math.exp %25 : vector<32x1024xf32>
    %27 = math.log1p %26 : vector<32x1024xf32>
    %28 = arith.select %23, %21, %27 : vector<32x1024xi1>, vector<32x1024xf32>
    %c1_17 = arith.constant 1 : index
    %c0_18 = arith.constant 0 : index
    %c0_19 = arith.constant 0 : index
    %29 = vector.load %arg3[%c1_17, %c0_18, %c0_19] : memref<4x32x32xf32, #tpu.memory_space<vmem>>, vector<1x32x32xf32>
    %30 = vector.shape_cast %29 : vector<1x32x32xf32> to vector<32x32xf32>
    %cst_20 = arith.constant dense<0.000000e+00> : vector<32x1024xf32>
    %31 = tpu.matmul %30, %28, %cst_20 {dimension_numbers = #tpu.dot_dimension_numbers<[1], [0], [0], [1], [0, 0, 1, 1], [], []>} : vector<32x32xf32>, vector<32x1024xf32>, vector<32x1024xf32> -> vector<32x1024xf32>
    %c1_21 = arith.constant 1 : index
    %c0_22 = arith.constant 0 : index
    %c0_23 = arith.constant 0 : index
    %32 = vector.load %arg2[%c1_21, %c0_22, %c0_23] : memref<2x32x3xf32, #tpu.memory_space<vmem>>, vector<1x32x3xf32>
    %33 = vector.shape_cast %32 : vector<1x32x3xf32> to vector<32x3xf32>
    %cst_24 = arith.constant dense<0.000000e+00> : vector<32x1024xf32>
    %34 = tpu.matmul %33, %0, %cst_24 {dimension_numbers = #tpu.dot_dimension_numbers<[1], [0], [0], [1], [0, 0, 1, 1], [], []>} : vector<32x3xf32>, vector<3x1024xf32>, vector<32x1024xf32> -> vector<32x1024xf32>
    %35 = arith.addf %31, %34 : vector<32x1024xf32>
    %c2 = arith.constant 2 : index
    %c0_25 = arith.constant 0 : index
    %c0_26 = arith.constant 0 : index
    %36 = vector.load %arg4[%c2, %c0_25, %c0_26] : memref<5x32x1xf32, #tpu.memory_space<vmem>>, vector<1x32x1xf32>
    %37 = vector.shape_cast %36 : vector<1x32x1xf32> to vector<32x1xf32>
    %38 = vector.broadcast %37 : vector<32x1xf32> to vector<32x1024xf32>
    %39 = arith.addf %35, %38 : vector<32x1024xf32>
    %cst_27 = arith.constant 2.000000e+01 : f32
    %40 = vector.broadcast %cst_27 : f32 to vector<32x1024xf32>
    %41 = arith.cmpf ogt, %39, %40 : vector<32x1024xf32>
    %cst_28 = arith.constant 2.000000e+01 : f32
    %42 = vector.broadcast %cst_28 : f32 to vector<32x1024xf32>
    %43 = arith.minimumf %39, %42 : vector<32x1024xf32>
    %44 = math.exp %43 : vector<32x1024xf32>
    %45 = math.log1p %44 : vector<32x1024xf32>
    %46 = arith.select %41, %39, %45 : vector<32x1024xi1>, vector<32x1024xf32>
    %c2_29 = arith.constant 2 : index
    %c0_30 = arith.constant 0 : index
    %c0_31 = arith.constant 0 : index
    %47 = vector.load %arg3[%c2_29, %c0_30, %c0_31] : memref<4x32x32xf32, #tpu.memory_space<vmem>>, vector<1x32x32xf32>
    %48 = vector.shape_cast %47 : vector<1x32x32xf32> to vector<32x32xf32>
    %cst_32 = arith.constant dense<0.000000e+00> : vector<32x1024xf32>
    %49 = tpu.matmul %48, %46, %cst_32 {dimension_numbers = #tpu.dot_dimension_numbers<[1], [0], [0], [1], [0, 0, 1, 1], [], []>} : vector<32x32xf32>, vector<32x1024xf32>, vector<32x1024xf32> -> vector<32x1024xf32>
    %c3 = arith.constant 3 : index
    %c0_33 = arith.constant 0 : index
    %c0_34 = arith.constant 0 : index
    %50 = vector.load %arg4[%c3, %c0_33, %c0_34] : memref<5x32x1xf32, #tpu.memory_space<vmem>>, vector<1x32x1xf32>
    %51 = vector.shape_cast %50 : vector<1x32x1xf32> to vector<32x1xf32>
    %52 = vector.broadcast %51 : vector<32x1xf32> to vector<32x1024xf32>
    %53 = arith.addf %49, %52 : vector<32x1024xf32>
    %cst_35 = arith.constant 2.000000e+01 : f32
    %54 = vector.broadcast %cst_35 : f32 to vector<32x1024xf32>
    %55 = arith.cmpf ogt, %53, %54 : vector<32x1024xf32>
    %cst_36 = arith.constant 2.000000e+01 : f32
    %56 = vector.broadcast %cst_36 : f32 to vector<32x1024xf32>
    %57 = arith.minimumf %53, %56 : vector<32x1024xf32>
    %58 = math.exp %57 : vector<32x1024xf32>
    %59 = math.log1p %58 : vector<32x1024xf32>
    %60 = arith.select %55, %53, %59 : vector<32x1024xi1>, vector<32x1024xf32>
    %c3_37 = arith.constant 3 : index
    %c0_38 = arith.constant 0 : index
    %c0_39 = arith.constant 0 : index
    %61 = vector.load %arg3[%c3_37, %c0_38, %c0_39] : memref<4x32x32xf32, #tpu.memory_space<vmem>>, vector<1x32x32xf32>
    %62 = vector.shape_cast %61 : vector<1x32x32xf32> to vector<32x32xf32>
    %cst_40 = arith.constant dense<0.000000e+00> : vector<32x1024xf32>
    %63 = tpu.matmul %62, %60, %cst_40 {dimension_numbers = #tpu.dot_dimension_numbers<[1], [0], [0], [1], [0, 0, 1, 1], [], []>} : vector<32x32xf32>, vector<32x1024xf32>, vector<32x1024xf32> -> vector<32x1024xf32>
    %c4 = arith.constant 4 : index
    %c0_41 = arith.constant 0 : index
    %c0_42 = arith.constant 0 : index
    %64 = vector.load %arg4[%c4, %c0_41, %c0_42] : memref<5x32x1xf32, #tpu.memory_space<vmem>>, vector<1x32x1xf32>
    %65 = vector.shape_cast %64 : vector<1x32x1xf32> to vector<32x1xf32>
    %66 = vector.broadcast %65 : vector<32x1xf32> to vector<32x1024xf32>
    %67 = arith.addf %63, %66 : vector<32x1024xf32>
    %68 = vector.extract_strided_slice %67 {offsets = [0, 0], sizes = [5, 1024], strides = [1, 1]} : vector<32x1024xf32> to vector<5x1024xf32>
    %c0_43 = arith.constant 0 : index
    %c0_44 = arith.constant 0 : index
    %69 = vector.load %arg5[%c0_43, %c0_44] : memref<5x1024xf32, #tpu.memory_space<vmem>>, vector<5x1024xf32>
    tpu.vector_store %arg5[%c0_43, %c0_44], %68 {strides = array<i32>} : memref<5x1024xf32, #tpu.memory_space<vmem>>, vector<5x1024xf32>,
    return
  }
  func.func @transform_0(%arg0: i32) -> (i32, i32) {
    %c0_i32 = arith.constant 0 : i32
    %c0_i32_0 = arith.constant 0 : i32
    return %c0_i32, %arg0 : i32, i32
  }
  func.func @transform_1(%arg0: i32) -> (i32, i32, i32) {
    %c0_i32 = arith.constant 0 : i32
    %c0_i32_0 = arith.constant 0 : i32
    %c0_i32_1 = arith.constant 0 : i32
    %c0_i32_2 = arith.constant 0 : i32
    return %c0_i32, %c0_i32_0, %c0_i32_1 : i32, i32, i32
  }
  func.func @transform_2(%arg0: i32) -> (i32, i32, i32) {
    %c0_i32 = arith.constant 0 : i32
    %c0_i32_0 = arith.constant 0 : i32
    %c0_i32_1 = arith.constant 0 : i32
    %c0_i32_2 = arith.constant 0 : i32
    return %c0_i32, %c0_i32_0, %c0_i32_1 : i32, i32, i32
  }
  func.func @transform_3(%arg0: i32) -> (i32, i32, i32) {
    %c0_i32 = arith.constant 0 : i32
    %c0_i32_0 = arith.constant 0 : i32
    %c0_i32_1 = arith.constant 0 : i32
    %c0_i32_2 = arith.constant 0 : i32
    return %c0_i32, %c0_i32_0, %c0_i32_1 : i32, i32, i32
  }
  func.func @transform_4(%arg0: i32) -> (i32, i32) {
    %c0_i32 = arith.constant 0 : i32
    %c0_i32_0 = arith.constant 0 : i32
    return %c0_i32, %arg0 : i32, i32
  }
}

</mosaic_0001>

<bundles_post_ra>
// kernel: tpu_custom_call.1
= control target key start
LH: loop header
LB: loop body
LE: loop exit
PB: predicated region body
PF: predicated region fallthrough
CT: control target
= control target key end

     0   :  { %9 = vsyncpa [#allocation3], 0  ;;  %s8804_s0 = inlined_call_operand.vmem [shape: f32[3,2048], index: 0, kind: input, shape index: {}]   ;;  %s8805_s1 = inlined_call_operand.vmem [shape: f32[2,32,3], index: 1, kind: input, shape index: {}]   ;;  %s8806_s2 = inlined_call_operand.vmem [shape: f32[4,32,32], index: 2, kind: input, shape index: {}]   ;;  %s8807_s3 = inlined_call_operand.vmem [shape: f32[5,32,1], index: 3, kind: input, shape index: {}]   ;;  %s8808_s4 = inlined_call_operand.hbm [shape: f32[5,2048], index: 4, kind: output, shape index: {}]  }
   0x1   :  { %11 = vsyncpa [#allocation3 + $0x1], 0  ;;  %s5441_s15 = smov 0   ;;  %s5443_s16 = smov 0  }
   0x2   :  { %s5445_s17 = smov 0   ;;  %s5447_s18 = smov 0  }
   0x3 LB: > { %s5462_s19 = sadd.s32 4294967295, %s5411_s18   ;;  %s4469_s20 = sadd.s32 4294967294, %s5411_s18   ;;  %s5411_s18 = sphi %s5447_s18, %s9227_s18   ;;  %s5407_s17 = sphi %s5445_s17, %s9226_s17   ;;  %s5403_s16 = sphi %s5443_s16, %s9225_s16   ;;  %s5399_s15 = sphi %s5441_s15, %s9224_s15  }
   0x4   : > { %s5466_s21 = sadd.s32 1, %s5411_s18   ;;  %s113_s22 = sadd.s32 1, %s5407_s17 }
   0x5   : > { %s110_s23 = ssub.s32 %s5411_s18, %s5466_s21  ;;  %p123_p0 = scmp.ne.s32.totalorder %s5407_s17, %s5403_s16 }
   0x6   : > { %p111_p1 = scmp.eq.s32.totalorder %s110_s23, 0  ;;  %p124_p2 = scmp.eq.s32.totalorder %s5462_s19, 1 }
   0x7   : > { %p129_p3 = scmp.ne.s32.totalorder %s5403_s16, %s5399_s15  ;;  %p130_p4 = scmp.eq.s32.totalorder %s4469_s20, 1 }
   0x8   : > { %s5477_s24 = scalar_select %p111_p1, %s5407_s17, %s113_s22  }
   0x9   : > { %p5479_p5 = por %p124_p2, %p123_p0  ;;  %p5483_p6 = por %p130_p4, %p129_p3 }
   0xa   : > { %p4472_p7 = scmp.ge.s32.totalorder %s5411_s18, 1  ;;  %p166_p8 = scmp.lt.s32.totalorder %s5411_s18, 3 }
   0xc   : > { %p167_p9 = pnand %p4472_p7, %p166_p8 }
   0xe   : > { %170 = sbr.rel (%p167_p9) target bundleno = 1601 (0x641), region = 36 }
  0x15   : > { %s4474_s27 = sshll.u32 %s5462_s19, 3  ;;  %v8809_v0 = vmov 0.0   ;;  %v207_v1 = vld [vmem:[%s8807_s3] sm:$0xff]  ;;  %v5414_v2 = vmov 0   ;;  %v209_v3 = vld [vmem:[%s8807_s3 + $0x10] sm:$0xff]  ;;  %v208_v4 = vld [vmem:[%s8807_s3 + $0x8] sm:$0xff] }
  0x16   : > { %p193_p10 = scmp.lt.s32.totalorder %s4474_s27, 15  ;;  %333 = vmatprep.mubr.f32.mxu0 %v8809_v0  ;;  %422 = vmatprep.mubr.f32.mxu1 %v8809_v0  ;;  %v210_v5 = vld [vmem:[%s8807_s3 + $0x18] sm:$0xff]  ;;  %vm252_vm0 = vcmask 1042432   ;;  %v203_v12 = vld [vmem:[%s8805_s1] sm:$0xff]  ;;  %vm239_vm1 = vcmask 23552   ;;  %v204_v15 = vld [vmem:[%s8805_s1 + $0x8] sm:$0xff] }
  0x17   : > { %4827 = vset.pattern.permute.xlu0 %v5414_v2  ;;  %4828 = vset.pattern.permute.xlu1 %v5414_v2  ;;  %v4500_v16 = vld [vmem:[%s8807_s3 + $0x20] sm:$0xff]  ;;  %v4501_v17 = vld [vmem:[%s8807_s3 + $0x28] sm:$0xff]  ;;  %v205_v18 = vld [vmem:[%s8805_s1 + $0x10] sm:$0xff]  ;;  %s189_s5 = sand.u32 1, %s5403_s16   ;;  %s4625_s8 = sshll.u32 %s5462_s19, 10 }
  0x18   : > { %s9229_s27 = smov (!%p193_p10, %s4474_s27), 15  ;;  %213 = vperm.xlu0 %4827, %v207_v1   ;;  %223 = vperm.xlu1 %4828, %v209_v3   ;;  %v4502_v19 = vld [vmem:[%s8807_s3 + $0x30] sm:$0xff]  ;;  %v4503_v20 = vld [vmem:[%s8807_s3 + $0x38] sm:$0xff]  ;;  %v4568_v22 = vld [vmem:[%s8807_s3 + $0x40] sm:$0xff]  ;;  %s4473_s6 = sshll.u32 %s189_s5, 6 }
  0x19   : > { %s4475_s10 = sshll.u32 %s9229_s27, 2  ;;  %v206_v21 = vld [vmem:[%s8805_s1 + $0x18] sm:$0xff]  ;;  %v4569_v23 = vld [vmem:[%s8807_s3 + $0x48] sm:$0xff]  ;;  %v4570_v24 = vld [vmem:[%s8807_s3 + $0x50] sm:$0xff]  ;;  %s8745_s7 = scalar_lea.vmem [#allocation2], %s4473_s6 }
  0x1a   : > { %s5507_s13 = scalar_lea.vmem %s8804_s0, %s4475_s10  ;;  %v4571_v25 = vld [vmem:[%s8807_s3 + $0x58] sm:$0xff]  ;;  %v4576_v26 = vld [vmem:[%s8807_s3 + $0x60] sm:$0xff]  ;;  %v4577_v27 = vld [vmem:[%s8807_s3 + $0x68] sm:$0xff]  ;;  %s4410_s9 = sshll.u32 %s8745_s7, 4  ;;  %s8760_s9 = int_to_ptr.vmem [resolvable:$true] %s4410_s9 }
  0x1b   : > { %v199_v6 = vld [vmem:[%s5507_s13] sm:$0x77]  ;;  %v200_v7 = vld [vmem:[%s5507_s13 + $0x8] sm:$0x77]  ;;  %v201_v8 = vld [vmem:[%s5507_s13 + $0x10] sm:$0x77]  ;;  %s8758_s12 = scalar_lea.hbm %s8808_s4, %s4625_s8 }
  0x1c   : > { %218 = vperm.xlu0 %4827, %v208_v4   ;;  %228 = vperm.xlu1 %4828, %v210_v5   ;;  %v5512_v9 = vcombine.high %v199_v6, %v199_v6  ;;  %v5514_v10 = vcombine.high %v200_v7, %v200_v7  ;;  %v202_v11 = vld [vmem:[%s5507_s13 + $0x18] sm:$0x77]  ;;  %v5524_v13 = vcombine.high %v201_v8, %v201_v8  ;;  %v4578_v28 = vld [vmem:[%s8807_s3 + $0x70] sm:$0xff]  ;;  %v4600_v30 = vld [vmem:[%s8807_s3 + $0x80] sm:$0xff]  ;;  %s4396_s19 = scalar_lea.sflag [#allocation3], %s189_s5  ;;  %s5415_s14 = smov [#allocation2]  }
  0x1d   : > { %v5526_v14 = vcombine.high %v202_v11, %v202_v11  ;;  %v4579_v29 = vld [vmem:[%s8807_s3 + $0x78] sm:$0xff]  ;;  %s5353_s20 = sshll.u32 %s5415_s14, 4  ;;  %s5354_s20 = int_to_ptr.vmem [resolvable:$false] %s5353_s20 }
  0x1e   : > { %8892 = vst [vmem:[#allocation5_spill] sm:$0xff] %v5512_v9  ;;  %8893 = vst [vmem:[#allocation6_spill] sm:$0xff] %v5514_v10  ;;  %4476 = vmatprep.subr.msk.mxu0 %vm252_vm0, %v5512_v9  ;;  %4482 = vmatprep.subr.msk.mxu1 %vm252_vm0, %v5514_v10  ;;  %s5355_s22 = scalar_lea.vmem %s5354_s20, 2048  ;;  %p5356_p0 = scmp.lt.s32.totalorder %s8760_s9, %s5354_s20 }
  0x1f   : > { %8894 = vst [vmem:[#allocation7_spill] sm:$0xff] %v5524_v13  ;;  %8895 = vst [vmem:[#allocation8_spill] sm:$0xff] %v5526_v14  ;;  %4477 = vmatpush1.msk.msra.mxu0 %vm252_vm0, %v199_v6  ;;  %4483 = vmatpush1.msk.msra.mxu1 %vm252_vm0, %v200_v7 }
  0x20   : > { %4478 = vmatmul.mubr.msk.f32.vlgmr.msra.gmra.mrb[0].mxu0 %vm239_vm1, %v203_v12  ;;  %4484 = vmatmul.mubr.msk.f32.vlgmr.msra.gmra.mrb[0].mxu1 %vm239_vm1, %v203_v12 }
  0x21   : > { %339 = vmatprep.mubr.f32.mxu0 %v8809_v0  ;;  %428 = vmatprep.mubr.f32.mxu1 %v8809_v0 }
  0x22   : > { %4488 = vmatprep.subr.msk.mxu0 %vm252_vm0, %v5524_v13  ;;  %4494 = vmatprep.subr.msk.mxu1 %vm252_vm0, %v5526_v14 }
  0x23   : > { %4489 = vmatpush1.msk.msra.mxu0 %vm252_vm0, %v201_v8  ;;  %4495 = vmatpush1.msk.msra.mxu1 %vm252_vm0, %v202_v11 }
  0x24   : > { %4479 = vmatmul.mubr.msk.f32.gmra.mrb[2].mxu0 %vm239_vm1, %v204_v15  ;;  %4485 = vmatmul.mubr.msk.f32.gmra.mrb[2].mxu1 %vm239_vm1, %v204_v15 }
  0x25   : > { %345 = vmatprep.mubr.f32.mxu0 %v8809_v0  ;;  %434 = vmatprep.mubr.f32.mxu1 %v8809_v0 }
  0x26   : > { %1084 = vperm.xlu0 %4827, %v4500_v16   ;;  %1089 = vperm.xlu1 %4828, %v4501_v17  }
  0x28   : > { %4480 = vmatmul.mubr.msk.f32.gmra.mrb[4].mxu0 %vm239_vm1, %v205_v18  ;;  %4486 = vmatmul.mubr.msk.f32.gmra.mrb[4].mxu1 %vm239_vm1, %v205_v18 }
  0x29   : > { %351 = vmatprep.mubr.f32.mxu0 %v8809_v0  ;;  %440 = vmatprep.mubr.f32.mxu1 %v8809_v0 }
  0x2a   : > { %1094 = vperm.xlu0 %4827, %v4502_v19   ;;  %1099 = vperm.xlu1 %4828, %v4503_v20  }
  0x2c   : > { %4481 = vmatmul.mubr.msk.f32.gmra.mrb[6].mxu0 %vm239_vm1, %v206_v21  ;;  %4487 = vmatmul.mubr.msk.f32.gmra.mrb[6].mxu1 %vm239_vm1, %v206_v21 }
  0x2d   : > { %511 = vmatprep.mubr.f32.mxu0 %v8809_v0  ;;  %600 = vmatprep.mubr.f32.mxu1 %v8809_v0 }
  0x2e   : > { %2672 = vperm.xlu0 %4827, %v4568_v22   ;;  %2677 = vperm.xlu1 %4828, %v4569_v23  }
  0x30   : > { %4490 = vmatmul.mubr.msk.f32.vlgmr.msra.gmra.mrb[8].mxu0 %vm239_vm1, %v203_v12  ;;  %4496 = vmatmul.mubr.msk.f32.vlgmr.msra.gmra.mrb[8].mxu1 %vm239_vm1, %v203_v12 }
  0x31   : > { %517 = vmatprep.mubr.f32.mxu0 %v8809_v0  ;;  %606 = vmatprep.mubr.f32.mxu1 %v8809_v0 }
  0x32   : > { %2682 = vperm.xlu0 %4827, %v4570_v24   ;;  %2687 = vperm.xlu1 %4828, %v4571_v25  }
  0x34   : > { %4491 = vmatmul.mubr.msk.f32.gmra.mrb[10].mxu0 %vm239_vm1, %v204_v15  ;;  %4497 = vmatmul.mubr.msk.f32.gmra.mrb[10].mxu1 %vm239_vm1, %v204_v15 }
  0x35   : > { %523 = vmatprep.mubr.f32.mxu0 %v8809_v0  ;;  %612 = vmatprep.mubr.f32.mxu1 %v8809_v0 }
  0x36   : > { %3182 = vperm.xlu0 %4827, %v4576_v26   ;;  %3187 = vperm.xlu1 %4828, %v4577_v27  }
  0x38   : > { %4492 = vmatmul.mubr.msk.f32.gmra.mrb[12].mxu0 %vm239_vm1, %v205_v18  ;;  %4498 = vmatmul.mubr.msk.f32.gmra.mrb[12].mxu1 %vm239_vm1, %v205_v18 }
  0x39   : > { %529 = vmatprep.mubr.f32.mxu0 %v8809_v0  ;;  %618 = vmatprep.mubr.f32.mxu1 %v8809_v0 }
  0x3a   : > { %3192 = vperm.xlu0 %4827, %v4578_v28   ;;  %3197 = vperm.xlu1 %4828, %v4579_v29  }
  0x3c   : > { %4493 = vmatmul.mubr.msk.f32.gmra.mrb[14].mxu0 %vm239_vm1, %v206_v21  ;;  %4499 = vmatmul.mubr.msk.f32.gmra.mrb[14].mxu1 %vm239_vm1, %v206_v21 }
  0x3d   : > { %1179 = vmatprep.mubr.f32.mxu0 %v8809_v0  ;;  %1268 = vmatprep.mubr.f32.mxu1 %v8809_v0 }
  0x3e   : > { %4028 = vperm.xlu0 %4827, %v4600_v30  }
  0x97   : > { %v5616_v31 = vpop.permute.xlu0 %213  ;;  %v5637_v50 = vpop.permute.xlu1 %223 }
  0x9b   : > { %v5624_v38 = vpop.permute.xlu0 %218  ;;  %v5664_v11 = vpop.permute.xlu1 %228 }
  0xf3   : > { %v335_v32 = vpop.f32.mrb[0].mxu0  ;;  %v424_v33 = vpop.f32.mrb[0].mxu1 }
  0xf4   : > { %v5619_v34 = vadd.f32 %v335_v32, %v5616_v31  ;;  %v5622_v35 = vadd.f32 %v424_v33, %v5616_v31  ;;  %v337_v36 = vpop.f32.mrb[1].mxu0  ;;  %v426_v37 = vpop.f32.mrb[1].mxu1 }
  0xf5   : > { %v5635_v49 = vadd.f32 %v337_v36, %v5616_v31  ;;  %v5640_v51 = vadd.f32 %v426_v37, %v5616_v31 }
  0xf6   : > { %v657_v39 = vmin.f32 %v5619_v34, 20.0  ;;  %v659_v40 = vmin.f32 %v5622_v35, 20.0  ;;  %vm625_vm2 = vcmp.gt.f32.partialorder %v5619_v34, 20.0  ;;  %vm627_vm4 = vcmp.gt.f32.partialorder %v5622_v35, 20.0 }
  0xf7   : > { %v341_v41 = vpop.f32.mrb[2].mxu0  ;;  %v430_v42 = vpop.f32.mrb[2].mxu1  ;;  %8896 = vst [vmem:[#allocation9_spill] sm:$0xff] %v5640_v51  ;;  %v658_v59 = vmin.f32 %v5635_v49, 20.0  ;;  %v660_v63 = vmin.f32 %v5640_v51, 20.0 }
  0xf8   : > { %v689_v43 = vmul.f32 1.442695, %v657_v39  ;;  %v693_v44 = vmul.f32 1.442695, %v659_v40  ;;  %v5629_v45 = vadd.f32 %v341_v41, %v5624_v38  ;;  %v5632_v46 = vadd.f32 %v430_v42, %v5624_v38  ;;  %v343_v47 = vpop.f32.mrb[3].mxu0  ;;  %v432_v48 = vpop.f32.mrb[3].mxu1 }
  0xf9   : > { %v5646_v61 = vadd.f32 %v343_v47, %v5624_v38  ;;  %v5653_v1 = vadd.f32 %v432_v48, %v5624_v38  ;;  %v691_v12 = vmul.f32 1.442695, %v658_v59  ;;  %v695_v17 = vmul.f32 1.442695, %v660_v63 }
  0xfa   : > { %4833 = vpow2.f32 %v689_v43  ;;  %v665_v52 = vmin.f32 %v5629_v45, 20.0  ;;  %v667_v53 = vmin.f32 %v5632_v46, 20.0  ;;  %vm633_vm3 = vcmp.gt.f32.partialorder %v5629_v45, 20.0 }
  0xfb   : > { %4835 = vpow2.f32 %v693_v44  ;;  %v347_v54 = vpop.f32.mrb[4].mxu0  ;;  %v436_v55 = vpop.f32.mrb[4].mxu1  ;;  %8897 = vst [vmem:[#allocation10_spill] sm:$0xff] %v5653_v1  ;;  %v666_v15 = vmin.f32 %v5646_v61, 20.0  ;;  %v668_v18 = vmin.f32 %v5653_v1, 20.0  ;;  %vm635_vm5 = vcmp.gt.f32.partialorder %v5632_v46, 20.0 }
  0xfc   : > { %v705_v56 = vmul.f32 1.442695, %v665_v52  ;;  %v349_v57 = vpop.f32.mrb[5].mxu0  ;;  %v438_v58 = vpop.f32.mrb[5].mxu1  ;;  %v709_v60 = vmul.f32 1.442695, %v667_v53  ;;  %v5649_v62 = vadd.f32 %v347_v54, %v5637_v50  ;;  %v5656_v2 = vadd.f32 %v436_v55, %v5637_v50 }
  0xfd   : > { %v707_v28 = vmul.f32 1.442695, %v666_v15  ;;  %v711_v32 = vmul.f32 1.442695, %v668_v18  ;;  %v5687_v33 = vadd.f32 %v349_v57, %v5637_v50  ;;  %v5704_v44 = vadd.f32 %v438_v58, %v5637_v50 }
  0xfe   : > { %4837 = vpow2.f32 %v705_v56  ;;  %v673_v3 = vmin.f32 %v5649_v62, 20.0  ;;  %v675_v6 = vmin.f32 %v5656_v2, 20.0  ;;  %vm641_vm10 = vcmp.gt.f32.partialorder %v5649_v62, 20.0 }
  0xff   : > { %4839 = vpow2.f32 %v709_v60  ;;  %v353_v4 = vpop.f32.mrb[6].mxu0  ;;  %v442_v5 = vpop.f32.mrb[6].mxu1  ;;  %8898 = vst [vmem:[#allocation11_spill] sm:$0xff] %v5687_v33  ;;  %8899 = vst [vmem:[#allocation12_spill] sm:$0xff] %v5704_v44  ;;  %v674_v55 = vmin.f32 %v5687_v33, 20.0  ;;  %vm643_vm14 = vcmp.gt.f32.partialorder %v5656_v2, 20.0 }
 0x100   : > { %v5660_v7 = vpop.f32.mrb[7].mxu0  ;;  %v5662_v8 = vpop.f32.mrb[7].mxu1  ;;  %v721_v16 = vmul.f32 1.442695, %v673_v3  ;;  %v725_v19 = vmul.f32 1.442695, %v675_v6  ;;  %v5669_v20 = vadd.f32 %v353_v4, %v5664_v11  ;;  %v5690_v36 = vadd.f32 %v442_v5, %v5664_v11 }
 0x101   : > { %v676_v5 = vmin.f32 %v5704_v44, 20.0 }
 0x102   : > { %4841 = vpow2.f32 %v721_v16  ;;  %v681_v29 = vmin.f32 %v5669_v20, 20.0  ;;  %v683_v56 = vmin.f32 %v5690_v36, 20.0  ;;  %vm649_vm13 = vcmp.gt.f32.partialorder %v5669_v20, 20.0 }
 0x103   : > { %v5671_v21 = vpop.f32.mrb[8].mxu0  ;;  %v5673_v22 = vpop.f32.mrb[8].mxu1  ;;  %4843 = vpow2.f32 %v725_v19  ;;  %vm651_vm15 = vcmp.gt.f32.partialorder %v5690_v36, 20.0 }
 0x104   : > { %v5675_v23 = vpop.eup %4833  ;;  %v5677_v24 = vpop.f32.mrb[9].mxu0  ;;  %4845 = vpow2.f32 %v691_v12  ;;  %v737_v47 = vmul.f32 1.442695, %v681_v29  ;;  %v741_v6 = vmul.f32 1.442695, %v683_v56  ;;  %v5737_v29 = vadd.f32 %v5660_v7, %v5664_v11 }
 0x105   : > { %v5679_v25 = vpop.f32.mrb[9].mxu1  ;;  %v5681_v26 = vpop.eup %4835  ;;  %v753_v27 = vadd.f32 1.0, %v5675_v23  ;;  %4847 = vpow2.f32 %v695_v17  ;;  %v756_v52 = vmul.f32 -0.5, %v5675_v23  ;;  %v759_v16 = vand.u32 2147483647, %v5675_v23 }
 0x106   : > { %v771_v30 = vadd.f32 1.0, %v5681_v26  ;;  %v774_v54 = vmul.f32 -0.5, %v5681_v26  ;;  %v777_v17 = vand.u32 2147483647, %v5681_v26  ;;  %8900 = vst [vmem:[#allocation13_spill] sm:$0xff] %v5737_v29 }
 0x107   : > { %4849 = vlog2.f32 %v753_v27  ;;  %v5692_v37 = vpop.f32.mrb[10].mxu0  ;;  %v5696_v40 = vpop.f32.mrb[10].mxu1  ;;  %v757_v15 = vadd.f32 1.0, %v756_v52  ;;  %vm5761_vm6 = vcmp.lt.f32.partialorder %v759_v16, 0.0004427343 }
 0x108   : > { %v5694_v39 = vpop.eup %4837  ;;  %4851 = vlog2.f32 %v771_v30  ;;  %v5698_v41 = vpop.f32.mrb[11].mxu0  ;;  %v775_v27 = vadd.f32 1.0, %v774_v54  ;;  %v5751_v54 = vadd.f32 %v5662_v8, %v5664_v11  ;;  %vm5765_vm7 = vcmp.lt.f32.partialorder %v777_v17, 0.0004427343 }
 0x109   : > { %v5700_v42 = vpop.eup %4839  ;;  %v825_v43 = vadd.f32 1.0, %v5694_v39  ;;  %4853 = vpow2.f32 %v707_v28  ;;  %v5706_v48 = vpop.f32.mrb[11].mxu1  ;;  %v828_v58 = vmul.f32 -0.5, %v5694_v39  ;;  %v5733_v28 = vmul.f32 1.442695, %v674_v55 }
 0x10a   : > { %v843_v53 = vadd.f32 1.0, %v5700_v42  ;;  %4855 = vpow2.f32 %v711_v32  ;;  %v846_v4 = vmul.f32 -0.5, %v5700_v42  ;;  %v831_v52 = vand.u32 2147483647, %v5694_v39 }
 0x10b   : > { %4857 = vlog2.f32 %v825_v43  ;;  %v5713_v57 = vpop.f32.mrb[12].mxu0  ;;  %v5715_v59 = vpop.f32.mrb[12].mxu1  ;;  %v758_v10 = vmul.f32 %v5675_v23, %v757_v15  ;;  %v5778_v23 = vadd.f32 %v5673_v22, %v5616_v31  ;;  %v682_v22 = vmin.f32 %v5737_v29, 20.0 }
 0x10c   : > { %4859 = vlog2.f32 %v843_v53  ;;  %v5718_v60 = vpop.f32.mrb[13].mxu0  ;;  %v5720_v63 = vpop.f32.mrb[13].mxu1  ;;  %v849_v53 = vand.u32 2147483647, %v5700_v42  ;;  %v847_v56 = vadd.f32 1.0, %v846_v4 }
 0x10d   : > { %v5722_v3 = vpop.eup %4841  ;;  %4861 = vpow2.f32 %v737_v47  ;;  %v829_v47 = vadd.f32 1.0, %v828_v58  ;;  %v727_v58 = vmul.f32 1.442695, %v676_v5  ;;  %v5774_v5 = vadd.f32 %v5671_v21, %v5616_v31 }
 0x10e   : > { %v5726_v12 = vpop.eup %4843  ;;  %v897_v18 = vadd.f32 1.0, %v5722_v3  ;;  %4863 = vpow2.f32 %v741_v6  ;;  %vm5783_vm8 = vcmp.lt.f32.partialorder %v831_v52, 0.0004427343  ;;  %vm5787_vm9 = vcmp.lt.f32.partialorder %v849_v53, 0.0004427343 }
 0x10f   : > { %v5731_v19 = vpop.eup %4845  ;;  %v5739_v30 = vpop.f32.mrb[14].mxu0  ;;  %v915_v6 = vadd.f32 1.0, %v5726_v12  ;;  %v830_v16 = vmul.f32 %v5694_v39, %v829_v47  ;;  %v903_v52 = vand.u32 2147483647, %v5722_v3  ;;  %v918_v53 = vmul.f32 -0.5, %v5726_v12 }
 0x110   : > { %v5741_v32 = vpop.f32.mrb[14].mxu1  ;;  %v5743_v43 = vpop.eup %4847  ;;  %4865 = vlog2.f32 %v897_v18  ;;  %v776_v18 = vmul.f32 %v5681_v26, %v775_v27  ;;  %v900_v26 = vmul.f32 -0.5, %v5722_v3  ;;  %v848_v27 = vmul.f32 %v5700_v42, %v847_v56 }
 0x111   : > { %v5753_v7 = vpop.f32.mrb[15].mxu0  ;;  %v4850_v55 = vpop.eup %4849  ;;  %4867 = vlog2.f32 %v915_v6  ;;  %v663_v56 = vmin.f32 %v5778_v23, 20.0  ;;  %v921_v8 = vand.u32 2147483647, %v5726_v12  ;;  %vm5837_vm11 = vcmp.lt.f32.partialorder %v903_v52, 0.0004427343 }
 0x112   : > { %v5758_v0 = vpop.f32.mrb[15].mxu1  ;;  %v4852_v14 = vpop.eup %4851  ;;  %v755_v13 = vmul.f32 0.6931472, %v4850_v55  ;;  %v661_v55 = vmin.f32 %v5774_v5, 20.0  ;;  %v901_v29 = vadd.f32 1.0, %v900_v26  ;;  %v684_v26 = vmin.f32 %v5751_v54, 20.0 }
 0x113   : > { %v5769_v44 = vpop.eup %4853  ;;  %v773_v4 = vmul.f32 0.6931472, %v4852_v14  ;;  %v701_v14 = vmul.f32 1.442695, %v663_v56  ;;  %vm5841_vm12 = vcmp.lt.f32.partialorder %v921_v8, 0.0004427343  ;;  %v5850_v52 = vadd.f32 %v5677_v24, %v5616_v31 }
 0x114   : > { %v5780_v15 = vpop.eup %4855  ;;  %v761_v39 = vsel %vm5761_vm6, %v758_v10, %v755_v13  ;;  %v697_v42 = vmul.f32 1.442695, %v661_v55  ;;  %v5863_v56 = vadd.f32 %v5679_v25, %v5616_v31  ;;  %v5880_v25 = vadd.f32 %v5713_v57, %v5637_v50 }
 0x115   : > { %8905 = vst [vmem:[#allocation14_spill] sm:$0xff] %v5780_v15  ;;  %v4858_v21 = vpop.eup %4857  ;;  %v779_v51 = vsel %vm5765_vm7, %v776_v18, %v773_v4  ;;  %vm631_vm6 = vcmp.gt.f32.partialorder %v5778_v23, 20.0 }
 0x116   : > { %v4860_v33 = vpop.eup %4859  ;;  %v827_v47 = vmul.f32 0.6931472, %v4858_v21  ;;  %v5810_v21 = vsel %vm625_vm2, %v5619_v34, %v761_v39  ;;  %4869 = vpow2.f32 %v697_v42  ;;  %v5822_v4 = vsel %vm627_vm4, %v5622_v35, %v779_v51 }
 0x117   : > { %v4862_v1 = vpop.eup %4861  ;;  %v845_v15 = vmul.f32 0.6931472, %v4860_v33  ;;  %v919_v35 = vadd.f32 1.0, %v918_v53  ;;  %v739_v51 = vmul.f32 1.442695, %v682_v22  ;;  %v5854_v42 = vadd.f32 %v5692_v37, %v5624_v38 }
 0x118   : > { %v833_v6 = vsel %vm5783_vm8, %v830_v16, %v827_v47  ;;  %v969_v10 = vadd.f32 1.0, %v4862_v1  ;;  %v5805_v13 = vpop.eup %4863  ;;  %v902_v47 = vmul.f32 %v5722_v3, %v901_v29  ;;  %v975_v53 = vand.u32 2147483647, %v4862_v1 }
 0x119   : > { %v5815_v9 = vsel %vm633_vm3, %v5629_v45, %v833_v6  ;;  %v851_v33 = vsel %vm5787_vm9, %v848_v27, %v845_v15  ;;  %v972_v15 = vmul.f32 -0.5, %v4862_v1  ;;  %v987_v17 = vadd.f32 1.0, %v5805_v13 }
 0x11a   : > { %v5829_v34 = vsel %vm635_vm5, %v5632_v46, %v851_v33  ;;  %4871 = vlog2.f32 %v969_v10  ;;  %v4866_v45 = vpop.eup %4865  ;;  %v990_v22 = vmul.f32 -0.5, %v5805_v13  ;;  %v920_v3 = vmul.f32 %v5726_v12, %v919_v35 }
 0x11b   : > { %4873 = vpow2.f32 %v5733_v28  ;;  %v899_v46 = vmul.f32 0.6931472, %v4866_v45  ;;  %v4868_v39 = vpop.eup %4867  ;;  %v973_v28 = vadd.f32 1.0, %v972_v15  ;;  %v743_v29 = vmul.f32 1.442695, %v684_v26 }
 0x11c   : > { %4875 = vlog2.f32 %v987_v17  ;;  %v917_v6 = vmul.f32 0.6931472, %v4868_v39  ;;  %v669_v37 = vmin.f32 %v5854_v42, 20.0  ;;  %vm5873_vm2 = vcmp.lt.f32.partialorder %v975_v53, 0.0004427343 }
 0x11d   : > { %4877 = vpow2.f32 %v727_v58  ;;  %v5858_v58 = vadd.f32 %v5696_v40, %v5624_v38  ;;  %v905_v24 = vsel %vm5837_vm11, %v902_v47, %v899_v46  ;;  %v974_v12 = vmul.f32 %v4862_v1, %v973_v28 }
 0x11e   : > { %4879 = vpow2.f32 %v701_v14  ;;  %v993_v31 = vand.u32 2147483647, %v5805_v13  ;;  %v991_v45 = vadd.f32 1.0, %v990_v22  ;;  %v662_v17 = vmin.f32 %v5850_v52, 20.0 }
 0x11f   : > { %4881 = vpow2.f32 %v739_v51  ;;  %v671_v40 = vmin.f32 %v5858_v58, 20.0  ;;  %v713_v14 = vmul.f32 1.442695, %v669_v37  ;;  %v5887_v1 = vsel %vm641_vm10, %v5649_v62, %v905_v24 }
 0x120   : > { %v5871_v8 = vpop.eup %4869  ;;  %v5891_v26 = vadd.f32 %v5698_v41, %v5624_v38  ;;  %v923_v46 = vsel %vm5841_vm12, %v920_v3, %v917_v6  ;;  %v664_v27 = vmin.f32 %v5863_v56, 20.0  ;;  %v5900_v39 = vadd.f32 %v5706_v48, %v5624_v38 }
 0x121   : > { %v789_v15 = vadd.f32 1.0, %v5871_v8  ;;  %v717_v51 = vmul.f32 1.442695, %v671_v40  ;;  %v677_v41 = vmin.f32 %v5880_v25, 20.0  ;;  %v5907_v28 = vadd.f32 %v5715_v59, %v5637_v50 }
 0x122   : > { %v992_v48 = vmul.f32 %v5805_v13, %v991_v45  ;;  %vm994_vm3 = vcmp.lt.f32.partialorder %v993_v31, 0.0004427343  ;;  %v670_v59 = vmin.f32 %v5891_v26, 20.0  ;;  %v699_v40 = vmul.f32 1.442695, %v662_v17 }
 0x123   : > { %4883 = vlog2.f32 %v789_v15  ;;  %v729_v24 = vmul.f32 1.442695, %v677_v41  ;;  %v5929_v13 = vsel %vm643_vm14, %v5656_v2, %v923_v46  ;;  %v679_v31 = vmin.f32 %v5907_v28, 20.0 }
 0x124   : > { %v4872_v33 = vpop.eup %4871  ;;  %4885 = vpow2.f32 %v713_v14  ;;  %v792_v45 = vmul.f32 -0.5, %v5871_v8  ;;  %v703_v15 = vmul.f32 1.442695, %v664_v27  ;;  %v715_v17 = vmul.f32 1.442695, %v670_v59 }
 0x125   : > { %v971_v35 = vmul.f32 0.6931472, %v4872_v33  ;;  %v5893_v57 = vpop.eup %4873  ;;  %4887 = vpow2.f32 %v717_v51  ;;  %v733_v14 = vmul.f32 1.442695, %v679_v31  ;;  %v5942_v2 = vadd.f32 %v5718_v60, %v5637_v50 }
 0x126   : > { %v4876_v62 = vpop.eup %4875  ;;  %4889 = vpow2.f32 %v743_v29  ;;  %v5946_v29 = vadd.f32 %v5739_v30, %v5664_v11  ;;  %v5955_v46 = vadd.f32 %v5720_v63, %v5637_v50  ;;  %v793_v60 = vadd.f32 1.0, %v792_v45 }
 0x127   : > { %v977_v47 = vsel %vm5873_vm2, %v974_v12, %v971_v35  ;;  %v5909_v55 = vpop.eup %4877  ;;  %v989_v38 = vmul.f32 0.6931472, %v4876_v62  ;;  %8916 = vst [vmem:[#allocation15_spill] sm:$0xff] %v5942_v2  ;;  %v5950_v35 = vadd.f32 %v5741_v32, %v5664_v11  ;;  %v678_v51 = vmin.f32 %v5942_v2, 20.0  ;;  %v8936_v2 = vld [vmem:[#allocation14_spill] sm:$0xff] }
 0x128   : > { %v5914_v53 = vsel %vm649_vm13, %v5669_v20, %v977_v47  ;;  %v5917_v22 = vpop.eup %4879  ;;  %v672_v20 = vmin.f32 %v5900_v39, 20.0  ;;  %8917 = vst [vmem:[#allocation16_spill] sm:$0xff] %v5955_v46  ;;  %v795_v62 = vand.u32 2147483647, %v5871_v8  ;;  %v685_v32 = vmin.f32 %v5946_v29, 20.0 }
 0x129   : > { %v995_v6 = vsel %vm994_vm3, %v992_v48, %v989_v38  ;;  %v807_v37 = vadd.f32 1.0, %v5917_v22  ;;  %v5924_v12 = vpop.eup %4881  ;;  %v810_v30 = vmul.f32 -0.5, %v5917_v22  ;;  %v813_v41 = vand.u32 2147483647, %v5917_v22 }
 0x12a   : > { %v5934_v10 = vsel %vm651_vm15, %v5690_v36, %v995_v6  ;;  %v719_v36 = vmul.f32 1.442695, %v672_v20  ;;  %v687_v50 = vmin.f32 %v5950_v35, 20.0  ;;  %v5967_v63 = vadd.f32 %v5753_v7, %v5664_v11 }
 0x12b   : > { %4891 = vlog2.f32 %v807_v37  ;;  %v731_v6 = vmul.f32 1.442695, %v678_v51  ;;  %v680_v37 = vmin.f32 %v5955_v46, 20.0  ;;  %vm629_vm4 = vcmp.gt.f32.partialorder %v5774_v5, 20.0 }
 0x12c   : > { %4893 = vpow2.f32 %v729_v24  ;;  %8918 = vst [vmem:[#allocation17_spill] sm:$0xff] %v5967_v63  ;;  %vm5971_vm5 = vcmp.lt.f32.partialorder %v795_v62, 0.0004427343  ;;  %v794_v31 = vmul.f32 %v5871_v8, %v793_v60  ;;  %v811_v45 = vadd.f32 1.0, %v810_v30 }
 0x12d   : > { %4895 = vpow2.f32 %v699_v40  ;;  %v4884_v27 = vpop.eup %4883  ;;  %v745_v7 = vmul.f32 1.442695, %v685_v32  ;;  %vm5979_vm7 = vcmp.lt.f32.partialorder %v813_v41, 0.0004427343  ;;  %v749_v51 = vmul.f32 1.442695, %v687_v50 }
 0x12e   : > { %4897 = vpow2.f32 %v733_v14  ;;  %v5958_v47 = vpop.eup %4885  ;;  %v791_v59 = vmul.f32 0.6931472, %v4884_v27  ;;  %v735_v8 = vmul.f32 1.442695, %v680_v37  ;;  %v686_v60 = vmin.f32 %v5967_v63, 20.0 }
 0x12f   : > { %4899 = vpow2.f32 %v703_v15  ;;  %v4888_v38 = vpop.eup %4887  ;;  %v861_v48 = vadd.f32 1.0, %v5958_v47  ;;  %v864_v14 = vmul.f32 -0.5, %v5958_v47  ;;  %v812_v33 = vmul.f32 %v5917_v22, %v811_v45 }
 0x130   : > { %4901 = vpow2.f32 %v715_v17  ;;  %v879_v24 = vadd.f32 1.0, %v4888_v38  ;;  %v5975_v20 = vpop.eup %4889  ;;  %v797_v62 = vsel %vm5971_vm5, %v794_v31, %v791_v59  ;;  %vm637_vm8 = vcmp.gt.f32.partialorder %v5854_v42, 20.0 }
 0x131   : > { %4903 = vpow2.f32 %v719_v36  ;;  %v882_v36 = vmul.f32 -0.5, %v4888_v38  ;;  %v867_v50 = vand.u32 2147483647, %v5958_v47  ;;  %v885_v40 = vand.u32 2147483647, %v4888_v38 }
 0x132   : > { %4905 = vlog2.f32 %v861_v48  ;;  %v865_v37 = vadd.f32 1.0, %v864_v14  ;;  %vm639_vm9 = vcmp.gt.f32.partialorder %v5858_v58, 20.0  ;;  %v747_v45 = vmul.f32 1.442695, %v686_v60 }
 0x133   : > { %4907 = vlog2.f32 %v879_v24  ;;  %v883_v31 = vadd.f32 1.0, %v882_v36  ;;  %v762_v36 = vadd.f32 1.0, %v5731_v19  ;;  %vm6014_vm10 = vcmp.lt.f32.partialorder %v867_v50, 0.0004427343 }
 0x134   : > { %4909 = vpow2.f32 %v731_v6  ;;  %v5999_v6 = vsel %vm629_vm4, %v5774_v5, %v797_v62  ;;  %vm6018_vm11 = vcmp.lt.f32.partialorder %v885_v40, 0.0004427343  ;;  %v866_v60 = vmul.f32 %v5958_v47, %v865_v37 }
 0x135   : > { %v4892_v15 = vpop.eup %4891  ;;  %4911 = vpow2.f32 %v745_v7  ;;  %v884_v17 = vmul.f32 %v4888_v38, %v883_v31  ;;  %v765_v38 = vmul.f32 -0.5, %v5731_v19  ;;  %vm645_vm13 = vcmp.gt.f32.partialorder %v5880_v25, 20.0 }
 0x136   : > { %v4894_v27 = vpop.eup %4893  ;;  %v809_v32 = vmul.f32 0.6931472, %v4892_v15  ;;  %4913 = vpow2.f32 %v749_v51  ;;  %v6007_v15 = vadd.f32 %v5758_v0, %v5664_v11  ;;  %vm626_vm15 = vcmp.gt.f32.partialorder %v5635_v49, 20.0 }
 0x137   : > { %v5987_v30 = vpop.eup %4895  ;;  %v933_v48 = vadd.f32 1.0, %v4894_v27  ;;  %v936_v41 = vmul.f32 -0.5, %v4894_v27  ;;  %v939_v62 = vand.u32 2147483647, %v4894_v27  ;;  %vm634_vm2 = vcmp.gt.f32.partialorder %v5646_v61, 20.0 }
 0x138   : > { %v5989_v24 = vpop.eup %4897  ;;  %8923 = vst [vmem:[#allocation18_spill] sm:$0xff] %v6007_v15  ;;  %v815_v5 = vsel %vm5979_vm7, %v812_v33, %v809_v32  ;;  %v834_v33 = vadd.f32 1.0, %v5769_v44  ;;  %v688_v47 = vmin.f32 %v6007_v15, 20.0  ;;  %vm647_vm3 = vcmp.gt.f32.partialorder %v5907_v28, 20.0 }
 0x139   : > { %v5994_v59 = vpop.eup %4899  ;;  %4915 = vlog2.f32 %v933_v48  ;;  %v951_v22 = vadd.f32 1.0, %v5989_v24  ;;  %v937_v14 = vadd.f32 1.0, %v936_v41  ;;  %v954_v0 = vmul.f32 -0.5, %v5989_v24 }
 0x13a   : > { %v6002_v7 = vpop.eup %4901  ;;  %4917 = vpow2.f32 %v735_v8  ;;  %v6028_v41 = vsel %vm631_vm6, %v5778_v23, %v815_v5  ;;  %v957_v40 = vand.u32 2147483647, %v5989_v24  ;;  %vm6033_vm12 = vcmp.lt.f32.partialorder %v939_v62, 0.0004427343 }
 0x13b   : > { %v6009_v51 = vpop.eup %4903  ;;  %4919 = vlog2.f32 %v951_v22  ;;  %8928 = vst [vmem:[#allocation19_spill] sm:$0xff] %v6028_v41  ;;  %v6031_v3 = vmul.f32 %v4894_v27, %v937_v14  ;;  %v955_v31 = vadd.f32 1.0, %v954_v0  ;;  %v768_v5 = vand.u32 2147483647, %v5731_v19 }
 0x13c   : > { %v4906_v11 = vpop.eup %4905  ;;  %4921 = vlog2.f32 %v762_v36  ;;  %v837_v62 = vmul.f32 -0.5, %v5769_v44  ;;  %v780_v36 = vadd.f32 1.0, %v5743_v43  ;;  %vm6066_vm14 = vcmp.lt.f32.partialorder %v957_v40, 0.0004427343 }
 0x13d   : > { %v4908_v32 = vpop.eup %4907  ;;  %v863_v50 = vmul.f32 0.6931472, %v4906_v11  ;;  %4923 = vpow2.f32 %v747_v45  ;;  %v956_v48 = vmul.f32 %v5989_v24, %v955_v31  ;;  %vm6076_vm4 = vcmp.lt.f32.partialorder %v768_v5, 0.0004427343 }
 0x13e   : > { %v881_v22 = vmul.f32 0.6931472, %v4908_v32  ;;  %v6039_v37 = vpop.eup %4909  ;;  %4925 = vlog2.f32 %v834_v33  ;;  %v751_v32 = vmul.f32 1.442695, %v688_v47  ;;  %v783_v47 = vmul.f32 -0.5, %v5743_v43 }
 0x13f   : > { %v869_v23 = vsel %vm6014_vm10, %v866_v60, %v863_v50  ;;  %v4912_v45 = vpop.eup %4911  ;;  %v766_v50 = vadd.f32 1.0, %v765_v38  ;;  %v838_v40 = vadd.f32 1.0, %v837_v62  ;;  %v852_v62 = vadd.f32 1.0, %v8936_v2 }
 0x140   : > { %v6047_v27 = vsel %vm637_vm8, %v5854_v42, %v869_v23  ;;  %v887_v14 = vsel %vm6018_vm11, %v884_v17, %v881_v22  ;;  %v4914_v11 = vpop.eup %4913  ;;  %v1005_v42 = vadd.f32 1.0, %v4912_v45  ;;  %v1008_v60 = vmul.f32 -0.5, %v4912_v45 }
 0x141   : > { %v6058_v0 = vsel %vm639_vm9, %v5858_v58, %v887_v14  ;;  %v1023_v17 = vadd.f32 1.0, %v4914_v11  ;;  %v1026_v58 = vmul.f32 -0.5, %v4914_v11  ;;  %v840_v14 = vand.u32 2147483647, %v5769_v44 }
 0x142   : > { %8931 = vst [vmem:[#allocation20_spill] sm:$0xff] %v6058_v0  ;;  %4927 = vlog2.f32 %v1005_v42  ;;  %v1011_v24 = vand.u32 2147483647, %v4912_v45  ;;  %v1029_v8 = vand.u32 2147483647, %v4914_v11  ;;  %v767_v42 = vmul.f32 %v5731_v19, %v766_v50 }
 0x143   : > { %v4916_v33 = vpop.eup %4915  ;;  %4929 = vlog2.f32 %v1023_v17  ;;  %vm653_vm5 = vcmp.gt.f32.partialorder %v5946_v29, 20.0  ;;  %vm6087_vm6 = vcmp.lt.f32.partialorder %v840_v14, 0.0004427343  ;;  %v784_v19 = vadd.f32 1.0, %v783_v47 }
 0x144   : > { %v6063_v22 = vpop.eup %4917  ;;  %v935_v23 = vmul.f32 0.6931472, %v4916_v33  ;;  %v1009_v33 = vadd.f32 1.0, %v1008_v60  ;;  %4931 = vlog2.f32 %v780_v36  ;;  %v1027_v36 = vadd.f32 1.0, %v1026_v58 }
 0x145   : > { %v4920_v38 = vpop.eup %4919  ;;  %4933 = vpow2.f32 %v751_v32  ;;  %v906_v5 = vadd.f32 1.0, %v5893_v57  ;;  %vm6092_vm7 = vcmp.lt.f32.partialorder %v1011_v24, 0.0004427343  ;;  %vm655_vm8 = vcmp.gt.f32.partialorder %v5950_v35, 20.0  ;;  %v8944_v24 = vld [vmem:[#allocation10_spill] sm:$0xff] }
 0x146   : > { %v4922_v31 = vpop.eup %4921  ;;  %v941_v46 = vsel %vm6033_vm12, %v6031_v3, %v935_v23  ;;  %v953_v63 = vmul.f32 0.6931472, %v4920_v38  ;;  %v1010_v41 = vmul.f32 %v4912_v45, %v1009_v33  ;;  %v839_v16 = vmul.f32 %v5769_v44, %v838_v40 }
 0x147   : > { %v6080_v17 = vpop.eup %4923  ;;  %v764_v60 = vmul.f32 0.6931472, %v4922_v31  ;;  %4935 = vlog2.f32 %v852_v62  ;;  %v6101_v3 = vsel %vm645_vm13, %v5880_v25, %v941_v46  ;;  %vm6103_vm9 = vcmp.lt.f32.partialorder %v1029_v8, 0.0004427343 }
 0x148   : > { %v4926_v50 = vpop.eup %4925  ;;  %v959_v14 = vsel %vm6066_vm14, %v956_v48, %v953_v63  ;;  %v855_v47 = vmul.f32 -0.5, %v8936_v2  ;;  %4937 = vlog2.f32 %v906_v5  ;;  %v978_v44 = vadd.f32 1.0, %v5924_v12  ;;  %v8943_v48 = vld [vmem:[#allocation9_spill] sm:$0xff] }
 0x149   : > { %v770_v45 = vsel %vm6076_vm4, %v767_v42, %v764_v60  ;;  %v836_v58 = vmul.f32 0.6931472, %v4926_v50  ;;  %v1028_v38 = vmul.f32 %v4914_v11, %v1027_v36  ;;  %v785_v46 = vmul.f32 %v5743_v43, %v784_v19 }
 0x14a   : > { %v786_v8 = vand.u32 2147483647, %v5743_v43  ;;  %v1042_v15 = vsel %vm626_vm15, %v5635_v49, %v770_v45  ;;  %v858_v63 = vand.u32 2147483647, %v8936_v2  ;;  %4939 = vlog2.f32 %v978_v44 }
 0x14b   : > { %v842_v25 = vsel %vm6087_vm6, %v839_v16, %v836_v58  ;;  %vm628_vm10 = vcmp.gt.f32.partialorder %v8943_v48, 20.0  ;;  %vm636_vm11 = vcmp.gt.f32.partialorder %v8944_v24, 20.0  ;;  %v6129_v43 = vsel %vm647_vm3, %v5907_v28, %v959_v14  ;;  %v8948_v58 = vld [vmem:[#allocation11_spill] sm:$0xff]  ;;  %v8949_v14 = vld [vmem:[#allocation13_spill] sm:$0xff] }
 0x14c   : > { %v4928_v33 = vpop.eup %4927  ;;  %v1050_v18 = vsel %vm634_vm2, %v5646_v61, %v842_v25  ;;  %v909_v49 = vmul.f32 -0.5, %v5893_v57  ;;  %v856_v61 = vadd.f32 1.0, %v855_v47  ;;  %v981_v62 = vmul.f32 -0.5, %v5924_v12 }
 0x14d   : > { %v4930_v11 = vpop.eup %4929  ;;  %v1007_v40 = vmul.f32 0.6931472, %v4928_v33  ;;  %v4626_v31 = vpack.c.bf16 %v1050_v18, %v1042_v15  ;;  %v924_v36 = vadd.f32 1.0, %v5909_v55  ;;  %vm6138_vm12 = vcmp.lt.f32.partialorder %v786_v8, 0.0004427343 }
 0x14e   : > { %v4932_v42 = vpop.eup %4931  ;;  %v1025_v60 = vmul.f32 0.6931472, %v4930_v11  ;;  %v912_v50 = vand.u32 2147483647, %v5893_v57  ;;  %v8947_v0 = vpack.c.bf16 %v5815_v9, %v5810_v21  ;;  %vm642_vm13 = vcmp.gt.f32.partialorder %v8948_v58, 20.0 }
 0x14f   : > { %v6134_v32 = vpop.eup %4933  ;;  %v1013_v19 = vsel %vm6092_vm7, %v1010_v41, %v1007_v40  ;;  %4627 = vmatprep.subr.bf16.mxu0 %v4626_v31  ;;  %v782_v5 = vmul.f32 0.6931472, %v4932_v42  ;;  %v984_v41 = vand.u32 2147483647, %v5924_v12  ;;  %4941 = vlog2.f32 %v924_v36 }
 0x150   : > { %v6146_v16 = vsel %vm653_vm5, %v5946_v29, %v1013_v19  ;;  %v1031_v45 = vsel %vm6103_vm9, %v1028_v38, %v1025_v60  ;;  %4629 = vmatpush1.bf16.msra.mxu0 %v8947_v0  ;;  %vm650_vm14 = vcmp.gt.f32.partialorder %v8949_v14, 20.0  ;;  %vm6163_vm15 = vcmp.lt.f32.partialorder %v858_v63, 0.0004427343 }
 0x151   : > { %v4648_v47 = vpack.c.bf16 %v6146_v16, %v6101_v3  ;;  %v6161_v29 = vsel %vm655_vm8, %v5950_v35, %v1031_v45  ;;  %v910_v21 = vadd.f32 1.0, %v909_v49  ;;  %v4936_v9 = vpop.eup %4935  ;;  %v857_v38 = vmul.f32 %v8936_v2, %v856_v61  ;;  %v5345_v3 = vld [vmem:[%s5507_s13] sm:$0x77]  ;;  %v8982_v16 = vld [vmem:[#allocation6_spill] sm:$0xff] }
 0x152   : > { %v4656_v44 = vpack.c.bf16 %v6161_v29, %v6129_v43  ;;  %v982_v25 = vadd.f32 1.0, %v981_v62  ;;  %v996_v8 = vadd.f32 1.0, %v5975_v20  ;;  %v788_v33 = vsel %vm6138_vm12, %v785_v46, %v782_v5  ;;  %v4938_v63 = vpop.eup %4937  ;;  %v5346_v43 = vld [vmem:[%s5507_s13 + $0x8] sm:$0x77]  ;;  %v8984_v29 = vld [vmem:[#allocation8_spill] sm:$0xff] }
 0x153   : > { %v854_v15 = vmul.f32 0.6931472, %v4936_v9  ;;  %vm6173_vm2 = vcmp.lt.f32.partialorder %v912_v50, 0.0004427343  ;;  %v798_v18 = vadd.f32 1.0, %v5987_v30  ;;  %v927_v2 = vmul.f32 -0.5, %v5909_v55 }
 0x154   : > { %vm6178_vm3 = vcmp.lt.f32.partialorder %v984_v41, 0.0004427343  ;;  %4943 = vlog2.f32 %v996_v8  ;;  %v870_v40 = vadd.f32 1.0, %v6002_v7  ;;  %v908_v31 = vmul.f32 0.6931472, %v4938_v63  ;;  %v4940_v60 = vpop.eup %4939 }
 0x155   : > { %v860_v46 = vsel %vm6163_vm15, %v857_v38, %v854_v15  ;;  %v911_v49 = vmul.f32 %v5893_v57, %v910_v21  ;;  %v999_v42 = vmul.f32 -0.5, %v5975_v20  ;;  %v1044_v61 = vsel %vm628_vm10, %v8943_v48, %v788_v33  ;;  %v8957_v33 = vld [vmem:[#allocation12_spill] sm:$0xff] }
 0x156   : > { %v1052_v62 = vsel %vm636_vm11, %v8944_v24, %v860_v46  ;;  %v983_v36 = vmul.f32 %v5924_v12, %v982_v25  ;;  %vm1102_vm4 = vcmask 261120   ;;  %4945 = vlog2.f32 %v798_v18 }
 0x157   : > { %v4634_v19 = vpack.c.bf16 %v1052_v62, %v1044_v61  ;;  %v914_v5 = vsel %vm6173_vm2, %v911_v49, %v908_v31  ;;  %v980_v57 = vmul.f32 0.6931472, %v4940_v60  ;;  %v930_v28 = vand.u32 2147483647, %v5909_v55 }
 0x158   : > { %v928_v50 = vadd.f32 1.0, %v927_v2  ;;  %v1002_v45 = vand.u32 2147483647, %v5975_v20  ;;  %v801_v48 = vmul.f32 -0.5, %v5987_v30  ;;  %4947 = vlog2.f32 %v870_v40 }
 0x159   : > { %4635 = vmatprep.subr.bf16.mxu1 %v4634_v19  ;;  %v986_v24 = vsel %vm6178_vm3, %v983_v36, %v980_v57  ;;  %v1000_v12 = vadd.f32 1.0, %v999_v42  ;;  %v804_v0 = vand.u32 2147483647, %v5987_v30  ;;  %v816_v41 = vadd.f32 1.0, %v5994_v59  ;;  %v4942_v23 = vpop.eup %4941 }
 0x15a   : > { %v8956_v21 = vpack.c.bf16 %v5829_v34, %v5822_v4  ;;  %v1058_v9 = vsel %vm642_vm13, %v8948_v58, %v914_v5  ;;  %v1066_v38 = vsel %vm650_vm14, %v8949_v14, %v986_v24  ;;  %v873_v25 = vmul.f32 -0.5, %v6002_v7  ;;  %v6270_v24 = vld [vmem:[%s8806_s2 + $0x8] sm:$0xff] }
 0x15b   : > { %v888_v8 = vadd.f32 1.0, %v6009_v51  ;;  %vm644_vm5 = vcmp.gt.f32.partialorder %v8957_v33, 20.0  ;;  %v4630_v15 = vpack.c.bf16 %v1066_v38, %v1058_v9  ;;  %v926_v35 = vmul.f32 0.6931472, %v4942_v23 }
 0x15c   : > { %4637 = vmatpush1.bf16.msra.mxu1 %v8956_v21  ;;  %4949 = vlog2.f32 %v816_v41  ;;  %vm652_vm6 = vcmp.gt.f32.partialorder %v5751_v54, 20.0  ;;  %v802_v4 = vadd.f32 1.0, %v801_v48  ;;  %v819_v34 = vmul.f32 -0.5, %v5994_v59 }
 0x15d   : > { %4951 = vlog2.f32 %v888_v8  ;;  %vm630_vm7 = vcmp.gt.f32.partialorder %v5850_v52, 20.0  ;;  %vm638_vm8 = vcmp.gt.f32.partialorder %v5891_v26, 20.0  ;;  %4631 = vmatprep.subr.bf16.mxu0 %v4630_v15  ;;  %v929_v58 = vmul.f32 %v5909_v55, %v928_v50  ;;  %v6238_v55 = vld [vmem:[%s8806_s2] sm:$0xff] }
 0x15e   : > { %vm6221_vm9 = vcmp.lt.f32.partialorder %v930_v28, 0.0004427343  ;;  %v876_v18 = vand.u32 2147483647, %v6002_v7  ;;  %v942_v63 = vadd.f32 1.0, %v6039_v37  ;;  %v4944_v11 = vpop.eup %4943  ;;  %v1001_v2 = vmul.f32 %v5975_v20, %v1000_v12 }
 0x15f   : > { %vm6228_vm10 = vcmp.lt.f32.partialorder %v1002_v45, 0.0004427343  ;;  %v8962_v46 = vpack.c.bf16 %v5914_v53, %v5887_v1  ;;  %vm6240_vm11 = vcmp.lt.f32.partialorder %v804_v0, 0.0004427343  ;;  %v874_v49 = vadd.f32 1.0, %v873_v25 }
 0x160   : > { %v932_v20 = vsel %vm6221_vm9, %v929_v58, %v926_v35  ;;  %v998_v42 = vmul.f32 0.6931472, %v4944_v11  ;;  %v891_v60 = vmul.f32 -0.5, %v6009_v51  ;;  %4953 = vlog2.f32 %v942_v63  ;;  %v4946_v61 = vpop.eup %4945 }
 0x161   : > { %4633 = vmatpush1.bf16.msra.mxu0 %v8962_v46  ;;  %v803_v1 = vmul.f32 %v5987_v30, %v802_v4  ;;  %v820_v53 = vadd.f32 1.0, %v819_v34  ;;  %v822_v62 = vand.u32 2147483647, %v5994_v59  ;;  %v1014_v36 = vadd.f32 1.0, %v6080_v17 }
 0x162   : > { %vm632_vm12 = vcmp.gt.f32.partialorder %v5863_v56, 20.0  ;;  %v1004_v19 = vsel %vm6228_vm10, %v1001_v2, %v998_v42  ;;  %v800_v5 = vmul.f32 0.6931472, %v4946_v61  ;;  %vm6255_vm13 = vcmp.lt.f32.partialorder %v876_v18, 0.0004427343  ;;  %v4948_v28 = vpop.eup %4947 }
 0x163   : > { %v945_v30 = vmul.f32 -0.5, %v6039_v37  ;;  %v1060_v50 = vsel %vm644_vm5, %v8957_v33, %v932_v20  ;;  %v1068_v45 = vsel %vm652_vm6, %v5751_v54, %v1004_v19  ;;  %v8967_v48 = vmov 0.0   ;;  %v8975_v19 = vld [vmem:[#allocation19_spill] sm:$0xff] }
 0x164   : > { %4504 = vmatmul.mubr.msk.f32.vlgmr.msra.gmra.mrb[16].mxu0 %vm1102_vm4, %v6238_v55  ;;  %v875_v12 = vmul.f32 %v6002_v7, %v874_v49  ;;  %4955 = vlog2.f32 %v1014_v36  ;;  %v4638_v0 = vpack.c.bf16 %v1068_v45, %v1060_v50  ;;  %v806_v41 = vsel %vm6240_vm11, %v803_v1, %v800_v5  ;;  %v8974_v36 = vld [vmem:[#allocation20_spill] sm:$0xff]  ;;  %v8978_v50 = vld [vmem:[#allocation17_spill] sm:$0xff] }
 0x165   : > { %1185 = vmatprep.mubr.f32.mxu0 %v8967_v48  ;;  %v872_v23 = vmul.f32 0.6931472, %v4948_v28  ;;  %v892_v21 = vadd.f32 1.0, %v891_v60  ;;  %v821_v9 = vmul.f32 %v5994_v59, %v820_v53  ;;  %vm6276_vm14 = vcmp.lt.f32.partialorder %v822_v62, 0.0004427343  ;;  %v8977_v28 = vld [vmem:[#allocation15_spill] sm:$0xff] }
 0x166   : > { %v894_v38 = vand.u32 2147483647, %v6009_v51  ;;  %v960_v25 = vadd.f32 1.0, %v6063_v22  ;;  %v4950_v8 = vpop.eup %4949  ;;  %4639 = vmatprep.subr.bf16.mxu1 %v4638_v0  ;;  %v946_v33 = vadd.f32 1.0, %v945_v30  ;;  %v1017_v15 = vmul.f32 -0.5, %v6080_v17 }
 0x167   : > { %v878_v7 = vsel %vm6255_vm13, %v875_v12, %v872_v23  ;;  %v1032_v59 = vadd.f32 1.0, %v6134_v32  ;;  %v4952_v35 = vpop.eup %4951  ;;  %v8970_v4 = vpack.c.bf16 %v5934_v10, %v5929_v13  ;;  %v1046_v34 = vsel %vm630_vm7, %v5850_v52, %v806_v41  ;;  %v6305_v52 = vld [vmem:[%s8806_s2 + $0x10] sm:$0xff] }
 0x168   : > { %4505 = vmatmul.mubr.msk.f32.gmra.mrb[18].mxu0 %vm1102_vm4, %v6270_v24  ;;  %v1054_v58 = vsel %vm638_vm8, %v5891_v26, %v878_v7  ;;  %v818_v14 = vmul.f32 0.6931472, %v4950_v8  ;;  %4957 = vlog2.f32 %v960_v25  ;;  %v890_v63 = vmul.f32 0.6931472, %v4952_v35  ;;  %v8979_v7 = vld [vmem:[#allocation16_spill] sm:$0xff] }
 0x169   : > { %4641 = vmatpush1.bf16.msra.mxu1 %v8970_v4  ;;  %1191 = vmatprep.mubr.f32.mxu0 %v8967_v48  ;;  %v4642_v18 = vpack.c.bf16 %v1054_v58, %v1046_v34  ;;  %v893_v11 = vmul.f32 %v6009_v51, %v892_v21  ;;  %4959 = vlog2.f32 %v1032_v59  ;;  %vm640_vm15 = vcmp.gt.f32.partialorder %v5900_v39, 20.0  ;;  %v8981_v59 = vld [vmem:[#allocation5_spill] sm:$0xff]  ;;  %v4525_v4 = vld [vmem:[%s8805_s1 + $0x28] sm:$0xff]  ;;  %v4526_v34 = vld [vmem:[%s8805_s1 + $0x30] sm:$0xff] }
 0x16a   : > { %v824_v13 = vsel %vm6276_vm14, %v821_v9, %v818_v14  ;;  %vm895_vm2 = vcmp.lt.f32.partialorder %v894_v38, 0.0004427343  ;;  %v948_v26 = vand.u32 2147483647, %v6039_v37  ;;  %v4954_v10 = vpop.eup %4953  ;;  %v1018_v2 = vadd.f32 1.0, %v1017_v15  ;;  %v4527_v58 = vld [vmem:[%s8805_s1 + $0x38] sm:$0xff]  ;;  %v6454_v14 = vpop.permute.xlu0 %1084 }
 0x16b   : > { %4643 = vmatprep.subr.bf16.mxu0 %v4642_v18  ;;  %v896_v51 = vsel %vm895_vm2, %v893_v11, %v890_v63  ;;  %v1020_v40 = vand.u32 2147483647, %v6080_v17  ;;  %v963_v46 = vmul.f32 -0.5, %v6063_v22  ;;  %v1048_v31 = vsel %vm632_vm12, %v5863_v56, %v824_v13  ;;  %v6328_v56 = vld [vmem:[%s8806_s2 + $0x18] sm:$0xff] }
 0x16c   : > { %4508 = vmatmul.mubr.msk.f32.vlgmr.msra.gmra.mrb[16].mxu1 %vm1102_vm4, %v6238_v55  ;;  %v1056_v49 = vsel %vm640_vm15, %v5900_v39, %v896_v51  ;;  %v8971_v20 = vpack.c.bf16 %v6047_v27, %v5999_v6  ;;  %v944_v42 = vmul.f32 0.6931472, %v4954_v10  ;;  %v1035_v60 = vmul.f32 -0.5, %v6134_v32  ;;  %4506 = vmatmul.mubr.msk.f32.gmra.mrb[20].mxu0 %vm1102_vm4, %v6305_v52 }
 0x16d   : > { %1274 = vmatprep.mubr.f32.mxu1 %v8967_v48  ;;  %v4650_v61 = vpack.c.bf16 %v1056_v49, %v1048_v31  ;;  %v947_v1 = vmul.f32 %v6039_v37, %v946_v33  ;;  %1197 = vmatprep.mubr.f32.mxu0 %v8967_v48  ;;  %vm6330_vm3 = vcmp.lt.f32.partialorder %v948_v26, 0.0004427343  ;;  %v1019_v27 = vmul.f32 %v6080_v17, %v1018_v2  ;;  %v8980_v33 = vld [vmem:[#allocation18_spill] sm:$0xff] }
 0x16e   : > { %4645 = vmatpush1.bf16.msra.mxu0 %v8971_v20  ;;  %v4956_v53 = vpop.eup %4955  ;;  %v964_v62 = vadd.f32 1.0, %v963_v46  ;;  %v8976_v5 = vpack.c.bf16 %v8974_v36, %v8975_v19  ;;  %vm1021_vm5 = vcmp.lt.f32.partialorder %v1020_v40, 0.0004427343  ;;  %v966_v57 = vand.u32 2147483647, %v6063_v22 }
 0x16f   : > { %4651 = vmatprep.subr.bf16.mxu1 %v4650_v61  ;;  %v950_v6 = vsel %vm6330_vm3, %v947_v1, %v944_v42  ;;  %v1016_v37 = vmul.f32 0.6931472, %v4956_v53  ;;  %v1036_v30 = vadd.f32 1.0, %v1035_v60  ;;  %vm646_vm6 = vcmp.gt.f32.partialorder %v8977_v28, 20.0  ;;  %v6469_v42 = vpop.permute.xlu0 %1094 }
 0x170   : > { %4509 = vmatmul.mubr.msk.f32.gmra.mrb[18].mxu1 %vm1102_vm4, %v6270_v24  ;;  %vm654_vm7 = vcmp.gt.f32.partialorder %v8978_v50, 20.0  ;;  %4507 = vmatmul.mubr.msk.f32.gmra.mrb[22].mxu0 %vm1102_vm4, %v6328_v56  ;;  %v1038_v17 = vand.u32 2147483647, %v6134_v32  ;;  %v1062_v0 = vsel %vm646_vm6, %v8977_v28, %v950_v6  ;;  %v965_v54 = vmul.f32 %v6063_v22, %v964_v62 }
 0x171   : > { %4653 = vmatpush1.bf16.msra.mxu1 %v8976_v5  ;;  %1280 = vmatprep.mubr.f32.mxu1 %v8967_v48  ;;  %v1022_v45 = vsel %vm1021_vm5, %v1019_v27, %v1016_v37  ;;  %vm967_vm8 = vcmp.lt.f32.partialorder %v966_v57, 0.0004427343  ;;  %v1037_v25 = vmul.f32 %v6134_v32, %v1036_v30  ;;  %vm648_vm10 = vcmp.gt.f32.partialorder %v8979_v7, 20.0 }
 0x172   : > { %v4958_v12 = vpop.eup %4957  ;;  %v1070_v41 = vsel %vm654_vm7, %v8978_v50, %v1022_v45  ;;  %1357 = vmatprep.mubr.f32.mxu0 %v8967_v48  ;;  %vm1039_vm9 = vcmp.lt.f32.partialorder %v1038_v17, 0.0004427343  ;;  %vm656_vm11 = vcmp.gt.f32.partialorder %v8980_v33, 20.0 }
 0x173   : > { %v4960_v23 = vpop.eup %4959  ;;  %v4646_v21 = vpack.c.bf16 %v1070_v41, %v1062_v0  ;;  %v962_v9 = vmul.f32 0.6931472, %v4958_v12 }
 0x174   : > { %4510 = vmatmul.mubr.msk.f32.gmra.mrb[20].mxu1 %vm1102_vm4, %v6305_v52  ;;  %v1034_v38 = vmul.f32 0.6931472, %v4960_v23 }
 0x175   : > { %1286 = vmatprep.mubr.f32.mxu1 %v8967_v48  ;;  %4647 = vmatprep.subr.bf16.mxu0 %v4646_v21  ;;  %v968_v8 = vsel %vm967_vm8, %v965_v54, %v962_v9 }
 0x176   : > { %v1040_v15 = vsel %vm1039_vm9, %v1037_v25, %v1034_v38  ;;  %4649 = vmatpush1.bf16.msra.mxu0 %v4648_v47  ;;  %v1064_v22 = vsel %vm648_vm10, %v8979_v7, %v968_v8  ;;  %v8983_v47 = vld [vmem:[#allocation7_spill] sm:$0xff] }
 0x177   : > { %v1072_v32 = vsel %vm656_vm11, %v8980_v33, %v1040_v15  ;;  %4528 = vmatprep.subr.msk.mxu0 %vm252_vm0, %v8981_v59 }
 0x178   : > { %4511 = vmatmul.mubr.msk.f32.gmra.mrb[22].mxu1 %vm1102_vm4, %v6328_v56  ;;  %v4654_v35 = vpack.c.bf16 %v1072_v32, %v1064_v22 }
 0x179   : > { %1446 = vmatprep.mubr.f32.mxu1 %v8967_v48  ;;  %4512 = vmatmul.mubr.msk.f32.vlgmr.msra.gmra.mrb[24].mxu0 %vm1102_vm4, %v6238_v55 }
 0x17a   : > { %4655 = vmatprep.subr.bf16.mxu1 %v4654_v35  ;;  %1363 = vmatprep.mubr.f32.mxu0 %v8967_v48 }
 0x17b   : > { %4657 = vmatpush1.bf16.msra.mxu1 %v4656_v44  ;;  %4529 = vmatpush1.msk.msra.mxu0 %vm252_vm0, %v5345_v3  ;;  %v4524_v44 = vld [vmem:[%s8805_s1 + $0x20] sm:$0xff] }
 0x17c   : > { %4534 = vmatprep.subr.msk.mxu1 %vm252_vm0, %v8982_v16  ;;  %4540 = vmatprep.subr.msk.mxu0 %vm252_vm0, %v8983_v47 }
 0x17d   : > { %4513 = vmatmul.mubr.msk.f32.gmra.mrb[26].mxu0 %vm1102_vm4, %v6270_v24 }
 0x17e   : > { %4516 = vmatmul.mubr.msk.f32.vlgmr.msra.gmra.mrb[24].mxu1 %vm1102_vm4, %v6238_v55  ;;  %1369 = vmatprep.mubr.f32.mxu0 %v8967_v48  ;;  %v5347_v55 = vld [vmem:[%s5507_s13 + $0x10] sm:$0x77] }
 0x17f   : > { %1452 = vmatprep.mubr.f32.mxu1 %v8967_v48  ;;  %4535 = vmatpush1.msk.msra.mxu1 %vm252_vm0, %v5346_v43 }
 0x180   : > { %4546 = vmatprep.subr.msk.mxu1 %vm252_vm0, %v8984_v29 }
 0x181   : > { %4514 = vmatmul.mubr.msk.f32.gmra.mrb[28].mxu0 %vm1102_vm4, %v6305_v52 }
 0x182   : > { %4517 = vmatmul.mubr.msk.f32.gmra.mrb[26].mxu1 %vm1102_vm4, %v6270_v24  ;;  %1375 = vmatprep.mubr.f32.mxu0 %v8967_v48  ;;  %v5348_v24 = vld [vmem:[%s5507_s13 + $0x18] sm:$0x77]  ;;  %s5349_s13 = scalar_lea.vmem %s8760_s9, 1024 }
 0x183   : > { %1458 = vmatprep.mubr.f32.mxu1 %v8967_v48  ;;  %p5350_p11 = scmp.ne.s32.totalorder %s8760_s9, %s5349_s13  ;;  %p5357_p1 = scmp.lt.s32.totalorder %s5355_s22, %s5349_s13 }
 0x185   : > { %4515 = vmatmul.mubr.msk.f32.gmra.mrb[30].mxu0 %vm1102_vm4, %v6328_v56  ;;  %p5351_p12 = pnand %p5350_p11, %p5479_p5  ;;  %p5358_p2 = por %p5357_p1, %p5356_p0 }
 0x186   : > { %4518 = vmatmul.mubr.msk.f32.gmra.mrb[28].mxu1 %vm1102_vm4, %v6305_v52  ;;  %2005 = vmatprep.mubr.f32.mxu0 %v8967_v48  ;;  %v6460_v52 = vpop.permute.xlu1 %1089 }
 0x187   : > { %1464 = vmatprep.mubr.f32.mxu1 %v8967_v48  ;;  %p5352_p13 = pneg %p5351_p12 }
 0x189   : > { %4530 = vmatmul.mubr.msk.f32.vlgmr.msra.gmra.mrb[32].mxu0 %vm239_vm1, %v4524_v44  ;;  %p5359_p3 = pnand %p5358_p2, %p5352_p13 }
 0x18a   : > { %4519 = vmatmul.mubr.msk.f32.gmra.mrb[30].mxu1 %vm1102_vm4, %v6328_v56  ;;  %2011 = vmatprep.mubr.f32.mxu0 %v8967_v48  ;;  %v6497_v23 = vpop.permute.xlu1 %1099 }
 0x18b   : > { %2094 = vmatprep.mubr.f32.mxu1 %v8967_v48  ;;  %4541 = vmatpush1.msk.msra.mxu0 %vm252_vm0, %v5347_v55 }
 0x18d   : > { %4531 = vmatmul.mubr.msk.f32.gmra.mrb[34].mxu0 %vm239_vm1, %v4525_v4 }
 0x18e   : > { %4536 = vmatmul.mubr.msk.f32.vlgmr.msra.gmra.mrb[32].mxu1 %vm239_vm1, %v4524_v44  ;;  %2017 = vmatprep.mubr.f32.mxu0 %v8967_v48 }
 0x18f   : > { %2100 = vmatprep.mubr.f32.mxu1 %v8967_v48  ;;  %4547 = vmatpush1.msk.msra.mxu1 %vm252_vm0, %v5348_v24 }
 0x191   : > { %4532 = vmatmul.mubr.msk.f32.gmra.mrb[36].mxu0 %vm239_vm1, %v4526_v34 }
 0x192   : > { %4537 = vmatmul.mubr.msk.f32.gmra.mrb[34].mxu1 %vm239_vm1, %v4525_v4  ;;  %2023 = vmatprep.mubr.f32.mxu0 %v8967_v48 }
 0x193   : > { %2106 = vmatprep.mubr.f32.mxu1 %v8967_v48 }
 0x195   : > { %4533 = vmatmul.mubr.msk.f32.gmra.mrb[38].mxu0 %vm239_vm1, %v4527_v58 }
 0x196   : > { %4538 = vmatmul.mubr.msk.f32.gmra.mrb[36].mxu1 %vm239_vm1, %v4526_v34  ;;  %2183 = vmatprep.mubr.f32.mxu0 %v8967_v48 }
 0x197   : > { %2112 = vmatprep.mubr.f32.mxu1 %v8967_v48 }
 0x199   : > { %4542 = vmatmul.mubr.msk.f32.vlgmr.msra.gmra.mrb[40].mxu0 %vm239_vm1, %v4524_v44 }
 0x19a   : > { %4539 = vmatmul.mubr.msk.f32.gmra.mrb[38].mxu1 %vm239_vm1, %v4527_v58  ;;  %2189 = vmatprep.mubr.f32.mxu0 %v8967_v48 }
 0x19b   : > { %2272 = vmatprep.mubr.f32.mxu1 %v8967_v48 }
 0x19d   : > { %4543 = vmatmul.mubr.msk.f32.gmra.mrb[42].mxu0 %vm239_vm1, %v4525_v4 }
 0x19e   : > { %4548 = vmatmul.mubr.msk.f32.vlgmr.msra.gmra.mrb[40].mxu1 %vm239_vm1, %v4524_v44  ;;  %2195 = vmatprep.mubr.f32.mxu0 %v8967_v48 }
 0x19f   : > { %2278 = vmatprep.mubr.f32.mxu1 %v8967_v48 }
 0x1a1   : > { %4544 = vmatmul.mubr.msk.f32.gmra.mrb[44].mxu0 %vm239_vm1, %v4526_v34 }
 0x1a2   : > { %4549 = vmatmul.mubr.msk.f32.gmra.mrb[42].mxu1 %vm239_vm1, %v4525_v4  ;;  %2201 = vmatprep.mubr.f32.mxu0 %v8967_v48 }
 0x1a3   : > { %2284 = vmatprep.mubr.f32.mxu1 %v8967_v48 }
 0x1a5   : > { %4545 = vmatmul.mubr.msk.f32.gmra.mrb[46].mxu0 %vm239_vm1, %v4527_v58 }
 0x1a6   : > { %4550 = vmatmul.mubr.msk.f32.gmra.mrb[44].mxu1 %vm239_vm1, %v4526_v34  ;;  %2373 = vmatprep.mubr.f32.mxu0 %v8967_v48 }
 0x1a7   : > { %2290 = vmatprep.mubr.f32.mxu1 %v8967_v48 }
 0x1aa   : > { %4551 = vmatmul.mubr.msk.f32.gmra.mrb[46].mxu1 %vm239_vm1, %v4527_v58 }
 0x1ab   : > { %2462 = vmatprep.mubr.f32.mxu1 %v8967_v48 }
 0x237   : > { %v1181_v18 = vpop.f32.mrb[16].mxu0 }
 0x238   : > { %v6457_v63 = vadd.f32 %v1181_v18, %v6454_v14  ;;  %v1183_v11 = vpop.f32.mrb[17].mxu0 }
 0x239   : > { %v6476_v6 = vadd.f32 %v1183_v11, %v6454_v14 }
 0x23a   : > { %v1503_v13 = vmin.f32 %v6457_v63, 20.0  ;;  %vm1471_vm0 = vcmp.gt.f32.partialorder %v6457_v63, 20.0 }
 0x23b   : > { %v1187_v26 = vpop.f32.mrb[18].mxu0  ;;  %v1504_v17 = vmin.f32 %v6476_v6, 20.0 }
 0x23c   : > { %v1535_v10 = vmul.f32 1.442695, %v1503_v13  ;;  %v6463_v51 = vadd.f32 %v1187_v26, %v6460_v52  ;;  %v1189_v2 = vpop.f32.mrb[19].mxu0 }
 0x23d   : > { %v6486_v19 = vadd.f32 %v1189_v2, %v6460_v52  ;;  %v1537_v15 = vmul.f32 1.442695, %v1504_v17 }
 0x23e   : > { %4961 = vpow2.f32 %v1535_v10  ;;  %v1511_v40 = vmin.f32 %v6463_v51, 20.0  ;;  %vm1479_vm1 = vcmp.gt.f32.partialorder %v6463_v51, 20.0 }
 0x23f   : > { %v1270_v46 = vpop.f32.mrb[16].mxu1  ;;  %v1193_v60 = vpop.f32.mrb[20].mxu0  ;;  %v1512_v54 = vmin.f32 %v6486_v19, 20.0 }
 0x240   : > { %v6467_v31 = vadd.f32 %v1270_v46, %v6454_v14  ;;  %v1272_v49 = vpop.f32.mrb[17].mxu1  ;;  %v1551_v20 = vmul.f32 1.442695, %v1511_v40  ;;  %v6473_v1 = vadd.f32 %v1193_v60, %v6469_v42  ;;  %v1195_v53 = vpop.f32.mrb[21].mxu0 }
 0x241   : > { %v6483_v36 = vadd.f32 %v1272_v49, %v6454_v14  ;;  %v1553_v3 = vmul.f32 1.442695, %v1512_v54  ;;  %v6519_v55 = vadd.f32 %v1195_v53, %v6469_v42 }
 0x242   : > { %v1505_v61 = vmin.f32 %v6467_v31, 20.0  ;;  %4963 = vpow2.f32 %v1551_v20  ;;  %v1519_v62 = vmin.f32 %v6473_v1, 20.0  ;;  %vm1473_vm14 = vcmp.gt.f32.partialorder %v6467_v31, 20.0 }
 0x243   : > { %v1276_v56 = vpop.f32.mrb[18].mxu1  ;;  %v1199_v5 = vpop.f32.mrb[22].mxu0  ;;  %v1506_v9 = vmin.f32 %v6483_v36, 20.0  ;;  %8985 = vst [vmem:[#allocation14_spill] sm:$0xff] %v6519_v55  ;;  %v1520_v49 = vmin.f32 %v6519_v55, 20.0  ;;  %vm1487_vm5 = vcmp.gt.f32.partialorder %v6473_v1, 20.0 }
 0x244   : > { %v1539_v39 = vmul.f32 1.442695, %v1505_v61  ;;  %v6479_v37 = vadd.f32 %v1276_v56, %v6460_v52  ;;  %v1278_v27 = vpop.f32.mrb[19].mxu1  ;;  %v1567_v30 = vmul.f32 1.442695, %v1519_v62  ;;  %v6489_v28 = vpop.f32.mrb[23].mxu0  ;;  %v6507_v8 = vadd.f32 %v1199_v5, %v6497_v23 }
 0x245   : > { %v6503_v38 = vadd.f32 %v1278_v27, %v6460_v52  ;;  %v1541_v59 = vmul.f32 1.442695, %v1506_v9 }
 0x246   : > { %4965 = vpow2.f32 %v1539_v39  ;;  %v1513_v57 = vmin.f32 %v6479_v37, 20.0  ;;  %v1527_v43 = vmin.f32 %v6507_v8, 20.0  ;;  %vm1481_vm15 = vcmp.gt.f32.partialorder %v6479_v37, 20.0 }
 0x247   : > { %v1282_v50 = vpop.f32.mrb[20].mxu1  ;;  %4967 = vpow2.f32 %v1567_v30  ;;  %v1514_v47 = vmin.f32 %v6503_v38, 20.0  ;;  %vm1495_vm7 = vcmp.gt.f32.partialorder %v6507_v8, 20.0 }
 0x248   : > { %v6491_v45 = vpop.eup %4961  ;;  %v1555_v12 = vmul.f32 1.442695, %v1513_v57  ;;  %v6495_v0 = vadd.f32 %v1282_v50, %v6469_v42  ;;  %v1284_v41 = vpop.f32.mrb[21].mxu1  ;;  %v1583_v34 = vmul.f32 1.442695, %v1527_v43 }
 0x249   : > { %v1599_v21 = vadd.f32 1.0, %v6491_v45  ;;  %v1602_v4 = vmul.f32 -0.5, %v6491_v45  ;;  %v6527_v13 = vadd.f32 %v1284_v41, %v6469_v42  ;;  %v1557_v10 = vmul.f32 1.442695, %v1514_v47 }
 0x24a   : > { %4969 = vpow2.f32 %v1555_v12  ;;  %v1521_v25 = vmin.f32 %v6495_v0, 20.0  ;;  %v1605_v53 = vand.u32 2147483647, %v6491_v45  ;;  %vm1489_vm8 = vcmp.gt.f32.partialorder %v6495_v0, 20.0 }
 0x24b   : > { %4971 = vlog2.f32 %v1599_v21  ;;  %v1288_v7 = vpop.f32.mrb[22].mxu1  ;;  %8986 = vst [vmem:[#allocation9_spill] sm:$0xff] %v6527_v13  ;;  %v1603_v61 = vadd.f32 1.0, %v1602_v4  ;;  %v1522_v57 = vmin.f32 %v6527_v13, 20.0  ;;  %v1569_v21 = vmul.f32 1.442695, %v1520_v49 }
 0x24c   : > { %v4964_v33 = vpop.eup %4963  ;;  %v1571_v22 = vmul.f32 1.442695, %v1521_v25  ;;  %v6509_v32 = vpop.f32.mrb[23].mxu1  ;;  %v6514_v29 = vadd.f32 %v1288_v7, %v6497_v23  ;;  %vm6558_vm12 = vcmp.lt.f32.partialorder %v1605_v53, 0.0004427343  ;;  %v6584_v49 = vadd.f32 %v6489_v28, %v6497_v23 }
 0x24d   : > { %v1671_v35 = vadd.f32 1.0, %v4964_v33  ;;  %v1359_v16 = vpop.f32.mrb[24].mxu0  ;;  %v1674_v11 = vmul.f32 -0.5, %v4964_v33  ;;  %v1677_v62 = vand.u32 2147483647, %v4964_v33  ;;  %v1604_v7 = vmul.f32 %v6491_v45, %v1603_v61 }
 0x24e   : > { %4973 = vpow2.f32 %v1571_v22  ;;  %v6516_v44 = vpop.f32.mrb[25].mxu0  ;;  %v1529_v58 = vmin.f32 %v6514_v29, 20.0  ;;  %v6563_v22 = vadd.f32 %v1359_v16, %v6454_v14  ;;  %v1573_v43 = vmul.f32 1.442695, %v1522_v57  ;;  %8991 = vst [vmem:[#allocation10_spill] sm:$0xff] %v6584_v49 }
 0x24f   : > { %4975 = vlog2.f32 %v1671_v35  ;;  %v1675_v27 = vadd.f32 1.0, %v1674_v11  ;;  %vm6565_vm13 = vcmp.lt.f32.partialorder %v1677_v62, 0.0004427343  ;;  %vm1497_vm11 = vcmp.gt.f32.partialorder %v6514_v29, 20.0 }
 0x250   : > { %v6521_v24 = vpop.eup %4965  ;;  %4977 = vpow2.f32 %v1537_v15  ;;  %v6529_v26 = vpop.f32.mrb[26].mxu0  ;;  %v1587_v56 = vmul.f32 1.442695, %v1529_v58 }
 0x251   : > { %v1617_v18 = vadd.f32 1.0, %v6521_v24  ;;  %4979 = vpow2.f32 %v1553_v3  ;;  %v1448_v2 = vpop.f32.mrb[24].mxu1  ;;  %v6531_v40 = vpop.f32.mrb[27].mxu0  ;;  %v1620_v41 = vmul.f32 -0.5, %v6521_v24  ;;  %v1676_v35 = vmul.f32 %v4964_v33, %v1675_v27 }
 0x252   : > { %4981 = vpow2.f32 %v1541_v59  ;;  %v6533_v46 = vpop.eup %4967  ;;  %v6536_v20 = vpop.f32.mrb[25].mxu1  ;;  %v1507_v27 = vmin.f32 %v6563_v22, 20.0  ;;  %v6597_v62 = vadd.f32 %v1448_v2, %v6454_v14 }
 0x253   : > { %4983 = vlog2.f32 %v1617_v18  ;;  %v1743_v17 = vadd.f32 1.0, %v6533_v46  ;;  %v1621_v11 = vadd.f32 1.0, %v1620_v41  ;;  %v1746_v15 = vmul.f32 -0.5, %v6533_v46 }
 0x254   : > { %v6538_v60 = vpop.eup %4969  ;;  %4985 = vpow2.f32 %v1583_v34  ;;  %v6543_v30 = vpop.f32.mrb[28].mxu0 }
 0x255   : > { %v4972_v39 = vpop.eup %4971  ;;  %v1689_v5 = vadd.f32 1.0, %v6538_v60  ;;  %4987 = vpow2.f32 %v1557_v10  ;;  %v6547_v12 = vpop.f32.mrb[26].mxu1  ;;  %v1692_v16 = vmul.f32 -0.5, %v6538_v60  ;;  %v1623_v10 = vand.u32 2147483647, %v6521_v24 }
 0x256   : > { %v1601_v50 = vmul.f32 0.6931472, %v4972_v39  ;;  %v6551_v9 = vpop.f32.mrb[27].mxu1  ;;  %v6553_v54 = vpop.f32.mrb[29].mxu0  ;;  %v1747_v2 = vadd.f32 1.0, %v1746_v15 }
 0x257   : > { %4989 = vlog2.f32 %v1689_v5  ;;  %v1693_v41 = vadd.f32 1.0, %v1692_v16  ;;  %vm6625_vm2 = vcmp.lt.f32.partialorder %v1623_v10, 0.0004427343  ;;  %v1749_v16 = vand.u32 2147483647, %v6533_v46 }
 0x258   : > { %v6555_v25 = vpop.eup %4973  ;;  %4991 = vpow2.f32 %v1587_v56  ;;  %v6570_v4 = vpop.f32.mrb[30].mxu0  ;;  %v1607_v34 = vsel %vm6558_vm12, %v1604_v7, %v1601_v50 }
 0x259   : > { %v4976_v59 = vpop.eup %4975  ;;  %v1761_v47 = vadd.f32 1.0, %v6555_v25  ;;  %4993 = vlog2.f32 %v1743_v17  ;;  %v6577_v18 = vpop.f32.mrb[28].mxu1  ;;  %v6602_v28 = vsel %vm1471_vm0, %v6457_v63, %v1607_v34  ;;  %v1695_v63 = vand.u32 2147483647, %v6538_v60 }
 0x25a   : > { %v6572_v45 = vpop.eup %4977  ;;  %v1673_v58 = vmul.f32 0.6931472, %v4976_v59  ;;  %4995 = vpow2.f32 %v1569_v21  ;;  %v6586_v61 = vpop.f32.mrb[29].mxu1  ;;  %8992 = vst [vmem:[#allocation11_spill] sm:$0xff] %v6602_v28  ;;  %v1543_v21 = vmul.f32 1.442695, %v1507_v27  ;;  %v6634_v27 = vadd.f32 %v6509_v32, %v6497_v23 }
 0x25b   : > { %v6579_v33 = vpop.eup %4979  ;;  %v6588_v53 = vpop.f32.mrb[31].mxu0  ;;  %4997 = vlog2.f32 %v1761_v47  ;;  %v1528_v59 = vmin.f32 %v6584_v49, 20.0  ;;  %v1622_v47 = vmul.f32 %v6521_v24, %v1621_v11  ;;  %v1509_v34 = vmin.f32 %v6597_v62, 20.0 }
 0x25c   : > { %v6590_v56 = vpop.eup %4981  ;;  %v1679_v39 = vsel %vm6565_vm13, %v1676_v35, %v1673_v58  ;;  %4999 = vpow2.f32 %v1573_v43  ;;  %v1694_v10 = vmul.f32 %v6538_v60, %v1693_v41  ;;  %vm1696_vm3 = vcmp.lt.f32.partialorder %v1695_v63, 0.0004427343 }
 0x25d   : > { %v4984_v5 = vpop.eup %4983  ;;  %v6607_v57 = vsel %vm1479_vm1, %v6463_v51, %v1679_v39  ;;  %v6614_v7 = vpop.f32.mrb[30].mxu1  ;;  %5001 = vpow2.f32 %v1543_v21  ;;  %v1764_v39 = vmul.f32 -0.5, %v6555_v25  ;;  %v1547_v21 = vmul.f32 1.442695, %v1509_v34 }
 0x25e   : > { %v6610_v50 = vpop.eup %4985  ;;  %v1619_v17 = vmul.f32 0.6931472, %v4984_v5  ;;  %v6620_v35 = vpop.f32.mrb[31].mxu1  ;;  %v1585_v13 = vmul.f32 1.442695, %v1528_v59  ;;  %vm1475_vm1 = vcmp.gt.f32.partialorder %v6563_v22, 20.0 }
 0x25f   : > { %v1815_v51 = vadd.f32 1.0, %v6610_v50  ;;  %v6622_v3 = vpop.eup %4987  ;;  %v1767_v55 = vand.u32 2147483647, %v6555_v25  ;;  %v1818_v32 = vmul.f32 -0.5, %v6610_v50  ;;  %v1765_v41 = vadd.f32 1.0, %v1764_v39 }
 0x260   : > { %v1625_v24 = vsel %vm6625_vm2, %v1622_v47, %v1619_v17  ;;  %vm6659_vm6 = vcmp.lt.f32.partialorder %v1749_v16, 0.0004427343  ;;  %v1530_v47 = vmin.f32 %v6634_v27, 20.0  ;;  %vm1477_vm13 = vcmp.gt.f32.partialorder %v6597_v62, 20.0 }
 0x261   : > { %v4990_v58 = vpop.eup %4989  ;;  %5003 = vlog2.f32 %v1815_v51  ;;  %v6649_v17 = vsel %vm1473_vm14, %v6467_v31, %v1625_v24  ;;  %v1821_v31 = vand.u32 2147483647, %v6610_v50  ;;  %vm6675_vm9 = vcmp.lt.f32.partialorder %v1767_v55, 0.0004427343 }
 0x262   : > { %v6636_v5 = vpop.eup %4991  ;;  %v1691_v11 = vmul.f32 0.6931472, %v4990_v58  ;;  %5005 = vpow2.f32 %v1547_v21  ;;  %v6672_v58 = vadd.f32 %v6529_v26, %v6460_v52  ;;  %v1819_v39 = vadd.f32 1.0, %v1818_v32 }
 0x263   : > { %v1833_v48 = vadd.f32 1.0, %v6636_v5  ;;  %v4994_v49 = vpop.eup %4993  ;;  %v1836_v34 = vmul.f32 -0.5, %v6636_v5  ;;  %v6681_v24 = vadd.f32 %v6547_v12, %v6460_v52  ;;  %v6690_v26 = vadd.f32 %v6536_v20, %v6454_v14 }
 0x264   : > { %v1697_v51 = vsel %vm1696_vm3, %v1694_v10, %v1691_v11  ;;  %v6644_v28 = vpop.eup %4995  ;;  %v1745_v43 = vmul.f32 0.6931472, %v4994_v49  ;;  %vm6694_vm10 = vcmp.lt.f32.partialorder %v1821_v31, 0.0004427343  ;;  %v1515_v12 = vmin.f32 %v6672_v58, 20.0 }
 0x265   : > { %v6654_v60 = vsel %vm1481_vm15, %v6479_v37, %v1697_v51  ;;  %5007 = vlog2.f32 %v1833_v48  ;;  %v4998_v63 = vpop.eup %4997  ;;  %v1748_v48 = vmul.f32 %v6533_v46, %v1747_v2  ;;  %v1766_v46 = vmul.f32 %v6555_v25, %v1765_v41 }
 0x266   : > { %v6666_v37 = vpop.eup %4999  ;;  %5009 = vpow2.f32 %v1585_v13  ;;  %v1763_v49 = vmul.f32 0.6931472, %v4998_v63  ;;  %v6686_v2 = vadd.f32 %v6516_v44, %v6454_v14  ;;  %v1589_v13 = vmul.f32 1.442695, %v1530_v47 }
 0x267   : > { %v6692_v55 = vpop.eup %5001  ;;  %v1517_v25 = vmin.f32 %v6681_v24, 20.0  ;;  %v1751_v44 = vsel %vm6659_vm6, %v1748_v48, %v1745_v43  ;;  %v1837_v21 = vadd.f32 1.0, %v1836_v34  ;;  %v1839_v14 = vand.u32 2147483647, %v6636_v5 }
 0x268   : > { %v1635_v20 = vadd.f32 1.0, %v6692_v55  ;;  %v1820_v32 = vmul.f32 %v6610_v50, %v1819_v39  ;;  %v1559_v41 = vmul.f32 1.442695, %v1515_v12  ;;  %v1769_v31 = vsel %vm6675_vm9, %v1766_v46, %v1763_v49 }
 0x269   : > { %v1563_v63 = vmul.f32 1.442695, %v1517_v25  ;;  %v1508_v47 = vmin.f32 %v6686_v2, 20.0  ;;  %v1510_v15 = vmin.f32 %v6690_v26, 20.0  ;;  %v6716_v48 = vadd.f32 %v6531_v40, %v6460_v52 }
 0x26a   : > { %5011 = vlog2.f32 %v1635_v20  ;;  %v6720_v50 = vadd.f32 %v6543_v30, %v6469_v42  ;;  %v6725_v16 = vsel %vm1487_vm5, %v6473_v1, %v1751_v44  ;;  %v1838_v49 = vmul.f32 %v6636_v5, %v1837_v21 }
 0x26b   : > { %v5004_v10 = vpop.eup %5003  ;;  %5013 = vpow2.f32 %v1559_v41  ;;  %v6738_v11 = vadd.f32 %v6551_v9, %v6460_v52  ;;  %v6743_v1 = vsel %vm1489_vm8, %v6495_v0, %v1769_v31  ;;  %vm1840_vm0 = vcmp.lt.f32.partialorder %v1839_v14, 0.0004427343 }
 0x26c   : > { %v1817_v51 = vmul.f32 0.6931472, %v5004_v10  ;;  %v6710_v59 = vpop.eup %5005  ;;  %5015 = vpow2.f32 %v1563_v63  ;;  %v1549_v25 = vmul.f32 1.442695, %v1510_v15  ;;  %v1516_v10 = vmin.f32 %v6716_v48, 20.0 }
 0x26d   : > { %v1653_v40 = vadd.f32 1.0, %v6710_v59  ;;  %5017 = vpow2.f32 %v1589_v13  ;;  %v1523_v44 = vmin.f32 %v6720_v50, 20.0  ;;  %v1638_v9 = vmul.f32 -0.5, %v6692_v55 }
 0x26e   : > { %v1823_v43 = vsel %vm6694_vm10, %v1820_v32, %v1817_v51  ;;  %v6757_v0 = vadd.f32 %v6577_v18, %v6469_v42  ;;  %v1518_v15 = vmin.f32 %v6738_v11, 20.0  ;;  %v6764_v14 = vadd.f32 %v6553_v54, %v6469_v42 }
 0x26f   : > { %v5008_v34 = vpop.eup %5007  ;;  %v6730_v39 = vsel %vm1495_vm7, %v6507_v8, %v1823_v43  ;;  %v1545_v8 = vmul.f32 1.442695, %v1508_v47  ;;  %5019 = vlog2.f32 %v1653_v40  ;;  %v1575_v21 = vmul.f32 1.442695, %v1523_v44 }
 0x270   : > { %v1835_v30 = vmul.f32 0.6931472, %v5008_v34  ;;  %v6745_v5 = vpop.eup %5009  ;;  %9001 = vst [vmem:[#allocation13_spill] sm:$0xff] %v6764_v14  ;;  %v6769_v20 = vadd.f32 %v6570_v4, %v6497_v23  ;;  %v1561_v51 = vmul.f32 1.442695, %v1516_v10  ;;  %v1524_v18 = vmin.f32 %v6764_v14, 20.0 }
 0x271   : > { %5021 = vpow2.f32 %v1545_v8  ;;  %v1641_v41 = vand.u32 2147483647, %v6692_v55  ;;  %v1639_v54 = vadd.f32 1.0, %v1638_v9  ;;  %v1565_v47 = vmul.f32 1.442695, %v1518_v15 }
 0x272   : > { %v1841_v12 = vsel %vm1840_vm0, %v1838_v49, %v1835_v30  ;;  %5023 = vpow2.f32 %v1575_v21  ;;  %v6777_v43 = vadd.f32 %v6586_v61, %v6469_v42  ;;  %v1531_v4 = vmin.f32 %v6769_v20, 20.0 }
 0x273   : > { %v6752_v52 = vsel %vm1497_vm11, %v6514_v29, %v1841_v12  ;;  %v1525_v29 = vmin.f32 %v6757_v0, 20.0  ;;  %5025 = vpow2.f32 %v1549_v25  ;;  %v1577_v49 = vmul.f32 1.442695, %v1524_v18 }
 0x274   : > { %v5012_v32 = vpop.eup %5011  ;;  %9002 = vst [vmem:[#allocation12_spill] sm:$0xff] %v6777_v43  ;;  %v6783_v40 = vadd.f32 %v6614_v7, %v6497_v23  ;;  %v1656_v8 = vmul.f32 -0.5, %v6710_v59  ;;  %vm6791_vm12 = vcmp.lt.f32.partialorder %v1641_v41, 0.0004427343  ;;  %v1591_v25 = vmul.f32 1.442695, %v1531_v4 }
 0x275   : > { %v1579_v63 = vmul.f32 1.442695, %v1525_v29  ;;  %v6773_v31 = vpop.eup %5013  ;;  %v1637_v42 = vmul.f32 0.6931472, %v5012_v32  ;;  %v1640_v10 = vmul.f32 %v6692_v55, %v1639_v54  ;;  %v1526_v44 = vmin.f32 %v6777_v43, 20.0 }
 0x276   : > { %v1707_v34 = vadd.f32 1.0, %v6773_v31  ;;  %v6785_v30 = vpop.eup %5015  ;;  %v1710_v15 = vmul.f32 -0.5, %v6773_v31  ;;  %v1533_v21 = vmin.f32 %v6783_v40, 20.0  ;;  %v6802_v29 = vadd.f32 %v6588_v53, %v6497_v23 }
 0x277   : > { %5027 = vpow2.f32 %v1579_v63  ;;  %v6789_v12 = vpop.eup %5017  ;;  %v1725_v7 = vadd.f32 1.0, %v6785_v30  ;;  %v1659_v55 = vand.u32 2147483647, %v6710_v59  ;;  %v1713_v18 = vand.u32 2147483647, %v6773_v31 }
 0x278   : > { %5029 = vpow2.f32 %v1561_v51  ;;  %9005 = vst [vmem:[#allocation20_spill] sm:$0xff] %v6802_v29  ;;  %v1657_v51 = vadd.f32 1.0, %v1656_v8  ;;  %v1643_v41 = vsel %vm6791_vm12, %v1640_v10, %v1637_v42  ;;  %v1728_v63 = vmul.f32 -0.5, %v6785_v30 }
 0x279   : > { %5031 = vlog2.f32 %v1707_v34  ;;  %v5020_v9 = vpop.eup %5019  ;;  %v1595_v54 = vmul.f32 1.442695, %v1533_v21  ;;  %vm1483_vm14 = vcmp.gt.f32.partialorder %v6672_v58, 20.0  ;;  %v1581_v4 = vmul.f32 1.442695, %v1526_v44 }
 0x27a   : > { %5033 = vpow2.f32 %v1565_v47  ;;  %v1655_v53 = vmul.f32 0.6931472, %v5020_v9  ;;  %v1532_v34 = vmin.f32 %v6802_v29, 20.0  ;;  %v1731_v61 = vand.u32 2147483647, %v6785_v30 }
 0x27b   : > { %5035 = vpow2.f32 %v1577_v49  ;;  %v6807_v32 = vpop.eup %5021  ;;  %v1608_v49 = vadd.f32 1.0, %v6572_v45  ;;  %vm6822_vm15 = vcmp.lt.f32.partialorder %v1659_v55, 0.0004427343  ;;  %v6828_v44 = vadd.f32 %v6620_v35, %v6497_v23 }
 0x27c   : > { %5037 = vlog2.f32 %v1725_v7  ;;  %v6812_v47 = vpop.eup %5023  ;;  %v1711_v7 = vadd.f32 1.0, %v1710_v15  ;;  %v6835_v15 = vsel %vm1475_vm1, %v6563_v22, %v1643_v41  ;;  %vm1485_vm2 = vcmp.gt.f32.partialorder %v6681_v24, 20.0 }
 0x27d   : > { %5039 = vpow2.f32 %v1591_v25  ;;  %v6817_v8 = vpop.eup %5025  ;;  %v1779_v42 = vadd.f32 1.0, %v6812_v47  ;;  %v1658_v25 = vmul.f32 %v6710_v59, %v1657_v51  ;;  %9008 = vst [vmem:[#allocation19_spill] sm:$0xff] %v6828_v44  ;;  %v1729_v21 = vadd.f32 1.0, %v1728_v63 }
 0x27e   : > { %5041 = vpow2.f32 %v1595_v54  ;;  %v1782_v59 = vmul.f32 -0.5, %v6812_v47  ;;  %vm6843_vm3 = vcmp.lt.f32.partialorder %v1713_v18, 0.0004427343  ;;  %v1593_v54 = vmul.f32 1.442695, %v1532_v34 }
 0x27f   : > { %5043 = vlog2.f32 %v1608_v49  ;;  %v1661_v23 = vsel %vm6822_vm15, %v1658_v25, %v1655_v53  ;;  %v1712_v41 = vmul.f32 %v6773_v31, %v1711_v7  ;;  %vm6849_vm5 = vcmp.lt.f32.partialorder %v1731_v61, 0.0004427343 }
 0x280   : > { %5045 = vlog2.f32 %v1779_v42  ;;  %v1785_v49 = vand.u32 2147483647, %v6812_v47  ;;  %v1534_v18 = vmin.f32 %v6828_v44, 20.0  ;;  %v1611_v25 = vmul.f32 -0.5, %v6572_v45 }
 0x281   : > { %v6830_v9 = vpop.eup %5027  ;;  %5047 = vpow2.f32 %v1581_v4  ;;  %v6863_v31 = vsel %vm1477_vm13, %v6597_v62, %v1661_v23  ;;  %v1730_v34 = vmul.f32 %v6785_v30, %v1729_v21  ;;  %v1783_v7 = vadd.f32 1.0, %v1782_v59 }
 0x282   : > { %v6839_v51 = vpop.eup %5029  ;;  %v1797_v55 = vadd.f32 1.0, %v6830_v9  ;;  %9013 = vst [vmem:[#allocation15_spill] sm:$0xff] %v6863_v31  ;;  %v1680_v4 = vadd.f32 1.0, %v6579_v33  ;;  %v1803_v13 = vand.u32 2147483647, %v6830_v9  ;;  %v1626_v21 = vadd.f32 1.0, %v6590_v56 }
 0x283   : > { %v5032_v22 = vpop.eup %5031  ;;  %vm6876_vm6 = vcmp.lt.f32.partialorder %v1785_v49, 0.0004427343  ;;  %vm1491_vm7 = vcmp.gt.f32.partialorder %v6720_v50, 20.0  ;;  %vm1472_vm8 = vcmp.gt.f32.partialorder %v6476_v6, 20.0  ;;  %vm1480_vm9 = vcmp.gt.f32.partialorder %v6486_v19, 20.0 }
 0x284   : > { %v6854_v42 = vpop.eup %5033  ;;  %v1709_v53 = vmul.f32 0.6931472, %v5032_v22  ;;  %5049 = vlog2.f32 %v1797_v55  ;;  %v1800_v22 = vmul.f32 -0.5, %v6830_v9  ;;  %vm6901_vm10 = vcmp.lt.f32.partialorder %v1803_v13, 0.0004427343 }
 0x285   : > { %v6858_v10 = vpop.eup %5035  ;;  %5051 = vpow2.f32 %v1593_v54  ;;  %v1612_v54 = vadd.f32 1.0, %v1611_v25  ;;  %vm1493_vm11 = vcmp.gt.f32.partialorder %v6757_v0, 20.0  ;;  %vm1499_vm0 = vcmp.gt.f32.partialorder %v6769_v20, 20.0 }
 0x286   : > { %v5038_v61 = vpop.eup %5037  ;;  %v1715_v55 = vsel %vm6843_vm3, %v1712_v41, %v1709_v53  ;;  %5053 = vlog2.f32 %v1680_v4  ;;  %v1597_v41 = vmul.f32 1.442695, %v1534_v18  ;;  %v1683_v18 = vmul.f32 -0.5, %v6579_v33 }
 0x287   : > { %v5040_v46 = vpop.eup %5039  ;;  %v6874_v62 = vsel %vm1483_vm14, %v6672_v58, %v1715_v55  ;;  %v1727_v23 = vmul.f32 0.6931472, %v5038_v61  ;;  %v1614_v61 = vand.u32 2147483647, %v6572_v45  ;;  %5055 = vlog2.f32 %v1626_v21 }
 0x288   : > { %v1851_v35 = vadd.f32 1.0, %v5040_v46  ;;  %v5042_v53 = vpop.eup %5041  ;;  %v1854_v58 = vmul.f32 -0.5, %v5040_v46  ;;  %v1801_v55 = vadd.f32 1.0, %v1800_v22  ;;  %v1686_v21 = vand.u32 2147483647, %v6579_v33 }
 0x289   : > { %v1733_v44 = vsel %vm6849_vm5, %v1730_v34, %v1727_v23  ;;  %v5044_v49 = vpop.eup %5043  ;;  %v1869_v34 = vadd.f32 1.0, %v5042_v53  ;;  %v1872_v23 = vmul.f32 -0.5, %v5042_v53  ;;  %v1857_v59 = vand.u32 2147483647, %v5040_v46 }
 0x28a   : > { %v6889_v4 = vsel %vm1485_vm2, %v6681_v24, %v1733_v44  ;;  %5057 = vlog2.f32 %v1851_v35  ;;  %v5046_v25 = vpop.eup %5045  ;;  %v1784_v44 = vmul.f32 %v6812_v47, %v1783_v7  ;;  %v1855_v43 = vadd.f32 1.0, %v1854_v58 }
 0x28b   : > { %9016 = vst [vmem:[#allocation17_spill] sm:$0xff] %v6889_v4  ;;  %v1781_v24 = vmul.f32 0.6931472, %v5046_v25  ;;  %5059 = vpow2.f32 %v1597_v41  ;;  %v6899_v22 = vpop.eup %5047  ;;  %v1610_v63 = vmul.f32 0.6931472, %v5044_v49  ;;  %v1613_v31 = vmul.f32 %v6572_v45, %v1612_v54 }
 0x28c   : > { %5061 = vlog2.f32 %v1869_v34  ;;  %v1875_v14 = vand.u32 2147483647, %v5042_v53  ;;  %v1684_v4 = vadd.f32 1.0, %v1683_v18  ;;  %v1698_v25 = vadd.f32 1.0, %v6622_v3 }
 0x28d   : > { %v1802_v47 = vmul.f32 %v6830_v9, %v1801_v55  ;;  %v1873_v13 = vadd.f32 1.0, %v1872_v23  ;;  %vm6910_vm1 = vcmp.lt.f32.partialorder %v1614_v61, 0.0004427343  ;;  %vm6914_vm12 = vcmp.lt.f32.partialorder %v1686_v21, 0.0004427343 }
 0x28e   : > { %v5050_v29 = vpop.eup %5049  ;;  %v1787_v45 = vsel %vm6876_vm6, %v1784_v44, %v1781_v24  ;;  %vm6922_vm13 = vcmp.lt.f32.partialorder %v1857_v59, 0.0004427343  ;;  %v1629_v9 = vmul.f32 -0.5, %v6590_v56  ;;  %5063 = vlog2.f32 %v1698_v25 }
 0x28f   : > { %v6918_v58 = vpop.eup %5051  ;;  %v1799_v49 = vmul.f32 0.6931472, %v5050_v29  ;;  %v1856_v55 = vmul.f32 %v5040_v46, %v1855_v43  ;;  %v1616_v18 = vsel %vm6910_vm1, %v1613_v31, %v1610_v63  ;;  %v1752_v34 = vadd.f32 1.0, %v6644_v28 }
 0x290   : > { %v5054_v61 = vpop.eup %5053  ;;  %vm1501_vm14 = vcmp.gt.f32.partialorder %v6783_v40, 20.0  ;;  %vm6931_vm15 = vcmp.lt.f32.partialorder %v1875_v14, 0.0004427343  ;;  %v1685_v23 = vmul.f32 %v6579_v33, %v1684_v4  ;;  %v1632_v21 = vand.u32 2147483647, %v6590_v56 }
 0x291   : > { %v1682_v59 = vmul.f32 0.6931472, %v5054_v61  ;;  %v5056_v24 = vpop.eup %5055  ;;  %v6940_v46 = vsel %vm1491_vm7, %v6720_v50, %v1787_v45  ;;  %v1874_v43 = vmul.f32 %v5042_v53, %v1873_v13  ;;  %v1701_v29 = vmul.f32 -0.5, %v6622_v3 }
 0x292   : > { %5065 = vlog2.f32 %v1752_v34  ;;  %v1888_v33 = vsel %vm1472_vm8, %v6476_v6, %v1616_v18  ;;  %v1630_v4 = vadd.f32 1.0, %v1629_v9  ;;  %v1824_v63 = vadd.f32 1.0, %v6745_v5 }
 0x293   : > { %v1688_v14 = vsel %vm6914_vm12, %v1685_v23, %v1682_v59  ;;  %vm1474_vm2 = vcmp.gt.f32.partialorder %v6483_v36, 20.0  ;;  %vm1482_vm3 = vcmp.gt.f32.partialorder %v6503_v38, 20.0  ;;  %v1805_v50 = vsel %vm6901_vm10, %v1802_v47, %v1799_v49 }
 0x294   : > { %v5058_v31 = vpop.eup %5057  ;;  %v1896_v44 = vsel %vm1480_vm9, %v6486_v19, %v1688_v14  ;;  %v1704_v25 = vand.u32 2147483647, %v6622_v3  ;;  %vm6959_vm5 = vcmp.lt.f32.partialorder %v1632_v21, 0.0004427343  ;;  %v1755_v41 = vmul.f32 -0.5, %v6644_v28  ;;  %v9033_v14 = vld [vmem:[#allocation14_spill] sm:$0xff] }
 0x295   : > { %v1853_v53 = vmul.f32 0.6931472, %v5058_v31  ;;  %v6957_v13 = vpop.eup %5059  ;;  %v4658_v6 = vpack.c.bf16 %v1896_v44, %v1888_v33  ;;  %5067 = vlog2.f32 %v1824_v63  ;;  %v1628_v47 = vmul.f32 0.6931472, %v5056_v24 }
 0x296   : > { %v5062_v45 = vpop.eup %5061  ;;  %v1702_v9 = vadd.f32 1.0, %v1701_v29  ;;  %v1770_v19 = vadd.f32 1.0, %v6666_v37  ;;  %v6970_v61 = vsel %vm1493_vm11, %v6757_v0, %v1805_v50  ;;  %v1827_v34 = vmul.f32 -0.5, %v6745_v5  ;;  %v9031_v0 = vld [vmem:[#allocation11_spill] sm:$0xff] }
 0x297   : > { %v1859_v35 = vsel %vm6922_vm13, %v1856_v55, %v1853_v53  ;;  %v1871_v18 = vmul.f32 0.6931472, %v5062_v45  ;;  %4659 = vmatprep.subr.bf16.mxu0 %v4658_v6  ;;  %v1631_v55 = vmul.f32 %v6590_v56, %v1630_v4  ;;  %vm6981_vm6 = vcmp.lt.f32.partialorder %v1704_v25, 0.0004427343  ;;  %v9034_v56 = vld [vmem:[#allocation10_spill] sm:$0xff] }
 0x298   : > { %v6975_v49 = vsel %vm1499_vm0, %v6769_v20, %v1859_v35  ;;  %v9032_v23 = vpack.c.bf16 %v6607_v57, %v9031_v0  ;;  %5069 = vlog2.f32 %v1770_v19  ;;  %v5064_v20 = vpop.eup %5063  ;;  %v1756_v24 = vadd.f32 1.0, %v1755_v41 }
 0x299   : > { %v4680_v54 = vpack.c.bf16 %v6975_v49, %v6940_v46  ;;  %v1877_v21 = vsel %vm6931_vm15, %v1874_v43, %v1871_v18  ;;  %v1758_v29 = vand.u32 2147483647, %v6644_v28  ;;  %v1842_v31 = vadd.f32 1.0, %v6789_v12  ;;  %v7226_v46 = vpop.permute.xlu0 %2672 }
 0x29a   : > { %4661 = vmatpush1.bf16.msra.mxu0 %v9032_v23  ;;  %vm1488_vm7 = vcmp.gt.f32.partialorder %v9033_v14, 20.0  ;;  %vm1496_vm8 = vcmp.gt.f32.partialorder %v9034_v56, 20.0  ;;  %v6997_v33 = vsel %vm1501_vm14, %v6783_v40, %v1877_v21  ;;  %v1634_v57 = vsel %vm6959_vm5, %v1631_v55, %v1628_v47  ;;  %v9039_v55 = vld [vmem:[#allocation9_spill] sm:$0xff] }
 0x29b   : > { %v1700_v4 = vmul.f32 0.6931472, %v5064_v20  ;;  %v1703_v30 = vmul.f32 %v6622_v3, %v1702_v9  ;;  %v4688_v43 = vpack.c.bf16 %v6997_v33, %v6970_v61  ;;  %v1828_v63 = vadd.f32 1.0, %v1827_v34 }
 0x29c   : > { %v1830_v50 = vand.u32 2147483647, %v6745_v5  ;;  %5071 = vlog2.f32 %v1842_v31  ;;  %v5066_v53 = vpop.eup %5065  ;;  %v1773_v40 = vmul.f32 -0.5, %v6666_v37  ;;  %v1776_v25 = vand.u32 2147483647, %v6666_v37 }
 0x29d   : > { %v1706_v44 = vsel %vm6981_vm6, %v1703_v30, %v1700_v4  ;;  %v1644_v6 = vadd.f32 1.0, %v6807_v32  ;;  %v1890_v3 = vsel %vm1474_vm2, %v6483_v36, %v1634_v57  ;;  %v1754_v41 = vmul.f32 0.6931472, %v5066_v53 }
 0x29e   : > { %v1898_v7 = vsel %vm1482_vm3, %v6503_v38, %v1706_v44  ;;  %v1845_v45 = vmul.f32 -0.5, %v6789_v12  ;;  %v1757_v47 = vmul.f32 %v6644_v28, %v1756_v24  ;;  %v1647_v9 = vmul.f32 -0.5, %v6807_v32 }
 0x29f   : > { %v4666_v35 = vpack.c.bf16 %v1898_v7, %v1890_v3  ;;  %5073 = vlog2.f32 %v1644_v6  ;;  %v5068_v19 = vpop.eup %5067  ;;  %vm7019_vm9 = vcmp.lt.f32.partialorder %v1758_v29, 0.0004427343  ;;  %v1829_v36 = vmul.f32 %v6745_v5, %v1828_v63 }
 0x2a0   : > { %vm7024_vm10 = vcmp.lt.f32.partialorder %v1830_v50, 0.0004427343  ;;  %v1716_v38 = vadd.f32 1.0, %v6839_v51  ;;  %vm1490_vm11 = vcmp.gt.f32.partialorder %v9039_v55, 20.0  ;;  %v1760_v28 = vsel %vm7019_vm9, %v1757_v47, %v1754_v41 }
 0x2a1   : > { %4667 = vmatprep.subr.bf16.mxu1 %v4666_v35  ;;  %v1826_v59 = vmul.f32 0.6931472, %v5068_v19  ;;  %v1774_v0 = vadd.f32 1.0, %v1773_v40  ;;  %vm7032_vm0 = vcmp.lt.f32.partialorder %v1776_v25, 0.0004427343  ;;  %v9042_v5 = vpack.c.bf16 %v6654_v60, %v6649_v17 }
 0x2a2   : > { %v1846_v20 = vadd.f32 1.0, %v1845_v45  ;;  %v1848_v21 = vand.u32 2147483647, %v6789_v12  ;;  %5075 = vlog2.f32 %v1716_v38  ;;  %v1662_v24 = vadd.f32 1.0, %v6817_v8  ;;  %v5070_v29 = vpop.eup %5069  ;;  %v7072_v45 = vld [vmem:[%s8806_s2 + $0x20] sm:$0xff] }
 0x2a3   : > { %4669 = vmatpush1.bf16.msra.mxu1 %v9042_v5  ;;  %v1832_v31 = vsel %vm7024_vm10, %v1829_v36, %v1826_v59  ;;  %v1648_v57 = vadd.f32 1.0, %v1647_v9  ;;  %v1719_v4 = vmul.f32 -0.5, %v6839_v51  ;;  %v1734_v30 = vadd.f32 1.0, %v6854_v42 }
 0x2a4   : > { %v1904_v17 = vsel %vm1488_vm7, %v9033_v14, %v1760_v28  ;;  %v1912_v60 = vsel %vm1496_vm8, %v9034_v56, %v1832_v31  ;;  %v1772_v63 = vmul.f32 0.6931472, %v5070_v29  ;;  %5077 = vlog2.f32 %v1662_v24 }
 0x2a5   : > { %v4662_v50 = vpack.c.bf16 %v1912_v60, %v1904_v17  ;;  %v1775_v53 = vmul.f32 %v6666_v37, %v1774_v0  ;;  %v1665_v44 = vmul.f32 -0.5, %v6817_v8  ;;  %5079 = vlog2.f32 %v1734_v30  ;;  %v9064_v17 = vld [vmem:[#allocation12_spill] sm:$0xff] }
 0x2a6   : > { %v5072_v40 = vpop.eup %5071  ;;  %vm1498_vm1 = vcmp.gt.f32.partialorder %v6634_v27, 20.0  ;;  %vm7054_vm12 = vcmp.lt.f32.partialorder %v1848_v21, 0.0004427343  ;;  %v1650_v14 = vand.u32 2147483647, %v6807_v32  ;;  %v1788_v6 = vadd.f32 1.0, %v6858_v10 }
 0x2a7   : > { %vm1476_vm13 = vcmp.gt.f32.partialorder %v6686_v2, 20.0  ;;  %vm1484_vm14 = vcmp.gt.f32.partialorder %v6716_v48, 20.0  ;;  %4663 = vmatprep.subr.bf16.mxu0 %v4662_v50  ;;  %v1778_v37 = vsel %vm7032_vm0, %v1775_v53, %v1772_v63  ;;  %v1844_v56 = vmul.f32 0.6931472, %v5072_v40 }
 0x2a8   : > { %v1847_v3 = vmul.f32 %v6789_v12, %v1846_v20  ;;  %v1737_v7 = vmul.f32 -0.5, %v6854_v42  ;;  %v9045_v41 = vpack.c.bf16 %v6730_v39, %v6725_v16  ;;  %v1649_v35 = vmul.f32 %v6807_v32, %v1648_v57 }
 0x2a9   : > { %v1720_v47 = vadd.f32 1.0, %v1719_v4  ;;  %v1722_v9 = vand.u32 2147483647, %v6839_v51  ;;  %5081 = vlog2.f32 %v1788_v6  ;;  %v5074_v19 = vpop.eup %5073  ;;  %v1666_v18 = vadd.f32 1.0, %v1665_v44 }
 0x2aa   : > { %4665 = vmatpush1.bf16.msra.mxu0 %v9045_v41  ;;  %v1850_v12 = vsel %vm7054_vm12, %v1847_v3, %v1844_v56  ;;  %v1668_v36 = vand.u32 2147483647, %v6817_v8  ;;  %v1860_v16 = vadd.f32 1.0, %v6918_v58  ;;  %vm1478_vm15 = vcmp.gt.f32.partialorder %v6690_v26, 20.0 }
 0x2ab   : > { %v1906_v39 = vsel %vm1490_vm11, %v9039_v55, %v1778_v37  ;;  %v1914_v32 = vsel %vm1498_vm1, %v6634_v27, %v1850_v12  ;;  %v1646_v34 = vmul.f32 0.6931472, %v5074_v19  ;;  %v1740_v38 = vand.u32 2147483647, %v6854_v42  ;;  %v7095_v55 = vld [vmem:[%s8806_s2 + $0x28] sm:$0xff] }
 0x2ac   : > { %v4670_v28 = vpack.c.bf16 %v1914_v32, %v1906_v39  ;;  %v1738_v59 = vadd.f32 1.0, %v1737_v7  ;;  %v1791_v0 = vmul.f32 -0.5, %v6858_v10  ;;  %5083 = vlog2.f32 %v1860_v16  ;;  %v5076_v23 = vpop.eup %5075  ;;  %v9059_v32 = vld [vmem:[#allocation17_spill] sm:$0xff] }
 0x2ad   : > { %4552 = vmatmul.mubr.msk.f32.vlgmr.msra.gmra.mrb[32].mxu0 %vm1102_vm4, %v7072_v45  ;;  %v9046_v5 = vmov 0.0   ;;  %vm7097_vm2 = vcmp.lt.f32.partialorder %v1650_v14, 0.0004427343  ;;  %v1721_v20 = vmul.f32 %v6839_v51, %v1720_v47  ;;  %vm7102_vm3 = vcmp.lt.f32.partialorder %v1722_v9, 0.0004427343  ;;  %v7138_v14 = vld [vmem:[%s8806_s2 + $0x30] sm:$0xff] }
 0x2ae   : > { %2379 = vmatprep.mubr.f32.mxu0 %v9046_v5  ;;  %v1806_v24 = vadd.f32 1.0, %v6899_v22  ;;  %4671 = vmatprep.subr.bf16.mxu1 %v4670_v28  ;;  %v1652_v29 = vsel %vm7097_vm2, %v1649_v35, %v1646_v34  ;;  %v1718_v31 = vmul.f32 0.6931472, %v5076_v23  ;;  %v1667_v57 = vmul.f32 %v6817_v8, %v1666_v18  ;;  %v5078_v30 = vpop.eup %5077  ;;  %v4523_v18 = vld [vmem:[%s8806_s2 + $0x38] sm:$0xff]  ;;  %v9060_v34 = vld [vmem:[#allocation15_spill] sm:$0xff] }
 0x2af   : > { %vm7110_vm5 = vcmp.lt.f32.partialorder %v1668_v36, 0.0004427343  ;;  %v9053_v51 = vpack.c.bf16 %v6752_v52, %v6743_v1  ;;  %vm7117_vm6 = vcmp.lt.f32.partialorder %v1740_v38, 0.0004427343  ;;  %v1863_v60 = vmul.f32 -0.5, %v6918_v58  ;;  %v5080_v50 = vpop.eup %5079  ;;  %v9063_v23 = vld [vmem:[#allocation20_spill] sm:$0xff] }
 0x2b0   : > { %5085 = vlog2.f32 %v1806_v24  ;;  %v1878_v63 = vadd.f32 1.0, %v6957_v13  ;;  %v1724_v8 = vsel %vm7102_vm3, %v1721_v20, %v1718_v31  ;;  %v1664_v53 = vmul.f32 0.6931472, %v5078_v30 }
 0x2b1   : > { %4673 = vmatpush1.bf16.msra.mxu1 %v9053_v51  ;;  %4553 = vmatmul.mubr.msk.f32.gmra.mrb[34].mxu0 %vm1102_vm4, %v7095_v55  ;;  %v1739_v1 = vmul.f32 %v6854_v42, %v1738_v59  ;;  %v1792_v52 = vadd.f32 1.0, %v1791_v0  ;;  %v1892_v44 = vsel %vm1476_vm13, %v6686_v2, %v1652_v29  ;;  %v1900_v40 = vsel %vm1484_vm14, %v6716_v48, %v1724_v8  ;;  %v9062_v0 = vld [vmem:[#allocation13_spill] sm:$0xff] }
 0x2b2   : > { %v1736_v25 = vmul.f32 0.6931472, %v5080_v50  ;;  %2385 = vmatprep.mubr.f32.mxu0 %v9046_v5  ;;  %5087 = vlog2.f32 %v1878_v63  ;;  %v4674_v42 = vpack.c.bf16 %v1900_v40, %v1892_v44  ;;  %v1670_v2 = vsel %vm7110_vm5, %v1667_v57, %v1664_v53 }
 0x2b3   : > { %v1794_v6 = vand.u32 2147483647, %v6858_v10  ;;  %v1809_v48 = vmul.f32 -0.5, %v6899_v22  ;;  %v5082_v37 = vpop.eup %5081  ;;  %vm1486_vm7 = vcmp.gt.f32.partialorder %v6738_v11, 20.0  ;;  %v1864_v3 = vadd.f32 1.0, %v1863_v60  ;;  %v9065_v60 = vld [vmem:[#allocation19_spill] sm:$0xff] }
 0x2b4   : > { %4556 = vmatmul.mubr.msk.f32.vlgmr.msra.gmra.mrb[32].mxu1 %vm1102_vm4, %v7072_v45  ;;  %v1742_v56 = vsel %vm7117_vm6, %v1739_v1, %v1736_v25  ;;  %v1866_v7 = vand.u32 2147483647, %v6918_v58  ;;  %4675 = vmatprep.subr.bf16.mxu0 %v4674_v42  ;;  %v1894_v41 = vsel %vm1478_vm15, %v6690_v26, %v1670_v2  ;;  %v1790_v47 = vmul.f32 0.6931472, %v5082_v37  ;;  %v7241_v25 = vpop.permute.xlu0 %2682 }
 0x2b5   : > { %2468 = vmatprep.mubr.f32.mxu1 %v9046_v5  ;;  %v1902_v35 = vsel %vm1486_vm7, %v6738_v11, %v1742_v56  ;;  %4554 = vmatmul.mubr.msk.f32.gmra.mrb[36].mxu0 %vm1102_vm4, %v7138_v14  ;;  %v1881_v9 = vmul.f32 -0.5, %v6957_v13  ;;  %v9056_v12 = vpack.c.bf16 %v6874_v62, %v6835_v15  ;;  %v1793_v26 = vmul.f32 %v6858_v10, %v1792_v52 }
 0x2b6   : > { %v4682_v19 = vpack.c.bf16 %v1902_v35, %v1894_v41  ;;  %2391 = vmatprep.mubr.f32.mxu0 %v9046_v5  ;;  %v5084_v11 = vpop.eup %5083  ;;  %vm7168_vm8 = vcmp.lt.f32.partialorder %v1794_v6, 0.0004427343  ;;  %v1810_v16 = vadd.f32 1.0, %v1809_v48  ;;  %v1865_v39 = vmul.f32 %v6918_v58, %v1864_v3 }
 0x2b7   : > { %4677 = vmatpush1.bf16.msra.mxu0 %v9056_v12  ;;  %v1796_v15 = vsel %vm7168_vm8, %v1793_v26, %v1790_v47  ;;  %v1862_v62 = vmul.f32 0.6931472, %v5084_v11  ;;  %v1812_v10 = vand.u32 2147483647, %v6899_v22  ;;  %v9061_v38 = vpack.c.bf16 %v9059_v32, %v9060_v34 }
 0x2b8   : > { %4557 = vmatmul.mubr.msk.f32.gmra.mrb[34].mxu1 %vm1102_vm4, %v7095_v55  ;;  %4683 = vmatprep.subr.bf16.mxu1 %v4682_v19  ;;  %vm1867_vm9 = vcmp.lt.f32.partialorder %v1866_v7, 0.0004427343  ;;  %v1882_v28 = vadd.f32 1.0, %v1881_v9  ;;  %vm1492_vm10 = vcmp.gt.f32.partialorder %v9062_v0, 20.0  ;;  %vm1500_vm11 = vcmp.gt.f32.partialorder %v9063_v23, 20.0 }
 0x2b9   : > { %2474 = vmatprep.mubr.f32.mxu1 %v9046_v5  ;;  %4685 = vmatpush1.bf16.msra.mxu1 %v9061_v38  ;;  %v1868_v27 = vsel %vm1867_vm9, %v1865_v39, %v1862_v62  ;;  %v1884_v20 = vand.u32 2147483647, %v6957_v13  ;;  %v1908_v58 = vsel %vm1492_vm10, %v9062_v0, %v1796_v15  ;;  %v1811_v29 = vmul.f32 %v6899_v22, %v1810_v16 }
 0x2ba   : > { %4555 = vmatmul.mubr.msk.f32.gmra.mrb[38].mxu0 %vm1102_vm4, %v4523_v18  ;;  %v5086_v59 = vpop.eup %5085  ;;  %v1916_v21 = vsel %vm1500_vm11, %v9063_v23, %v1868_v27  ;;  %vm1813_vm0 = vcmp.lt.f32.partialorder %v1812_v10, 0.0004427343  ;;  %v1883_v51 = vmul.f32 %v6957_v13, %v1882_v28  ;;  %vm1494_vm12 = vcmp.gt.f32.partialorder %v9064_v17, 20.0 }
 0x2bb   : > { %2551 = vmatprep.mubr.f32.mxu0 %v9046_v5  ;;  %v1808_v24 = vmul.f32 0.6931472, %v5086_v59  ;;  %v4678_v57 = vpack.c.bf16 %v1916_v21, %v1908_v58  ;;  %vm1885_vm1 = vcmp.lt.f32.partialorder %v1884_v20, 0.0004427343  ;;  %vm1502_vm13 = vcmp.gt.f32.partialorder %v9065_v60, 20.0 }
 0x2bc   : > { %4558 = vmatmul.mubr.msk.f32.gmra.mrb[36].mxu1 %vm1102_vm4, %v7138_v14  ;;  %v5088_v31 = vpop.eup %5087 }
 0x2bd   : > { %2480 = vmatprep.mubr.f32.mxu1 %v9046_v5  ;;  %v1814_v4 = vsel %vm1813_vm0, %v1811_v29, %v1808_v24  ;;  %v1880_v30 = vmul.f32 0.6931472, %v5088_v31  ;;  %4679 = vmatprep.subr.bf16.mxu0 %v4678_v57 }
 0x2be   : > { %4681 = vmatpush1.bf16.msra.mxu0 %v4680_v54  ;;  %v1910_v22 = vsel %vm1494_vm12, %v9064_v17, %v1814_v4 }
 0x2bf   : > { %v1886_v63 = vsel %vm1885_vm1, %v1883_v51, %v1880_v30 }
 0x2c0   : > { %4559 = vmatmul.mubr.msk.f32.gmra.mrb[38].mxu1 %vm1102_vm4, %v4523_v18  ;;  %v1918_v50 = vsel %vm1502_vm13, %v9065_v60, %v1886_v63 }
 0x2c1   : > { %2640 = vmatprep.mubr.f32.mxu1 %v9046_v5  ;;  %v4686_v13 = vpack.c.bf16 %v1918_v50, %v1910_v22  ;;  %4560 = vmatmul.mubr.msk.f32.vlgmr.msra.gmra.mrb[40].mxu0 %vm1102_vm4, %v7072_v45 }
 0x2c2   : > { %2557 = vmatprep.mubr.f32.mxu0 %v9046_v5 }
 0x2c3   : > { %4687 = vmatprep.subr.bf16.mxu1 %v4686_v13 }
 0x2c4   : > { %4689 = vmatpush1.bf16.msra.mxu1 %v4688_v43  ;;  %v7232_v43 = vpop.permute.xlu1 %2677 }
 0x2c5   : > { %4561 = vmatmul.mubr.msk.f32.gmra.mrb[42].mxu0 %vm1102_vm4, %v7095_v55 }
 0x2c6   : > { %2563 = vmatprep.mubr.f32.mxu0 %v9046_v5 }
 0x2c7   : > { %4564 = vmatmul.mubr.msk.f32.vlgmr.msra.gmra.mrb[40].mxu1 %vm1102_vm4, %v7072_v45 }
 0x2c8   : > { %2646 = vmatprep.mubr.f32.mxu1 %v9046_v5  ;;  %v7268_v10 = vpop.permute.xlu1 %2687 }
 0x2c9   : > { %4562 = vmatmul.mubr.msk.f32.gmra.mrb[44].mxu0 %vm1102_vm4, %v7138_v14 }
 0x2ca   : > { %2569 = vmatprep.mubr.f32.mxu0 %v9046_v5 }
 0x2cb   : > { %4565 = vmatmul.mubr.msk.f32.gmra.mrb[42].mxu1 %vm1102_vm4, %v7095_v55 }
 0x2cc   : > { %2652 = vmatprep.mubr.f32.mxu1 %v9046_v5 }
 0x2cd   : > { %4563 = vmatmul.mubr.msk.f32.gmra.mrb[46].mxu0 %vm1102_vm4, %v4523_v18 }
 0x2ce   : > { %3276 = vmatprep.mubr.f32.mxu0 %v9046_v5 }
 0x2cf   : > { %4566 = vmatmul.mubr.msk.f32.gmra.mrb[44].mxu1 %vm1102_vm4, %v7138_v14 }
 0x2d0   : > { %2658 = vmatprep.mubr.f32.mxu1 %v9046_v5 }
 0x2d3   : > { %4567 = vmatmul.mubr.msk.f32.gmra.mrb[46].mxu1 %vm1102_vm4, %v4523_v18 }
 0x2d4   : > { %3365 = vmatprep.mubr.f32.mxu1 %v9046_v5 }
 0x380   : > { %v2375_v61 = vpop.f32.mrb[32].mxu0 }
 0x381   : > { %v7229_v49 = vadd.f32 %v7226_v46, %v2375_v61  ;;  %v2377_v54 = vpop.f32.mrb[33].mxu0 }
 0x382   : > { %v7248_v37 = vadd.f32 %v7226_v46, %v2377_v54 }
 0x383   : > { %v2754_v33 = vmin.f32 %v7229_v49, 20.0  ;;  %vm2722_vm14 = vcmp.gt.f32.partialorder %v7229_v49, 20.0 }
 0x384   : > { %v2381_v45 = vpop.f32.mrb[34].mxu0  ;;  %v2755_v18 = vmin.f32 %v7248_v37, 20.0 }
 0x385   : > { %v2786_v55 = vmul.f32 1.442695, %v2754_v33  ;;  %v7235_v8 = vadd.f32 %v7232_v43, %v2381_v45  ;;  %v2383_v53 = vpop.f32.mrb[35].mxu0 }
 0x386   : > { %v7254_v41 = vadd.f32 %v7232_v43, %v2383_v53  ;;  %v2788_v23 = vmul.f32 1.442695, %v2755_v18 }
 0x387   : > { %v2464_v1 = vpop.f32.mrb[32].mxu1  ;;  %5089 = vpow2.f32 %v2786_v55  ;;  %v2762_v40 = vmin.f32 %v7235_v8, 20.0  ;;  %vm2730_vm2 = vcmp.gt.f32.partialorder %v7235_v8, 20.0 }
 0x388   : > { %v7238_v52 = vadd.f32 %v7226_v46, %v2464_v1  ;;  %v2466_v44 = vpop.f32.mrb[33].mxu1  ;;  %v2387_v14 = vpop.f32.mrb[36].mxu0  ;;  %v2763_v15 = vmin.f32 %v7254_v41, 20.0 }
 0x389   : > { %v2802_v2 = vmul.f32 1.442695, %v2762_v40  ;;  %v7245_v6 = vadd.f32 %v7241_v25, %v2387_v14  ;;  %v2389_v48 = vpop.f32.mrb[37].mxu0  ;;  %v7262_v36 = vadd.f32 %v7226_v46, %v2466_v44 }
 0x38a   : > { %v2756_v42 = vmin.f32 %v7238_v52, 20.0  ;;  %v7274_v34 = vadd.f32 %v7241_v25, %v2389_v48  ;;  %v2804_v58 = vmul.f32 1.442695, %v2763_v15  ;;  %vm2724_vm6 = vcmp.gt.f32.partialorder %v7238_v52, 20.0 }
 0x38b   : > { %v2470_v56 = vpop.f32.mrb[34].mxu1  ;;  %5091 = vpow2.f32 %v2802_v2  ;;  %v2770_v47 = vmin.f32 %v7245_v6, 20.0  ;;  %v2757_v20 = vmin.f32 %v7262_v36, 20.0  ;;  %vm2738_vm9 = vcmp.gt.f32.partialorder %v7245_v6, 20.0 }
 0x38c   : > { %v2790_v3 = vmul.f32 1.442695, %v2756_v42  ;;  %v7251_v7 = vadd.f32 %v7232_v43, %v2470_v56  ;;  %v2472_v35 = vpop.f32.mrb[35].mxu1  ;;  %v2771_v31 = vmin.f32 %v7274_v34, 20.0 }
 0x38d   : > { %v2393_v9 = vpop.f32.mrb[38].mxu0  ;;  %v2818_v26 = vmul.f32 1.442695, %v2770_v47  ;;  %v7271_v32 = vadd.f32 %v7232_v43, %v2472_v35  ;;  %v2792_v50 = vmul.f32 1.442695, %v2757_v20 }
 0x38e   : > { %5093 = vpow2.f32 %v2790_v3  ;;  %v2764_v19 = vmin.f32 %v7251_v7, 20.0  ;;  %v7258_v12 = vpop.f32.mrb[39].mxu0  ;;  %v7280_v59 = vadd.f32 %v7268_v10, %v2393_v9  ;;  %v2820_v55 = vmul.f32 1.442695, %v2771_v31 }
 0x38f   : > { %v2476_v11 = vpop.f32.mrb[36].mxu1  ;;  %5095 = vpow2.f32 %v2818_v26  ;;  %v2765_v29 = vmin.f32 %v7271_v32, 20.0  ;;  %vm2732_vm7 = vcmp.gt.f32.partialorder %v7251_v7, 20.0 }
 0x390   : > { %v2806_v16 = vmul.f32 1.442695, %v2764_v19  ;;  %v7266_v62 = vadd.f32 %v7241_v25, %v2476_v11  ;;  %v2478_v39 = vpop.f32.mrb[37].mxu1  ;;  %v2778_v30 = vmin.f32 %v7280_v59, 20.0  ;;  %vm2746_vm10 = vcmp.gt.f32.partialorder %v7280_v59, 20.0 }
 0x391   : > { %v7276_v38 = vpop.eup %5089  ;;  %v7291_v4 = vadd.f32 %v7241_v25, %v2478_v39  ;;  %v2808_v33 = vmul.f32 1.442695, %v2765_v29 }
 0x392   : > { %5097 = vpow2.f32 %v2806_v16  ;;  %v2772_v28 = vmin.f32 %v7266_v62, 20.0  ;;  %v2850_v0 = vadd.f32 1.0, %v7276_v38  ;;  %v2834_v13 = vmul.f32 1.442695, %v2778_v30 }
 0x393   : > { %v2482_v27 = vpop.f32.mrb[38].mxu1  ;;  %9066 = vst [vmem:[#allocation16_spill] sm:$0xff] %v7291_v4  ;;  %v2853_v45 = vmul.f32 -0.5, %v7276_v38  ;;  %v2773_v53 = vmin.f32 %v7291_v4, 20.0  ;;  %v2856_v3 = vand.u32 2147483647, %v7276_v38 }
 0x394   : > { %v2822_v21 = vmul.f32 1.442695, %v2772_v28  ;;  %v7284_v24 = vpop.f32.mrb[39].mxu1  ;;  %5099 = vlog2.f32 %v2850_v0  ;;  %v7295_v51 = vadd.f32 %v7268_v10, %v2482_v27  ;;  %v7297_v17 = vpop.f32.mrb[40].mxu0  ;;  %vm2740_vm1 = vcmp.gt.f32.partialorder %v7266_v62, 20.0 }
 0x395   : > { %v7288_v57 = vpop.eup %5091  ;;  %v7300_v63 = vpop.f32.mrb[41].mxu0  ;;  %v2854_v9 = vadd.f32 1.0, %v2853_v45  ;;  %v2824_v18 = vmul.f32 1.442695, %v2773_v53  ;;  %vm7338_vm15 = vcmp.lt.f32.partialorder %v2856_v3, 0.0004427343 }
 0x396   : > { %5101 = vpow2.f32 %v2822_v21  ;;  %v2922_v60 = vadd.f32 1.0, %v7288_v57  ;;  %v2780_v61 = vmin.f32 %v7295_v51, 20.0  ;;  %v2925_v2 = vmul.f32 -0.5, %v7288_v57 }
 0x397   : > { %5103 = vpow2.f32 %v2788_v23  ;;  %v2928_v19 = vand.u32 2147483647, %v7288_v57  ;;  %v2855_v31 = vmul.f32 %v7276_v38, %v2854_v9  ;;  %v7360_v38 = vadd.f32 %v7268_v10, %v7258_v12 }
 0x398   : > { %v7302_v22 = vpop.eup %5093  ;;  %5105 = vpow2.f32 %v2804_v58  ;;  %v7308_v1 = vpop.f32.mrb[42].mxu0  ;;  %v2838_v48 = vmul.f32 1.442695, %v2780_v61  ;;  %v2926_v27 = vadd.f32 1.0, %v2925_v2  ;;  %v7375_v12 = vadd.f32 %v7226_v46, %v7297_v17 }
 0x399   : > { %v2868_v54 = vadd.f32 1.0, %v7302_v22  ;;  %5107 = vlog2.f32 %v2922_v60  ;;  %v7310_v44 = vpop.eup %5095  ;;  %v7312_v14 = vpop.f32.mrb[43].mxu0  ;;  %v2871_v16 = vmul.f32 -0.5, %v7302_v22  ;;  %v2874_v15 = vand.u32 2147483647, %v7302_v22  ;;  %9073 = vst [vmem:[#allocation18_spill] sm:$0xff] %v7360_v38 }
 0x39a   : > { %5109 = vpow2.f32 %v2834_v13  ;;  %v2642_v40 = vpop.f32.mrb[40].mxu1  ;;  %v2994_v47 = vadd.f32 1.0, %v7310_v44  ;;  %vm7346_vm3 = vcmp.lt.f32.partialorder %v2928_v19, 0.0004427343  ;;  %v2927_v3 = vmul.f32 %v7288_v57, %v2926_v27 }
 0x39b   : > { %5111 = vlog2.f32 %v2868_v54  ;;  %v7317_v56 = vpop.f32.mrb[41].mxu1  ;;  %v2872_v54 = vadd.f32 1.0, %v2871_v16  ;;  %vm7354_vm5 = vcmp.lt.f32.partialorder %v2874_v15, 0.0004427343  ;;  %v2997_v9 = vmul.f32 -0.5, %v7310_v44 }
 0x39c   : > { %v7314_v42 = vpop.eup %5097  ;;  %5113 = vpow2.f32 %v2792_v50  ;;  %v7323_v26 = vpop.f32.mrb[44].mxu0  ;;  %v3000_v19 = vand.u32 2147483647, %v7310_v44 }
 0x39d   : > { %v2940_v35 = vadd.f32 1.0, %v7314_v42  ;;  %5115 = vpow2.f32 %v2808_v33  ;;  %v7329_v28 = vpop.f32.mrb[45].mxu0  ;;  %v2943_v60 = vmul.f32 -0.5, %v7314_v42  ;;  %v2946_v21 = vand.u32 2147483647, %v7314_v42 }
 0x39e   : > { %5117 = vpow2.f32 %v2820_v55  ;;  %v5100_v11 = vpop.eup %5099  ;;  %v7327_v39 = vpop.f32.mrb[42].mxu1  ;;  %vm7441_vm11 = vcmp.lt.f32.partialorder %v3000_v19, 0.0004427343 }
 0x39f   : > { %5119 = vlog2.f32 %v2940_v35  ;;  %v2852_v23 = vmul.f32 0.6931472, %v5100_v11  ;;  %v7333_v20 = vpop.f32.mrb[43].mxu1  ;;  %v7383_v11 = vadd.f32 %v7226_v46, %v2642_v40  ;;  %v2944_v17 = vadd.f32 1.0, %v2943_v60 }
 0x3a0   : > { %v7331_v0 = vpop.eup %5101  ;;  %5121 = vpow2.f32 %v2838_v48  ;;  %v7352_v13 = vpop.f32.mrb[46].mxu0  ;;  %v2873_v60 = vmul.f32 %v7302_v22, %v2872_v54  ;;  %vm2947_vm8 = vcmp.lt.f32.partialorder %v2946_v21, 0.0004427343  ;;  %v7457_v19 = vadd.f32 %v7232_v43, %v7327_v39 }
 0x3a1   : > { %v7335_v58 = vpop.eup %5103  ;;  %5123 = vlog2.f32 %v2994_v47  ;;  %v3012_v50 = vadd.f32 1.0, %v7331_v0  ;;  %v7364_v55 = vpop.f32.mrb[47].mxu0  ;;  %v2858_v2 = vsel %vm7338_vm15, %v2855_v31, %v2852_v23  ;;  %v3015_v4 = vmul.f32 -0.5, %v7331_v0 }
 0x3a2   : > { %v7343_v29 = vpop.eup %5105  ;;  %5125 = vpow2.f32 %v2824_v18  ;;  %v7362_v45 = vpop.f32.mrb[44].mxu1  ;;  %v7394_v27 = vsel %vm2722_vm14, %v7229_v49, %v2858_v2  ;;  %v7411_v49 = vadd.f32 %v7268_v10, %v7284_v24  ;;  %v2945_v24 = vmul.f32 %v7314_v42, %v2944_v17 }
 0x3a3   : > { %v5108_v61 = vpop.eup %5107  ;;  %v7377_v35 = vpop.f32.mrb[45].mxu1  ;;  %5127 = vlog2.f32 %v3012_v50  ;;  %9074 = vst [vmem:[#allocation5_spill] sm:$0xff] %v7394_v27  ;;  %vm2748_vm14 = vcmp.gt.f32.partialorder %v7295_v51, 20.0 }
 0x3a4   : > { %v7366_v53 = vpop.eup %5109  ;;  %v2924_v48 = vmul.f32 0.6931472, %v5108_v61  ;;  %v2758_v61 = vmin.f32 %v7375_v12, 20.0 }
 0x3a5   : > { %v5112_v47 = vpop.eup %5111  ;;  %v3066_v18 = vadd.f32 1.0, %v7366_v53 }
 0x3a6   : > { %v7385_v16 = vpop.eup %5113  ;;  %v2870_v57 = vmul.f32 0.6931472, %v5112_v47  ;;  %v2930_v15 = vsel %vm7346_vm3, %v2927_v3, %v2924_v48  ;;  %v7402_v31 = vpop.f32.mrb[46].mxu1  ;;  %v2998_v48 = vadd.f32 1.0, %v2997_v9  ;;  %v3069_v3 = vmul.f32 -0.5, %v7366_v53 }
 0x3a7   : > { %v7389_v23 = vpop.eup %5115  ;;  %v7399_v40 = vsel %vm2730_vm2, %v7235_v8, %v2930_v15  ;;  %5129 = vlog2.f32 %v3066_v18  ;;  %v7414_v8 = vpop.f32.mrb[47].mxu1  ;;  %v2779_v47 = vmin.f32 %v7360_v38, 20.0  ;;  %v2760_v18 = vmin.f32 %v7383_v11, 20.0 }
 0x3a8   : > { %9075 = vst [vmem:[#allocation6_spill] sm:$0xff] %v7399_v40  ;;  %v7404_v30 = vpop.eup %5117  ;;  %v2876_v54 = vsel %vm7354_vm5, %v2873_v60, %v2870_v57  ;;  %v2794_v50 = vmul.f32 1.442695, %v2758_v61  ;;  %v3018_v9 = vand.u32 2147483647, %v7331_v0  ;;  %v2781_v38 = vmin.f32 %v7411_v49, 20.0 }
 0x3a9   : > { %v5120_v2 = vpop.eup %5119  ;;  %v2798_v33 = vmul.f32 1.442695, %v2760_v18  ;;  %v7432_v42 = vsel %vm2724_vm6, %v7238_v52, %v2876_v54  ;;  %v3070_v21 = vadd.f32 1.0, %v3069_v3  ;;  %v3016_v52 = vadd.f32 1.0, %v3015_v4 }
 0x3aa   : > { %v5122_v22 = vpop.eup %5121  ;;  %v2942_v15 = vmul.f32 0.6931472, %v5120_v2  ;;  %5131 = vpow2.f32 %v2794_v50  ;;  %v2999_v2 = vmul.f32 %v7310_v44, %v2998_v48  ;;  %v3072_v18 = vand.u32 2147483647, %v7366_v53 }
 0x3ab   : > { %v5124_v5 = vpop.eup %5123  ;;  %v3084_v27 = vadd.f32 1.0, %v5122_v22  ;;  %v3087_v54 = vmul.f32 -0.5, %v5122_v22  ;;  %vm7447_vm0 = vcmp.lt.f32.partialorder %v3018_v9, 0.0004427343  ;;  %v3071_v4 = vmul.f32 %v7366_v53, %v3070_v21 }
 0x3ac   : > { %v2948_v40 = vsel %vm2947_vm8, %v2945_v24, %v2942_v15  ;;  %v7427_v57 = vpop.eup %5125  ;;  %v2996_v61 = vmul.f32 0.6931472, %v5124_v5  ;;  %v7453_v5 = vadd.f32 %v7232_v43, %v7308_v1  ;;  %v2840_v44 = vmul.f32 1.442695, %v2781_v38 }
 0x3ad   : > { %v7437_v17 = vsel %vm2732_vm7, %v7251_v7, %v2948_v40  ;;  %5133 = vlog2.f32 %v3084_v27  ;;  %v5128_v15 = vpop.eup %5127  ;;  %v2836_v27 = vmul.f32 1.442695, %v2779_v47  ;;  %v7462_v48 = vadd.f32 %v7226_v46, %v7300_v63 }
 0x3ae   : > { %5135 = vpow2.f32 %v2798_v33  ;;  %v7466_v3 = vadd.f32 %v7226_v46, %v7317_v56  ;;  %v3002_v1 = vsel %vm7441_vm11, %v2999_v2, %v2996_v61  ;;  %v3090_v39 = vand.u32 2147483647, %v5122_v22 }
 0x3af   : > { %v2766_v24 = vmin.f32 %v7453_v5, 20.0  ;;  %v3017_v53 = vmul.f32 %v7331_v0, %v3016_v52  ;;  %vm3073_vm12 = vcmp.lt.f32.partialorder %v3072_v18, 0.0004427343  ;;  %v3088_v38 = vadd.f32 1.0, %v3087_v54 }
 0x3b0   : > { %v2768_v63 = vmin.f32 %v7457_v19, 20.0  ;;  %v3014_v9 = vmul.f32 0.6931472, %v5128_v15  ;;  %v7476_v46 = vadd.f32 %v7232_v43, %v7312_v14  ;;  %v7481_v56 = vsel %vm2738_vm9, %v7245_v6, %v3002_v1 }
 0x3b1   : > { %v5130_v40 = vpop.eup %5129  ;;  %v2810_v21 = vmul.f32 1.442695, %v2766_v24  ;;  %v2759_v61 = vmin.f32 %v7462_v48, 20.0  ;;  %vm7493_vm13 = vcmp.lt.f32.partialorder %v3090_v39, 0.0004427343  ;;  %v2761_v6 = vmin.f32 %v7466_v3, 20.0 }
 0x3b2   : > { %v3068_v47 = vmul.f32 0.6931472, %v5130_v40  ;;  %v2814_v50 = vmul.f32 1.442695, %v2768_v63  ;;  %v3089_v54 = vmul.f32 %v5122_v22, %v3088_v38  ;;  %v7501_v15 = vadd.f32 %v7241_v25, %v7323_v26 }
 0x3b3   : > { %5137 = vpow2.f32 %v2810_v21  ;;  %v7510_v39 = vadd.f32 %v7232_v43, %v7333_v20  ;;  %v2796_v24 = vmul.f32 1.442695, %v2759_v61  ;;  %v7515_v26 = vadd.f32 %v7241_v25, %v7362_v45 }
 0x3b4   : > { %v3074_v33 = vsel %vm3073_vm12, %v3071_v4, %v3068_v47  ;;  %v7489_v2 = vpop.eup %5131  ;;  %5139 = vpow2.f32 %v2814_v50  ;;  %v3020_v4 = vsel %vm7447_vm0, %v3017_v53, %v3014_v9  ;;  %v2767_v47 = vmin.f32 %v7476_v46, 20.0 }
 0x3b5   : > { %v7486_v0 = vsel %vm2746_vm10, %v7280_v59, %v3074_v33  ;;  %v2886_v59 = vadd.f32 1.0, %v7489_v2  ;;  %v2800_v53 = vmul.f32 1.442695, %v2761_v6  ;;  %v7523_v43 = vsel %vm2740_vm1, %v7266_v62, %v3020_v4 }
 0x3b6   : > { %v2774_v38 = vmin.f32 %v7501_v15, 20.0  ;;  %v2812_v63 = vmul.f32 1.442695, %v2767_v47  ;;  %v2769_v9 = vmin.f32 %v7510_v39, 20.0  ;;  %v2776_v62 = vmin.f32 %v7515_v26, 20.0 }
 0x3b7   : > { %v5134_v18 = vpop.eup %5133  ;;  %5141 = vlog2.f32 %v2886_v59  ;;  %v2892_v21 = vand.u32 2147483647, %v7489_v2  ;;  %v7541_v61 = vadd.f32 %v7268_v10, %v7352_v13  ;;  %vm2726_vm2 = vcmp.gt.f32.partialorder %v7375_v12, 20.0 }
 0x3b8   : > { %v7503_v40 = vpop.eup %5135  ;;  %v3086_v1 = vmul.f32 0.6931472, %v5134_v18  ;;  %5143 = vpow2.f32 %v2836_v27  ;;  %v2889_v27 = vmul.f32 -0.5, %v7489_v2  ;;  %v2826_v33 = vmul.f32 1.442695, %v2774_v38 }
 0x3b9   : > { %v2904_v22 = vadd.f32 1.0, %v7503_v40  ;;  %v2830_v50 = vmul.f32 1.442695, %v2776_v62  ;;  %v2816_v6 = vmul.f32 1.442695, %v2769_v9  ;;  %v7546_v18 = vadd.f32 %v7241_v25, %v7377_v35 }
 0x3ba   : > { %v3092_v7 = vsel %vm7493_vm13, %v3089_v54, %v3086_v1  ;;  %v2890_v59 = vadd.f32 1.0, %v2889_v27  ;;  %v2782_v4 = vmin.f32 %v7541_v61, 20.0  ;;  %vm7551_vm15 = vcmp.lt.f32.partialorder %v2892_v21, 0.0004427343 }
 0x3bb   : > { %v7526_v20 = vsel %vm2748_vm14, %v7295_v51, %v3092_v7  ;;  %5145 = vlog2.f32 %v2904_v22  ;;  %v7537_v51 = vadd.f32 %v7241_v25, %v7329_v28  ;;  %9083 = vst [vmem:[#allocation8_spill] sm:$0xff] %v7546_v18  ;;  %v2910_v1 = vand.u32 2147483647, %v7503_v40 }
 0x3bc   : > { %5147 = vpow2.f32 %v2840_v44  ;;  %v2907_v44 = vmul.f32 -0.5, %v7503_v40  ;;  %v7560_v35 = vadd.f32 %v7268_v10, %v7402_v31  ;;  %v7564_v7 = vadd.f32 %v7268_v10, %v7364_v55 }
 0x3bd   : > { %5149 = vpow2.f32 %v2796_v24  ;;  %9082 = vst [vmem:[#allocation7_spill] sm:$0xff] %v7537_v51  ;;  %v5138_v14 = vpop.eup %5137  ;;  %v2775_v22 = vmin.f32 %v7537_v51, 20.0  ;;  %v2777_v9 = vmin.f32 %v7546_v18, 20.0  ;;  %vm2728_vm3 = vcmp.gt.f32.partialorder %v7383_v11, 20.0 }
 0x3be   : > { %5151 = vpow2.f32 %v2800_v53  ;;  %v7548_v54 = vpop.eup %5139  ;;  %v2958_v28 = vadd.f32 1.0, %v5138_v14  ;;  %v2908_v25 = vadd.f32 1.0, %v2907_v44  ;;  %9086 = vst [vmem:[#allocation11_spill] sm:$0xff] %v7564_v7  ;;  %v2961_v38 = vmul.f32 -0.5, %v5138_v14 }
 0x3bf   : > { %5153 = vpow2.f32 %v2826_v33  ;;  %v2976_v47 = vadd.f32 1.0, %v7548_v54  ;;  %v2979_v33 = vmul.f32 -0.5, %v7548_v54  ;;  %v2982_v31 = vand.u32 2147483647, %v7548_v54 }
 0x3c0   : > { %5155 = vpow2.f32 %v2812_v63  ;;  %v2964_v63 = vand.u32 2147483647, %v5138_v14  ;;  %v2842_v62 = vmul.f32 1.442695, %v2782_v4  ;;  %v2891_v44 = vmul.f32 %v7489_v2, %v2890_v59 }
 0x3c1   : > { %5157 = vpow2.f32 %v2830_v50  ;;  %v5142_v24 = vpop.eup %5141  ;;  %vm7579_vm5 = vcmp.lt.f32.partialorder %v2910_v1, 0.0004427343  ;;  %v2784_v60 = vmin.f32 %v7560_v35, 20.0  ;;  %vm2734_vm6 = vcmp.gt.f32.partialorder %v7453_v5, 20.0 }
 0x3c2   : > { %5159 = vlog2.f32 %v2958_v28  ;;  %v7566_v53 = vpop.eup %5143  ;;  %v2888_v21 = vmul.f32 0.6931472, %v5142_v24  ;;  %v2828_v28 = vmul.f32 1.442695, %v2775_v22  ;;  %v2962_v4 = vadd.f32 1.0, %v2961_v38 }
 0x3c3   : > { %5161 = vlog2.f32 %v2976_v47  ;;  %v2909_v47 = vmul.f32 %v7503_v40, %v2908_v25  ;;  %vm7587_vm7 = vcmp.lt.f32.partialorder %v2964_v63, 0.0004427343  ;;  %v2832_v59 = vmul.f32 1.442695, %v2777_v9 }
 0x3c4   : > { %5163 = vpow2.f32 %v2816_v6  ;;  %v2783_v22 = vmin.f32 %v7564_v7, 20.0  ;;  %vm2736_vm8 = vcmp.gt.f32.partialorder %v7457_v19, 20.0  ;;  %v2980_v1 = vadd.f32 1.0, %v2979_v33 }
 0x3c5   : > { %v5146_v27 = vpop.eup %5145  ;;  %5165 = vpow2.f32 %v2842_v62  ;;  %vm7593_vm9 = vcmp.lt.f32.partialorder %v2982_v31, 0.0004427343  ;;  %v2846_v25 = vmul.f32 1.442695, %v2784_v60  ;;  %v2894_v63 = vsel %vm7551_vm15, %v2891_v44, %v2888_v21 }
 0x3c6   : > { %v7573_v55 = vpop.eup %5147  ;;  %v2906_v50 = vmul.f32 0.6931472, %v5146_v27  ;;  %v7599_v27 = vadd.f32 %v7268_v10, %v7414_v8  ;;  %5167 = vpow2.f32 %v2828_v28  ;;  %v2844_v18 = vmul.f32 1.442695, %v2783_v22 }
 0x3c7   : > { %v7576_v45 = vpop.eup %5149  ;;  %5169 = vpow2.f32 %v2846_v25  ;;  %v2862_v60 = vmul.f32 -0.5, %v7335_v58  ;;  %v2963_v7 = vmul.f32 %v5138_v14, %v2962_v4  ;;  %v2859_v8 = vadd.f32 1.0, %v7335_v58 }
 0x3c8   : > { %v7584_v6 = vpop.eup %5151  ;;  %9093 = vst [vmem:[#allocation14_spill] sm:$0xff] %v7599_v27  ;;  %v2912_v9 = vsel %vm7579_vm5, %v2909_v47, %v2906_v50  ;;  %v7615_v52 = vsel %vm2726_vm2, %v7375_v12, %v2894_v63  ;;  %v2981_v21 = vmul.f32 %v7548_v54, %v2980_v1  ;;  %v2785_v44 = vmin.f32 %v7599_v27, 20.0 }
 0x3c9   : > { %v5154_v40 = vpop.eup %5153  ;;  %9094 = vst [vmem:[#allocation10_spill] sm:$0xff] %v7615_v52  ;;  %v7622_v14 = vsel %vm2728_vm3, %v7383_v11, %v2912_v9  ;;  %v2863_v12 = vadd.f32 1.0, %v2862_v60  ;;  %v2931_v1 = vadd.f32 1.0, %v7343_v29  ;;  %v2865_v24 = vand.u32 2147483647, %v7335_v58 }
 0x3ca   : > { %v7601_v38 = vpop.eup %5155  ;;  %v3030_v62 = vadd.f32 1.0, %v5154_v40  ;;  %v3033_v31 = vmul.f32 -0.5, %v5154_v40  ;;  %9095 = vst [vmem:[#allocation9_spill] sm:$0xff] %v7622_v14  ;;  %v3036_v47 = vand.u32 2147483647, %v5154_v40  ;;  %vm2742_vm11 = vcmp.gt.f32.partialorder %v7501_v15, 20.0 }
 0x3cb   : > { %v7607_v33 = vpop.eup %5157  ;;  %vm7669_vm1 = vcmp.lt.f32.partialorder %v2865_v24, 0.0004427343  ;;  %vm2723_vm12 = vcmp.gt.f32.partialorder %v7248_v37, 20.0  ;;  %vm2731_vm13 = vcmp.gt.f32.partialorder %v7254_v41, 20.0  ;;  %vm2750_vm14 = vcmp.gt.f32.partialorder %v7541_v61, 20.0 }
 0x3cc   : > { %5171 = vlog2.f32 %v3030_v62  ;;  %v3048_v10 = vadd.f32 1.0, %v7607_v33  ;;  %v5160_v13 = vpop.eup %5159  ;;  %v3034_v25 = vadd.f32 1.0, %v3033_v31  ;;  %v2848_v62 = vmul.f32 1.442695, %v2785_v44 }
 0x3cd   : > { %5173 = vpow2.f32 %v2832_v59  ;;  %v5162_v50 = vpop.eup %5161  ;;  %v2960_v28 = vmul.f32 0.6931472, %v5160_v13  ;;  %v3051_v59 = vmul.f32 -0.5, %v7607_v33  ;;  %vm7651_vm10 = vcmp.lt.f32.partialorder %v3036_v47, 0.0004427343 }
 0x3ce   : > { %5175 = vlog2.f32 %v3048_v10  ;;  %v7624_v4 = vpop.eup %5163  ;;  %v2978_v22 = vmul.f32 0.6931472, %v5162_v50  ;;  %v3054_v10 = vand.u32 2147483647, %v7607_v33  ;;  %v3035_v44 = vmul.f32 %v5154_v40, %v3034_v25 }
 0x3cf   : > { %5177 = vpow2.f32 %v2844_v18  ;;  %v2966_v54 = vsel %vm7587_vm7, %v2963_v7, %v2960_v28  ;;  %v5166_v63 = vpop.eup %5165  ;;  %v2934_v18 = vmul.f32 -0.5, %v7343_v29  ;;  %v3052_v50 = vadd.f32 1.0, %v3051_v59 }
 0x3d0   : > { %5179 = vlog2.f32 %v2859_v8  ;;  %v7633_v11 = vsel %vm2734_vm6, %v7453_v5, %v2966_v54  ;;  %v2984_v9 = vsel %vm7593_vm9, %v2981_v21, %v2978_v22  ;;  %v3102_v31 = vadd.f32 1.0, %v5166_v63  ;;  %v7649_v8 = vpop.eup %5167 }
 0x3d1   : > { %v7643_v2 = vsel %vm2736_vm8, %v7457_v19, %v2984_v9  ;;  %v3105_v60 = vmul.f32 -0.5, %v5166_v63  ;;  %5181 = vlog2.f32 %v2931_v1  ;;  %v2877_v19 = vadd.f32 1.0, %v7385_v16  ;;  %v7656_v21 = vpop.eup %5169 }
 0x3d2   : > { %9096 = vst [vmem:[#allocation17_spill] sm:$0xff] %v7643_v2  ;;  %5183 = vlog2.f32 %v3102_v31  ;;  %v7660_v28 = vmul.f32 %v7335_v58, %v2863_v12  ;;  %v3108_v1 = vand.u32 2147483647, %v5166_v63  ;;  %v3120_v47 = vadd.f32 1.0, %v7656_v21 }
 0x3d3   : > { %5185 = vpow2.f32 %v2848_v62  ;;  %v3106_v54 = vadd.f32 1.0, %v3105_v60  ;;  %v2935_v9 = vadd.f32 1.0, %v2934_v18  ;;  %vm7665_vm0 = vcmp.lt.f32.partialorder %v3054_v10, 0.0004427343 }
 0x3d4   : > { %5187 = vlog2.f32 %v2877_v19  ;;  %v3123_v25 = vmul.f32 -0.5, %v7656_v21  ;;  %v2937_v12 = vand.u32 2147483647, %v7343_v29  ;;  %v2880_v59 = vmul.f32 -0.5, %v7385_v16 }
 0x3d5   : > { %5189 = vlog2.f32 %v3120_v47  ;;  %v3053_v18 = vmul.f32 %v7607_v33, %v3052_v50  ;;  %v3126_v60 = vand.u32 2147483647, %v7656_v21  ;;  %v2883_v10 = vand.u32 2147483647, %v7385_v16 }
 0x3d6   : > { %v5172_v22 = vpop.eup %5171  ;;  %v2949_v24 = vadd.f32 1.0, %v7389_v23  ;;  %v3107_v47 = vmul.f32 %v5166_v63, %v3106_v54  ;;  %vm7687_vm15 = vcmp.lt.f32.partialorder %v3108_v1, 0.0004427343  ;;  %v2936_v14 = vmul.f32 %v7343_v29, %v2935_v9 }
 0x3d7   : > { %v7663_v5 = vpop.eup %5173  ;;  %v3032_v31 = vmul.f32 0.6931472, %v5172_v22  ;;  %vm2744_vm2 = vcmp.gt.f32.partialorder %v7515_v26, 20.0  ;;  %v3003_v2 = vadd.f32 1.0, %v7404_v30  ;;  %v3124_v51 = vadd.f32 1.0, %v3123_v25 }
 0x3d8   : > { %v5176_v58 = vpop.eup %5175  ;;  %5191 = vlog2.f32 %v2949_v24  ;;  %vm7694_vm3 = vcmp.lt.f32.partialorder %v2937_v12, 0.0004427343  ;;  %v2881_v13 = vadd.f32 1.0, %v2880_v59  ;;  %v2952_v63 = vmul.f32 -0.5, %v7389_v23 }
 0x3d9   : > { %v7678_v62 = vpop.eup %5177  ;;  %v3038_v22 = vsel %vm7651_vm10, %v3035_v44, %v3032_v31  ;;  %v3050_v33 = vmul.f32 0.6931472, %v5176_v58  ;;  %vm2752_vm5 = vcmp.gt.f32.partialorder %v7560_v35, 20.0  ;;  %vm7700_vm6 = vcmp.lt.f32.partialorder %v3126_v60, 0.0004427343 }
 0x3da   : > { %v5180_v19 = vpop.eup %5179  ;;  %vm7704_vm7 = vcmp.lt.f32.partialorder %v2883_v10, 0.0004427343  ;;  %5193 = vlog2.f32 %v3003_v2  ;;  %v3075_v1 = vadd.f32 1.0, %v7566_v53  ;;  %v7712_v31 = vsel %vm2742_vm11, %v7501_v15, %v3038_v22 }
 0x3db   : > { %v2861_v50 = vmul.f32 0.6931472, %v5180_v19  ;;  %v5182_v44 = vpop.eup %5181  ;;  %v3006_v12 = vmul.f32 -0.5, %v7404_v30  ;;  %v3056_v2 = vsel %vm7665_vm0, %v3053_v18, %v3050_v33  ;;  %v2955_v10 = vand.u32 2147483647, %v7389_v23 }
 0x3dc   : > { %v5184_v9 = vpop.eup %5183  ;;  %v2933_v25 = vmul.f32 0.6931472, %v5182_v44  ;;  %5195 = vlog2.f32 %v3075_v1  ;;  %vm2725_vm8 = vcmp.gt.f32.partialorder %v7262_v36, 20.0  ;;  %vm2733_vm9 = vcmp.gt.f32.partialorder %v7271_v32, 20.0 }
 0x3dd   : > { %v2867_v58 = vsel %vm7669_vm1, %v7660_v28, %v2861_v50  ;;  %v7718_v59 = vpop.eup %5185  ;;  %v3104_v60 = vmul.f32 0.6931472, %v5184_v9  ;;  %v2953_v28 = vadd.f32 1.0, %v2952_v63  ;;  %v3078_v40 = vmul.f32 -0.5, %v7566_v53 }
 0x3de   : > { %v2939_v15 = vsel %vm7694_vm3, %v2936_v14, %v2933_v25  ;;  %v3021_v24 = vadd.f32 1.0, %v7427_v57  ;;  %v5188_v19 = vpop.eup %5187  ;;  %v3139_v18 = vsel %vm2723_vm12, %v7248_v37, %v2867_v58  ;;  %v3009_v52 = vand.u32 2147483647, %v7404_v30 }
 0x3df   : > { %v3110_v7 = vsel %vm7687_vm15, %v3107_v47, %v3104_v60  ;;  %v3147_v22 = vsel %vm2731_vm13, %v7254_v41, %v2939_v15  ;;  %v5190_v14 = vpop.eup %5189  ;;  %v2879_v63 = vmul.f32 0.6931472, %v5188_v19  ;;  %v3007_v27 = vadd.f32 1.0, %v3006_v12  ;;  %v9113_v12 = vld [vmem:[#allocation6_spill] sm:$0xff]  ;;  %v9114_v60 = vld [vmem:[#allocation5_spill] sm:$0xff] }
 0x3e0   : > { %v7741_v33 = vsel %vm2750_vm14, %v7541_v61, %v3110_v7  ;;  %v4690_v50 = vpack.c.bf16 %v3147_v22, %v3139_v18  ;;  %v3122_v44 = vmul.f32 0.6931472, %v5190_v14  ;;  %v3125_v37 = vmul.f32 %v7656_v21, %v3124_v51 }
 0x3e1   : > { %v4712_v47 = vpack.c.bf16 %v7741_v33, %v7712_v31  ;;  %5197 = vlog2.f32 %v3021_v24  ;;  %vm2739_vm10 = vcmp.gt.f32.partialorder %v7274_v34, 20.0  ;;  %v7750_v41 = vsel %vm2744_vm2, %v7515_v26, %v3056_v2  ;;  %v7972_v31 = vpop.permute.xlu0 %3182 }
 0x3e2   : > { %4691 = vmatprep.subr.bf16.mxu0 %v4690_v50  ;;  %v2882_v61 = vmul.f32 %v7385_v16, %v2881_v13  ;;  %v3079_v1 = vadd.f32 1.0, %v3078_v40  ;;  %v3093_v9 = vadd.f32 1.0, %v7573_v55  ;;  %v5192_v58 = vpop.eup %5191  ;;  %v3128_v25 = vsel %vm7700_vm6, %v3125_v37, %v3122_v44 }
 0x3e3   : > { %v2954_v51 = vmul.f32 %v7389_v23, %v2953_v28  ;;  %vm7757_vm11 = vcmp.lt.f32.partialorder %v2955_v10, 0.0004427343  ;;  %v9115_v26 = vpack.c.bf16 %v9113_v12, %v9114_v60  ;;  %vm7764_vm0 = vcmp.lt.f32.partialorder %v3009_v52, 0.0004427343 }
 0x3e4   : > { %v7771_v16 = vsel %vm2752_vm5, %v7560_v35, %v3128_v25  ;;  %v2885_v23 = vsel %vm7704_vm7, %v2882_v61, %v2879_v63  ;;  %v2951_v13 = vmul.f32 0.6931472, %v5192_v58  ;;  %v3008_v29 = vmul.f32 %v7404_v30, %v3007_v27  ;;  %v5194_v10 = vpop.eup %5193  ;;  %v9118_v63 = vld [vmem:[#allocation18_spill] sm:$0xff] }
 0x3e5   : > { %4693 = vmatpush1.bf16.msra.mxu0 %v9115_v26  ;;  %v4720_v15 = vpack.c.bf16 %v7771_v16, %v7750_v41  ;;  %v3081_v28 = vand.u32 2147483647, %v7566_v53  ;;  %v3024_v40 = vmul.f32 -0.5, %v7427_v57  ;;  %5199 = vlog2.f32 %v3093_v9  ;;  %v7978_v16 = vpop.permute.xlu1 %3187 }
 0x3e6   : > { %v2957_v24 = vsel %vm7757_vm11, %v2954_v51, %v2951_v13  ;;  %v3005_v35 = vmul.f32 0.6931472, %v5194_v10  ;;  %v3080_v19 = vmul.f32 %v7566_v53, %v3079_v1  ;;  %v2895_v54 = vadd.f32 1.0, %v7576_v45  ;;  %v5196_v7 = vpop.eup %5195 }
 0x3e7   : > { %v3141_v30 = vsel %vm2725_vm8, %v7262_v36, %v2885_v23  ;;  %v3149_v18 = vsel %vm2733_vm9, %v7271_v32, %v2957_v24  ;;  %v3096_v22 = vmul.f32 -0.5, %v7573_v55  ;;  %v2967_v52 = vadd.f32 1.0, %v7601_v38  ;;  %v9119_v36 = vld [vmem:[#allocation16_spill] sm:$0xff] }
 0x3e8   : > { %v4698_v14 = vpack.c.bf16 %v3149_v18, %v3141_v30  ;;  %v3011_v50 = vsel %vm7764_vm0, %v3008_v29, %v3005_v35  ;;  %v3077_v53 = vmul.f32 0.6931472, %v5196_v7  ;;  %5201 = vlog2.f32 %v2895_v54 }
 0x3e9   : > { %vm2747_vm1 = vcmp.gt.f32.partialorder %v9118_v63, 20.0  ;;  %vm3082_vm12 = vcmp.lt.f32.partialorder %v3081_v28, 0.0004427343  ;;  %v2898_v27 = vmul.f32 -0.5, %v7576_v45  ;;  %5203 = vlog2.f32 %v2967_v52 }
 0x3ea   : > { %vm2741_vm13 = vcmp.gt.f32.partialorder %v9119_v36, 20.0  ;;  %4699 = vmatprep.subr.bf16.mxu1 %v4698_v14  ;;  %v3083_v32 = vsel %vm3082_vm12, %v3080_v19, %v3077_v53  ;;  %v3025_v44 = vadd.f32 1.0, %v3024_v40  ;;  %v3027_v37 = vand.u32 2147483647, %v7427_v57 }
 0x3eb   : > { %v2913_v61 = vadd.f32 1.0, %v7584_v6  ;;  %v5198_v1 = vpop.eup %5197  ;;  %v9120_v9 = vpack.c.bf16 %v7437_v17, %v7432_v42  ;;  %v3155_v58 = vsel %vm2739_vm10, %v7274_v34, %v3011_v50  ;;  %v3163_v25 = vsel %vm2747_vm1, %v9118_v63, %v3083_v32 }
 0x3ec   : > { %v3097_v51 = vadd.f32 1.0, %v3096_v22  ;;  %v3099_v21 = vand.u32 2147483647, %v7573_v55  ;;  %v4694_v12 = vpack.c.bf16 %v3163_v25, %v3155_v58  ;;  %v3023_v60 = vmul.f32 0.6931472, %v5198_v1 }
 0x3ed   : > { %4701 = vmatpush1.bf16.msra.mxu1 %v9120_v9  ;;  %v2901_v26 = vand.u32 2147483647, %v7576_v45  ;;  %v2970_v2 = vmul.f32 -0.5, %v7601_v38  ;;  %vm2749_vm14 = vcmp.gt.f32.partialorder %v7411_v49, 20.0  ;;  %v2899_v23 = vadd.f32 1.0, %v2898_v27  ;;  %v7857_v27 = vld [vmem:[%s8806_s2 + $0x48] sm:$0xff] }
 0x3ee   : > { %5205 = vlog2.f32 %v2913_v61  ;;  %v2985_v42 = vadd.f32 1.0, %v7624_v4  ;;  %vm2727_vm15 = vcmp.gt.f32.partialorder %v7462_v48, 20.0  ;;  %4695 = vmatprep.subr.bf16.mxu0 %v4694_v12  ;;  %v3026_v34 = vmul.f32 %v7427_v57, %v3025_v44  ;;  %v7829_v57 = vld [vmem:[%s8806_s2 + $0x40] sm:$0xff] }
 0x3ef   : > { %vm7813_vm2 = vcmp.lt.f32.partialorder %v3027_v37, 0.0004427343  ;;  %v2916_v13 = vmul.f32 -0.5, %v7584_v6  ;;  %v5200_v29 = vpop.eup %5199  ;;  %v3098_v10 = vmul.f32 %v7573_v55, %v3097_v51  ;;  %vm7819_vm3 = vcmp.lt.f32.partialorder %v3099_v21, 0.0004427343 }
 0x3f0   : > { %v9125_v40 = vpack.c.bf16 %v7486_v0, %v7481_v56  ;;  %5207 = vlog2.f32 %v2985_v42  ;;  %v3039_v24 = vadd.f32 1.0, %v7649_v8  ;;  %v3029_v35 = vsel %vm7813_vm2, %v3026_v34, %v3023_v60 }
 0x3f1   : > { %v3095_v55 = vmul.f32 0.6931472, %v5200_v29  ;;  %vm7834_vm5 = vcmp.lt.f32.partialorder %v2901_v26, 0.0004427343  ;;  %v2971_v54 = vadd.f32 1.0, %v2970_v2  ;;  %v2900_v56 = vmul.f32 %v7576_v45, %v2899_v23 }
 0x3f2   : > { %4697 = vmatpush1.bf16.msra.mxu0 %v9125_v40  ;;  %v2973_v0 = vand.u32 2147483647, %v7601_v38  ;;  %5209 = vlog2.f32 %v3039_v24  ;;  %v3111_v7 = vadd.f32 1.0, %v7678_v62  ;;  %v5202_v30 = vpop.eup %5201  ;;  %v2917_v22 = vadd.f32 1.0, %v2916_v13  ;;  %v9132_v40 = vld [vmem:[#allocation10_spill] sm:$0xff] }
 0x3f3   : > { %v3101_v18 = vsel %vm7819_vm3, %v3098_v10, %v3095_v55  ;;  %v2919_v52 = vand.u32 2147483647, %v7584_v6  ;;  %v2988_v14 = vmul.f32 -0.5, %v7624_v4  ;;  %v5204_v50 = vpop.eup %5203  ;;  %v3157_v45 = vsel %vm2741_vm13, %v9119_v36, %v3029_v35 }
 0x3f4   : > { %v3165_v53 = vsel %vm2749_vm14, %v7411_v49, %v3101_v18  ;;  %v9128_v63 = vmov 0.0   ;;  %v2897_v32 = vmul.f32 0.6931472, %v5202_v30  ;;  %5211 = vlog2.f32 %v3111_v7 }
 0x3f5   : > { %4580 = vmatmul.mubr.msk.f32.vlgmr.msra.gmra.mrb[48].mxu0 %vm1102_vm4, %v7829_v57  ;;  %v4702_v44 = vpack.c.bf16 %v3165_v53, %v3157_v45  ;;  %v2969_v37 = vmul.f32 0.6931472, %v5204_v50  ;;  %v2972_v61 = vmul.f32 %v7601_v38, %v2971_v54  ;;  %v3042_v1 = vmul.f32 -0.5, %v7649_v8  ;;  %v9137_v50 = vld [vmem:[#allocation11_spill] sm:$0xff] }
 0x3f6   : > { %3282 = vmatprep.mubr.f32.mxu0 %v9128_v63  ;;  %v2903_v36 = vsel %vm7834_vm5, %v2900_v56, %v2897_v32  ;;  %vm2974_vm6 = vcmp.lt.f32.partialorder %v2973_v0, 0.0004427343  ;;  %v3114_v49 = vmul.f32 -0.5, %v7678_v62  ;;  %v3057_v9 = vadd.f32 1.0, %v7663_v5  ;;  %v9138_v32 = vld [vmem:[#allocation17_spill] sm:$0xff] }
 0x3f7   : > { %vm2735_vm7 = vcmp.gt.f32.partialorder %v7476_v46, 20.0  ;;  %4703 = vmatprep.subr.bf16.mxu1 %v4702_v44  ;;  %v2975_v58 = vsel %vm2974_vm6, %v2972_v61, %v2969_v37  ;;  %v2989_v25 = vadd.f32 1.0, %v2988_v14  ;;  %v2991_v38 = vand.u32 2147483647, %v7624_v4  ;;  %v9136_v14 = vld [vmem:[#allocation7_spill] sm:$0xff]  ;;  %v9139_v44 = vld [vmem:[#allocation9_spill] sm:$0xff] }
 0x3f8   : > { %v5206_v51 = vpop.eup %5205  ;;  %v9129_v21 = vpack.c.bf16 %v7526_v20, %v7523_v43  ;;  %v3143_v12 = vsel %vm2727_vm15, %v7462_v48, %v2903_v36  ;;  %v3151_v60 = vsel %vm2735_vm7, %v7476_v46, %v2975_v58  ;;  %5213 = vlog2.f32 %v3057_v9  ;;  %v7886_v48 = vld [vmem:[%s8806_s2 + $0x50] sm:$0xff] }
 0x3f9   : > { %4581 = vmatmul.mubr.msk.f32.gmra.mrb[50].mxu0 %vm1102_vm4, %v7857_v27  ;;  %v3129_v26 = vadd.f32 1.0, %v7718_v59  ;;  %v4706_v2 = vpack.c.bf16 %v3151_v60, %v3143_v12  ;;  %v2915_v23 = vmul.f32 0.6931472, %v5206_v51  ;;  %v2918_v42 = vmul.f32 %v7584_v6, %v2917_v22  ;;  %v9141_v12 = vld [vmem:[#allocation8_spill] sm:$0xff]  ;;  %v9142_v60 = vld [vmem:[#allocation14_spill] sm:$0xff] }
 0x3fa   : > { %4705 = vmatpush1.bf16.msra.mxu1 %v9129_v21  ;;  %3288 = vmatprep.mubr.f32.mxu0 %v9128_v63  ;;  %v3043_v34 = vadd.f32 1.0, %v3042_v1  ;;  %v5208_v17 = vpop.eup %5207  ;;  %vm7879_vm8 = vcmp.lt.f32.partialorder %v2919_v52, 0.0004427343  ;;  %v3045_v46 = vand.u32 2147483647, %v7649_v8  ;;  %v3115_v20 = vadd.f32 1.0, %v3114_v49 }
 0x3fb   : > { %5215 = vlog2.f32 %v3129_v26  ;;  %4707 = vmatprep.subr.bf16.mxu0 %v4706_v2  ;;  %v2921_v6 = vsel %vm7879_vm8, %v2918_v42, %v2915_v23  ;;  %v2987_v13 = vmul.f32 0.6931472, %v5208_v17  ;;  %v2990_v29 = vmul.f32 %v7624_v4, %v2989_v25 }
 0x3fc   : > { %v3060_v10 = vmul.f32 -0.5, %v7663_v5  ;;  %v5210_v28 = vpop.eup %5209  ;;  %vm2729_vm9 = vcmp.gt.f32.partialorder %v7466_v3, 20.0  ;;  %vm2737_vm10 = vcmp.gt.f32.partialorder %v7510_v39, 20.0  ;;  %vm2992_vm11 = vcmp.lt.f32.partialorder %v2991_v38, 0.0004427343 }
 0x3fd   : > { %4584 = vmatmul.mubr.msk.f32.vlgmr.msra.gmra.mrb[48].mxu1 %vm1102_vm4, %v7829_v57  ;;  %v9133_v24 = vpack.c.bf16 %v7633_v11, %v9132_v40  ;;  %v3117_v35 = vand.u32 2147483647, %v7678_v62  ;;  %v2993_v55 = vsel %vm2992_vm11, %v2990_v29, %v2987_v13  ;;  %4582 = vmatmul.mubr.msk.f32.gmra.mrb[52].mxu0 %vm1102_vm4, %v7886_v48  ;;  %v3041_v4 = vmul.f32 0.6931472, %v5210_v28  ;;  %v4575_v11 = vld [vmem:[%s8806_s2 + $0x58] sm:$0xff] }
 0x3fe   : > { %3371 = vmatprep.mubr.f32.mxu1 %v9128_v63  ;;  %v3044_v19 = vmul.f32 %v7649_v8, %v3043_v34  ;;  %v3132_v54 = vmul.f32 -0.5, %v7718_v59  ;;  %v5212_v56 = vpop.eup %5211  ;;  %v3145_v0 = vsel %vm2729_vm9, %v7466_v3, %v2921_v6  ;;  %v3153_v7 = vsel %vm2737_vm10, %v7510_v39, %v2993_v55  ;;  %3294 = vmatprep.mubr.f32.mxu0 %v9128_v63 }
 0x3ff   : > { %4709 = vmatpush1.bf16.msra.mxu0 %v9133_v24  ;;  %vm7912_vm0 = vcmp.lt.f32.partialorder %v3045_v46, 0.0004427343  ;;  %v3116_v18 = vmul.f32 %v7678_v62, %v3115_v20  ;;  %v4714_v8 = vpack.c.bf16 %v3153_v7, %v3145_v0  ;;  %v3113_v39 = vmul.f32 0.6931472, %v5212_v56  ;;  %v7987_v20 = vpop.permute.xlu0 %3192 }
 0x400   : > { %v3047_v3 = vsel %vm7912_vm0, %v3044_v19, %v3041_v4  ;;  %v3061_v22 = vadd.f32 1.0, %v3060_v10  ;;  %vm3118_vm1 = vcmp.lt.f32.partialorder %v3117_v35, 0.0004427343  ;;  %v3063_v52 = vand.u32 2147483647, %v7663_v5 }
 0x401   : > { %4585 = vmatmul.mubr.msk.f32.gmra.mrb[50].mxu1 %vm1102_vm4, %v7857_v27  ;;  %vm2743_vm12 = vcmp.gt.f32.partialorder %v9136_v14, 20.0  ;;  %vm2751_vm13 = vcmp.gt.f32.partialorder %v9137_v50, 20.0  ;;  %4715 = vmatprep.subr.bf16.mxu1 %v4714_v8  ;;  %v3119_v62 = vsel %vm3118_vm1, %v3116_v18, %v3113_v39  ;;  %v3133_v45 = vadd.f32 1.0, %v3132_v54 }
 0x402   : > { %3377 = vmatprep.mubr.f32.mxu1 %v9128_v63  ;;  %4583 = vmatmul.mubr.msk.f32.gmra.mrb[54].mxu0 %vm1102_vm4, %v4575_v11  ;;  %v5214_v53 = vpop.eup %5213  ;;  %v9140_v37 = vpack.c.bf16 %v9138_v32, %v9139_v44  ;;  %v3159_v61 = vsel %vm2743_vm12, %v9136_v14, %v3047_v3  ;;  %v3167_v1 = vsel %vm2751_vm13, %v9137_v50, %v3119_v62  ;;  %v3135_v36 = vand.u32 2147483647, %v7718_v59 }
 0x403   : > { %3454 = vmatprep.mubr.f32.mxu0 %v9128_v63  ;;  %v4710_v49 = vpack.c.bf16 %v3167_v1, %v3159_v61  ;;  %v3059_v9 = vmul.f32 0.6931472, %v5214_v53  ;;  %v3062_v58 = vmul.f32 %v7663_v5, %v3061_v22  ;;  %vm3064_vm14 = vcmp.lt.f32.partialorder %v3063_v52, 0.0004427343  ;;  %v8015_v52 = vpop.permute.xlu1 %3197 }
 0x404   : > { %4717 = vmatpush1.bf16.msra.mxu1 %v9140_v37  ;;  %v3134_v21 = vmul.f32 %v7718_v59, %v3133_v45  ;;  %vm3136_vm15 = vcmp.lt.f32.partialorder %v3135_v36, 0.0004427343  ;;  %vm2745_vm2 = vcmp.gt.f32.partialorder %v9141_v12, 20.0  ;;  %vm2753_vm3 = vcmp.gt.f32.partialorder %v9142_v60, 20.0 }
 0x405   : > { %4586 = vmatmul.mubr.msk.f32.gmra.mrb[52].mxu1 %vm1102_vm4, %v7886_v48  ;;  %v5216_v25 = vpop.eup %5215  ;;  %4711 = vmatprep.subr.bf16.mxu0 %v4710_v49  ;;  %v3065_v38 = vsel %vm3064_vm14, %v3062_v58, %v3059_v9 }
 0x406   : > { %3383 = vmatprep.mubr.f32.mxu1 %v9128_v63  ;;  %v3131_v51 = vmul.f32 0.6931472, %v5216_v25  ;;  %4713 = vmatpush1.bf16.msra.mxu0 %v4712_v47  ;;  %v3161_v26 = vsel %vm2745_vm2, %v9141_v12, %v3065_v38 }
 0x408   : > { %v3137_v5 = vsel %vm3136_vm15, %v3134_v21, %v3131_v51 }
 0x409   : > { %4587 = vmatmul.mubr.msk.f32.gmra.mrb[54].mxu1 %vm1102_vm4, %v4575_v11  ;;  %v3169_v2 = vsel %vm2753_vm3, %v9142_v60, %v3137_v5  ;;  %4588 = vmatmul.mubr.msk.f32.vlgmr.msra.gmra.mrb[56].mxu0 %vm1102_vm4, %v7829_v57 }
 0x40a   : > { %3543 = vmatprep.mubr.f32.mxu1 %v9128_v63  ;;  %v4718_v23 = vpack.c.bf16 %v3169_v2, %v3161_v26  ;;  %3460 = vmatprep.mubr.f32.mxu0 %v9128_v63 }
 0x40c   : > { %4719 = vmatprep.subr.bf16.mxu1 %v4718_v23 }
 0x40d   : > { %4721 = vmatpush1.bf16.msra.mxu1 %v4720_v15  ;;  %4589 = vmatmul.mubr.msk.f32.gmra.mrb[58].mxu0 %vm1102_vm4, %v7857_v27 }
 0x40e   : > { %3466 = vmatprep.mubr.f32.mxu0 %v9128_v63 }
 0x410   : > { %4592 = vmatmul.mubr.msk.f32.vlgmr.msra.gmra.mrb[56].mxu1 %vm1102_vm4, %v7829_v57 }
 0x411   : > { %3549 = vmatprep.mubr.f32.mxu1 %v9128_v63  ;;  %4590 = vmatmul.mubr.msk.f32.gmra.mrb[60].mxu0 %vm1102_vm4, %v7886_v48 }
 0x412   : > { %3472 = vmatprep.mubr.f32.mxu0 %v9128_v63 }
 0x414   : > { %4593 = vmatmul.mubr.msk.f32.gmra.mrb[58].mxu1 %vm1102_vm4, %v7857_v27 }
 0x415   : > { %3555 = vmatprep.mubr.f32.mxu1 %v9128_v63  ;;  %4591 = vmatmul.mubr.msk.f32.gmra.mrb[62].mxu0 %vm1102_vm4, %v4575_v11 }
 0x416   : > { %4119 = vmatprep.mubr.f32.mxu0 %v9128_v63 }
 0x418   : > { %4594 = vmatmul.mubr.msk.f32.gmra.mrb[60].mxu1 %vm1102_vm4, %v7886_v48 }
 0x419   : > { %3561 = vmatprep.mubr.f32.mxu1 %v9128_v63 }
 0x41c   : > { %4595 = vmatmul.mubr.msk.f32.gmra.mrb[62].mxu1 %vm1102_vm4, %v4575_v11 }
 0x41d   : > { %4202 = vmatprep.mubr.f32.mxu1 %v9128_v63 }
 0x4c8   : > { %v3278_v59 = vpop.f32.mrb[48].mxu0 }
 0x4c9   : > { %v7975_v33 = vadd.f32 %v3278_v59, %v7972_v31  ;;  %v3280_v47 = vpop.f32.mrb[49].mxu0 }
 0x4ca   : > { %v7994_v24 = vadd.f32 %v3280_v47, %v7972_v31 }
 0x4cb   : > { %v3600_v41 = vmin.f32 %v7975_v33, 20.0  ;;  %vm3568_vm5 = vcmp.gt.f32.partialorder %v7975_v33, 20.0 }
 0x4cc   : > { %v3284_v15 = vpop.f32.mrb[50].mxu0  ;;  %v3601_v8 = vmin.f32 %v7994_v24, 20.0 }
 0x4cd   : > { %v3632_v57 = vmul.f32 1.442695, %v3600_v41  ;;  %v7981_v27 = vadd.f32 %v3284_v15, %v7978_v16  ;;  %v3286_v42 = vpop.f32.mrb[51].mxu0 }
 0x4ce   : > { %v8004_v54 = vadd.f32 %v3286_v42, %v7978_v16  ;;  %v3634_v61 = vmul.f32 1.442695, %v3601_v8 }
 0x4cf   : > { %5217 = vpow2.f32 %v3632_v57  ;;  %v3608_v34 = vmin.f32 %v7981_v27, 20.0  ;;  %vm3576_vm6 = vcmp.gt.f32.partialorder %v7981_v27, 20.0 }
 0x4d0   : > { %v3367_v17 = vpop.f32.mrb[48].mxu1  ;;  %v3290_v6 = vpop.f32.mrb[52].mxu0  ;;  %v3609_v62 = vmin.f32 %v8004_v54, 20.0 }
 0x4d1   : > { %v7985_v43 = vadd.f32 %v3367_v17, %v7972_v31  ;;  %v3369_v48 = vpop.f32.mrb[49].mxu1  ;;  %v3648_v46 = vmul.f32 1.442695, %v3608_v34  ;;  %v7991_v29 = vadd.f32 %v3290_v6, %v7987_v20  ;;  %v3292_v10 = vpop.f32.mrb[53].mxu0 }
 0x4d2   : > { %v8001_v19 = vadd.f32 %v3369_v48, %v7972_v31  ;;  %v3650_v58 = vmul.f32 1.442695, %v3609_v62  ;;  %v8037_v60 = vadd.f32 %v3292_v10, %v7987_v20 }
 0x4d3   : > { %v3602_v13 = vmin.f32 %v7985_v43, 20.0  ;;  %5219 = vpow2.f32 %v3648_v46  ;;  %v3616_v4 = vmin.f32 %v7991_v29, 20.0  ;;  %vm3570_vm9 = vcmp.gt.f32.partialorder %v7985_v43, 20.0 }
 0x4d4   : > { %v3373_v28 = vpop.f32.mrb[50].mxu1  ;;  %v3603_v50 = vmin.f32 %v8001_v19, 20.0  ;;  %9143 = vst [vmem:[#allocation15_spill] sm:$0xff] %v8037_v60  ;;  %v3617_v17 = vmin.f32 %v8037_v60, 20.0  ;;  %vm3584_vm1 = vcmp.gt.f32.partialorder %v7991_v29, 20.0 }
 0x4d5   : > { %v3636_v40 = vmul.f32 1.442695, %v3602_v13  ;;  %v7997_v35 = vadd.f32 %v3373_v28, %v7978_v16  ;;  %v3375_v55 = vpop.f32.mrb[51].mxu1  ;;  %v3296_v56 = vpop.f32.mrb[54].mxu0  ;;  %v3664_v7 = vmul.f32 1.442695, %v3616_v4 }
 0x4d6   : > { %v8007_v11 = vpop.f32.mrb[55].mxu0  ;;  %v8021_v45 = vadd.f32 %v3375_v55, %v7978_v16  ;;  %v8025_v32 = vadd.f32 %v3296_v56, %v8015_v52  ;;  %v3638_v49 = vmul.f32 1.442695, %v3603_v50 }
 0x4d7   : > { %5221 = vpow2.f32 %v3636_v40  ;;  %v3610_v0 = vmin.f32 %v7997_v35, 20.0  ;;  %vm3578_vm10 = vcmp.gt.f32.partialorder %v7997_v35, 20.0 }
 0x4d8   : > { %v3379_v30 = vpop.f32.mrb[52].mxu1  ;;  %5223 = vpow2.f32 %v3664_v7  ;;  %v3611_v38 = vmin.f32 %v8021_v45, 20.0  ;;  %v3624_v51 = vmin.f32 %v8025_v32, 20.0  ;;  %vm3592_vm13 = vcmp.gt.f32.partialorder %v8025_v32, 20.0 }
 0x4d9   : > { %v8009_v18 = vpop.eup %5217  ;;  %v3652_v3 = vmul.f32 1.442695, %v3610_v0  ;;  %v8013_v39 = vadd.f32 %v3379_v30, %v7987_v20  ;;  %v3381_v22 = vpop.f32.mrb[53].mxu1 }
 0x4da   : > { %v3696_v14 = vadd.f32 1.0, %v8009_v18  ;;  %v3699_v26 = vmul.f32 -0.5, %v8009_v18  ;;  %v3680_v2 = vmul.f32 1.442695, %v3624_v51  ;;  %v8045_v41 = vadd.f32 %v3381_v22, %v7987_v20 }
 0x4db   : > { %5225 = vpow2.f32 %v3652_v3  ;;  %v3618_v53 = vmin.f32 %v8013_v39, 20.0  ;;  %v3654_v57 = vmul.f32 1.442695, %v3611_v38  ;;  %v3702_v13 = vand.u32 2147483647, %v8009_v18 }
 0x4dc   : > { %5227 = vlog2.f32 %v3696_v14  ;;  %v3385_v44 = vpop.f32.mrb[54].mxu1  ;;  %v3456_v25 = vpop.f32.mrb[56].mxu0  ;;  %9144 = vst [vmem:[#allocation13_spill] sm:$0xff] %v8045_v41  ;;  %v3700_v6 = vadd.f32 1.0, %v3699_v26  ;;  %v3619_v0 = vmin.f32 %v8045_v41, 20.0  ;;  %vm3586_vm14 = vcmp.gt.f32.partialorder %v8013_v39, 20.0 }
 0x4dd   : > { %v5220_v37 = vpop.eup %5219  ;;  %v3668_v1 = vmul.f32 1.442695, %v3618_v53  ;;  %v8027_v36 = vpop.f32.mrb[55].mxu1  ;;  %v8032_v21 = vadd.f32 %v3385_v44, %v8015_v52  ;;  %v3666_v14 = vmul.f32 1.442695, %v3617_v17  ;;  %v8102_v17 = vadd.f32 %v8007_v11, %v8015_v52 }
 0x4de   : > { %v3768_v9 = vadd.f32 1.0, %v5220_v37  ;;  %v8034_v12 = vpop.f32.mrb[57].mxu0  ;;  %v3771_v47 = vmul.f32 -0.5, %v5220_v37  ;;  %v3774_v4 = vand.u32 2147483647, %v5220_v37  ;;  %v3701_v53 = vmul.f32 %v8009_v18, %v3700_v6 }
 0x4df   : > { %5229 = vpow2.f32 %v3668_v1  ;;  %v3626_v23 = vmin.f32 %v8032_v21, 20.0  ;;  %vm8074_vm7 = vcmp.lt.f32.partialorder %v3702_v13, 0.0004427343  ;;  %v3670_v51 = vmul.f32 1.442695, %v3619_v0  ;;  %9149 = vst [vmem:[#allocation20_spill] sm:$0xff] %v8102_v17 }
 0x4e0   : > { %5231 = vlog2.f32 %v3768_v9  ;;  %v8047_v15 = vpop.f32.mrb[58].mxu0  ;;  %v3772_v55 = vadd.f32 1.0, %v3771_v47  ;;  %vm8083_vm8 = vcmp.lt.f32.partialorder %v3774_v4, 0.0004427343  ;;  %vm3594_vm3 = vcmp.gt.f32.partialorder %v8032_v21, 20.0 }
 0x4e1   : > { %v8039_v5 = vpop.eup %5221  ;;  %5233 = vpow2.f32 %v3634_v61  ;;  %v8049_v42 = vpop.f32.mrb[59].mxu0  ;;  %v3684_v10 = vmul.f32 1.442695, %v3626_v23  ;;  %v8079_v61 = vadd.f32 %v3456_v25, %v7972_v31 }
 0x4e2   : > { %v3714_v59 = vadd.f32 1.0, %v8039_v5  ;;  %5235 = vpow2.f32 %v3650_v58  ;;  %v8051_v34 = vpop.eup %5223  ;;  %v3717_v22 = vmul.f32 -0.5, %v8039_v5  ;;  %v3773_v9 = vmul.f32 %v5220_v37, %v3772_v55 }
 0x4e3   : > { %5237 = vpow2.f32 %v3638_v49  ;;  %v3545_v48 = vpop.f32.mrb[56].mxu1  ;;  %v3840_v8 = vadd.f32 1.0, %v8051_v34 }
 0x4e4   : > { %5239 = vlog2.f32 %v3714_v59  ;;  %v8057_v28 = vpop.f32.mrb[57].mxu1  ;;  %v8061_v7 = vpop.f32.mrb[60].mxu0  ;;  %v3718_v47 = vadd.f32 1.0, %v3717_v22  ;;  %v8113_v55 = vadd.f32 %v3545_v48, %v7972_v31 }
 0x4e5   : > { %v8054_v46 = vpop.eup %5225  ;;  %5241 = vpow2.f32 %v3680_v2  ;;  %v8065_v3 = vpop.f32.mrb[61].mxu0 }
 0x4e6   : > { %v5228_v40 = vpop.eup %5227  ;;  %v3786_v56 = vadd.f32 1.0, %v8054_v46  ;;  %5243 = vpow2.f32 %v3654_v57  ;;  %v3789_v23 = vmul.f32 -0.5, %v8054_v46  ;;  %v3720_v57 = vand.u32 2147483647, %v8039_v5 }
 0x4e7   : > { %v3698_v30 = vmul.f32 0.6931472, %v5228_v40  ;;  %v8069_v50 = vpop.f32.mrb[58].mxu1  ;;  %v3604_v40 = vmin.f32 %v8079_v61, 20.0  ;;  %v3719_v58 = vmul.f32 %v8039_v5, %v3718_v47 }
 0x4e8   : > { %5245 = vlog2.f32 %v3786_v56  ;;  %v8081_v1 = vpop.f32.mrb[59].mxu1  ;;  %v8088_v18 = vpop.f32.mrb[62].mxu0  ;;  %v3790_v22 = vadd.f32 1.0, %v3789_v23  ;;  %vm8141_vm11 = vcmp.lt.f32.partialorder %v3720_v57, 0.0004427343 }
 0x4e9   : > { %v8071_v62 = vpop.eup %5229  ;;  %5247 = vpow2.f32 %v3684_v10  ;;  %v3704_v2 = vsel %vm8074_vm7, %v3701_v53, %v3698_v30  ;;  %v8095_v59 = vpop.f32.mrb[63].mxu0  ;;  %v3792_v53 = vand.u32 2147483647, %v8054_v46  ;;  %v3846_v23 = vand.u32 2147483647, %v8051_v34 }
 0x4ea   : > { %v5232_v49 = vpop.eup %5231  ;;  %v3858_v38 = vadd.f32 1.0, %v8071_v62  ;;  %5249 = vlog2.f32 %v3840_v8  ;;  %v8120_v11 = vsel %vm3568_vm5, %v7975_v33, %v3704_v2  ;;  %v3843_v33 = vmul.f32 -0.5, %v8051_v34 }
 0x4eb   : > { %v8090_v26 = vpop.eup %5233  ;;  %v3770_v25 = vmul.f32 0.6931472, %v5232_v49  ;;  %5251 = vpow2.f32 %v3666_v14  ;;  %v8104_v6 = vpop.f32.mrb[60].mxu1  ;;  %9150 = vst [vmem:[#allocation12_spill] sm:$0xff] %v8120_v11  ;;  %v3640_v14 = vmul.f32 1.442695, %v3604_v40  ;;  %v8152_v40 = vadd.f32 %v8027_v36, %v8015_v52 }
 0x4ec   : > { %v8097_v37 = vpop.eup %5235  ;;  %5253 = vlog2.f32 %v3858_v38  ;;  %v8115_v4 = vpop.f32.mrb[61].mxu1  ;;  %vm3793_vm0 = vcmp.lt.f32.partialorder %v3792_v53, 0.0004427343  ;;  %v3844_v8 = vadd.f32 1.0, %v3843_v33  ;;  %v3864_v60 = vand.u32 2147483647, %v8071_v62 }
 0x4ed   : > { %v8106_v13 = vpop.eup %5237  ;;  %v3776_v10 = vsel %vm8083_vm8, %v3773_v9, %v3770_v25  ;;  %5255 = vpow2.f32 %v3670_v51  ;;  %v3606_v51 = vmin.f32 %v8113_v55, 20.0  ;;  %vm8177_vm12 = vcmp.lt.f32.partialorder %v3846_v23, 0.0004427343 }
 0x4ee   : > { %v5240_v56 = vpop.eup %5239  ;;  %v8125_v0 = vsel %vm3576_vm6, %v7981_v27, %v3776_v10  ;;  %v3625_v27 = vmin.f32 %v8102_v17, 20.0  ;;  %5257 = vpow2.f32 %v3640_v14  ;;  %v3861_v10 = vmul.f32 -0.5, %v8071_v62 }
 0x4ef   : > { %v8128_v30 = vpop.eup %5241  ;;  %v3716_v48 = vmul.f32 0.6931472, %v5240_v56  ;;  %v8136_v49 = vpop.f32.mrb[62].mxu1  ;;  %v3791_v56 = vmul.f32 %v8054_v46, %v3790_v22  ;;  %v3644_v14 = vmul.f32 1.442695, %v3606_v51  ;;  %vm3572_vm6 = vcmp.gt.f32.partialorder %v8079_v61, 20.0 }
 0x4f0   : > { %v3912_v44 = vadd.f32 1.0, %v8128_v30  ;;  %v8138_v9 = vpop.eup %5243  ;;  %v8146_v2 = vpop.f32.mrb[63].mxu1  ;;  %v3682_v41 = vmul.f32 1.442695, %v3625_v27  ;;  %v3915_v36 = vmul.f32 -0.5, %v8128_v30  ;;  %v3862_v22 = vadd.f32 1.0, %v3861_v10 }
 0x4f1   : > { %v3722_v47 = vsel %vm8141_vm11, %v3719_v58, %v3716_v48  ;;  %v3627_v58 = vmin.f32 %v8152_v40, 20.0  ;;  %vm8193_vm15 = vcmp.lt.f32.partialorder %v3864_v60, 0.0004427343  ;;  %vm3574_vm8 = vcmp.gt.f32.partialorder %v8113_v55, 20.0 }
 0x4f2   : > { %v5246_v25 = vpop.eup %5245  ;;  %5259 = vlog2.f32 %v3912_v44  ;;  %v8167_v48 = vsel %vm3570_vm9, %v7985_v43, %v3722_v47  ;;  %v3918_v43 = vand.u32 2147483647, %v8128_v30  ;;  %v3916_v10 = vadd.f32 1.0, %v3915_v36 }
 0x4f3   : > { %v8154_v5 = vpop.eup %5247  ;;  %v3788_v57 = vmul.f32 0.6931472, %v5246_v25  ;;  %5261 = vpow2.f32 %v3644_v14  ;;  %v8190_v25 = vadd.f32 %v8047_v15, %v7978_v16  ;;  %v8199_v47 = vadd.f32 %v8069_v50, %v7978_v16 }
 0x4f4   : > { %v3930_v63 = vadd.f32 1.0, %v8154_v5  ;;  %v5250_v17 = vpop.eup %5249  ;;  %v3933_v51 = vmul.f32 -0.5, %v8154_v5  ;;  %v8208_v15 = vadd.f32 %v8057_v28, %v7972_v31  ;;  %vm8212_vm2 = vcmp.lt.f32.partialorder %v3918_v43, 0.0004427343 }
 0x4f5   : > { %v3794_v44 = vsel %vm3793_vm0, %v3791_v56, %v3788_v57  ;;  %v8162_v11 = vpop.eup %5251  ;;  %v3842_v38 = vmul.f32 0.6931472, %v5250_v17  ;;  %v3612_v50 = vmin.f32 %v8190_v25, 20.0  ;;  %v3917_v36 = vmul.f32 %v8128_v30, %v3916_v10 }
 0x4f6   : > { %v8172_v46 = vsel %vm3578_vm10, %v7997_v35, %v3794_v44  ;;  %5263 = vlog2.f32 %v3930_v63  ;;  %v5254_v53 = vpop.eup %5253  ;;  %v3845_v63 = vmul.f32 %v8051_v34, %v3844_v8  ;;  %v3863_v34 = vmul.f32 %v8071_v62, %v3862_v22 }
 0x4f7   : > { %v8184_v35 = vpop.eup %5255  ;;  %5265 = vpow2.f32 %v3682_v41  ;;  %v3860_v17 = vmul.f32 0.6931472, %v5254_v53  ;;  %v8204_v8 = vadd.f32 %v8034_v12, %v7972_v31  ;;  %v3686_v41 = vmul.f32 1.442695, %v3627_v58 }
 0x4f8   : > { %v8210_v60 = vpop.eup %5257  ;;  %v3614_v62 = vmin.f32 %v8199_v47, 20.0  ;;  %v3848_v12 = vsel %vm8177_vm12, %v3845_v63, %v3842_v38  ;;  %v3934_v14 = vadd.f32 1.0, %v3933_v51  ;;  %v3936_v31 = vand.u32 2147483647, %v8154_v5 }
 0x4f9   : > { %v3732_v28 = vadd.f32 1.0, %v8210_v60  ;;  %v3656_v22 = vmul.f32 1.442695, %v3612_v50  ;;  %v3866_v43 = vsel %vm8193_vm15, %v3863_v34, %v3860_v17  ;;  %v3605_v58 = vmin.f32 %v8204_v8, 20.0 }
 0x4fa   : > { %v3660_v53 = vmul.f32 1.442695, %v3614_v62  ;;  %v3607_v33 = vmin.f32 %v8208_v15, 20.0  ;;  %v8234_v63 = vadd.f32 %v8049_v42, %v7978_v16  ;;  %v8238_v30 = vadd.f32 %v8061_v7, %v7987_v20 }
 0x4fb   : > { %5267 = vlog2.f32 %v3732_v28  ;;  %v8243_v23 = vsel %vm3584_vm1, %v7991_v29, %v3848_v12  ;;  %v3935_v17 = vmul.f32 %v8154_v5, %v3934_v14  ;;  %v8256_v57 = vadd.f32 %v8081_v1, %v7978_v16 }
 0x4fc   : > { %v5260_v56 = vpop.eup %5259  ;;  %5269 = vpow2.f32 %v3656_v22  ;;  %v8261_v29 = vsel %vm3586_vm14, %v8013_v39, %v3866_v43  ;;  %vm3937_vm5 = vcmp.lt.f32.partialorder %v3936_v31, 0.0004427343  ;;  %v3646_v62 = vmul.f32 1.442695, %v3607_v33 }
 0x4fd   : > { %v3914_v44 = vmul.f32 0.6931472, %v5260_v56  ;;  %v8228_v27 = vpop.eup %5261  ;;  %5271 = vpow2.f32 %v3660_v53  ;;  %v3613_v56 = vmin.f32 %v8234_v63, 20.0  ;;  %v3620_v12 = vmin.f32 %v8238_v30, 20.0 }
 0x4fe   : > { %v3750_v42 = vadd.f32 1.0, %v8228_v27  ;;  %5273 = vpow2.f32 %v3686_v41  ;;  %v3735_v1 = vmul.f32 -0.5, %v8210_v60  ;;  %v8275_v39 = vadd.f32 %v8104_v6, %v7987_v20 }
 0x4ff   : > { %v3920_v38 = vsel %vm8212_vm2, %v3917_v36, %v3914_v44  ;;  %v3615_v33 = vmin.f32 %v8256_v57, 20.0  ;;  %v3672_v14 = vmul.f32 1.442695, %v3620_v12  ;;  %v8282_v31 = vadd.f32 %v8065_v3, %v7987_v20 }
 0x500   : > { %v5264_v51 = vpop.eup %5263  ;;  %v8248_v10 = vsel %vm3592_vm13, %v8025_v32, %v3920_v38  ;;  %v3642_v32 = vmul.f32 1.442695, %v3605_v58  ;;  %5275 = vlog2.f32 %v3750_v42  ;;  %v8287_v28 = vadd.f32 %v8088_v18, %v8015_v52 }
 0x501   : > { %v3932_v7 = vmul.f32 0.6931472, %v5264_v51  ;;  %v8263_v5 = vpop.eup %5265  ;;  %9159 = vst [vmem:[#allocation19_spill] sm:$0xff] %v8282_v31  ;;  %v3658_v44 = vmul.f32 1.442695, %v3613_v56  ;;  %v3621_v6 = vmin.f32 %v8282_v31, 20.0  ;;  %v8295_v38 = vadd.f32 %v8115_v4, %v7987_v20 }
 0x502   : > { %5277 = vpow2.f32 %v3642_v32  ;;  %v3738_v22 = vand.u32 2147483647, %v8210_v60  ;;  %v3736_v3 = vadd.f32 1.0, %v3735_v1  ;;  %v3662_v58 = vmul.f32 1.442695, %v3615_v33 }
 0x503   : > { %v3938_v50 = vsel %vm3937_vm5, %v3935_v17, %v3932_v7  ;;  %5279 = vpow2.f32 %v3672_v14  ;;  %9160 = vst [vmem:[#allocation6_spill] sm:$0xff] %v8295_v38  ;;  %v3628_v18 = vmin.f32 %v8287_v28, 20.0  ;;  %v3674_v17 = vmul.f32 1.442695, %v3621_v6 }
 0x504   : > { %v8270_v16 = vsel %vm3594_vm3, %v8032_v21, %v3938_v50  ;;  %v3622_v21 = vmin.f32 %v8275_v39, 20.0  ;;  %5281 = vpow2.f32 %v3646_v62  ;;  %v8301_v42 = vadd.f32 %v8136_v49, %v8015_v52 }
 0x505   : > { %v5268_v36 = vpop.eup %5267  ;;  %v3753_v32 = vmul.f32 -0.5, %v8228_v27  ;;  %vm8309_vm7 = vcmp.lt.f32.partialorder %v3738_v22, 0.0004427343  ;;  %v3688_v62 = vmul.f32 1.442695, %v3628_v18  ;;  %v3737_v56 = vmul.f32 %v8210_v60, %v3736_v3 }
 0x506   : > { %v3676_v53 = vmul.f32 1.442695, %v3622_v21  ;;  %v8291_v43 = vpop.eup %5269  ;;  %v3734_v20 = vmul.f32 0.6931472, %v5268_v36  ;;  %v3623_v12 = vmin.f32 %v8295_v38, 20.0  ;;  %v3630_v14 = vmin.f32 %v8301_v42, 20.0 }
 0x507   : > { %v3804_v51 = vadd.f32 1.0, %v8291_v43  ;;  %v8303_v7 = vpop.eup %5271  ;;  %v3807_v33 = vmul.f32 -0.5, %v8291_v43  ;;  %v8320_v21 = vadd.f32 %v8095_v59, %v8015_v52  ;;  %v3756_v60 = vand.u32 2147483647, %v8228_v27 }
 0x508   : > { %5283 = vpow2.f32 %v3676_v53  ;;  %v8307_v50 = vpop.eup %5273  ;;  %v3822_v49 = vadd.f32 1.0, %v8303_v7  ;;  %v3810_v6 = vand.u32 2147483647, %v8291_v43  ;;  %v3740_v22 = vsel %vm8309_vm7, %v3737_v56, %v3734_v20 }
 0x509   : > { %5285 = vpow2.f32 %v3658_v44  ;;  %9163 = vst [vmem:[#allocation5_spill] sm:$0xff] %v8320_v21  ;;  %v3754_v44 = vadd.f32 1.0, %v3753_v32  ;;  %v3825_v53 = vmul.f32 -0.5, %v8303_v7  ;;  %v3692_v3 = vmul.f32 1.442695, %v3630_v14 }
 0x50a   : > { %5287 = vlog2.f32 %v3804_v51  ;;  %v5276_v1 = vpop.eup %5275  ;;  %vm3580_vm9 = vcmp.gt.f32.partialorder %v8190_v25, 20.0  ;;  %v3678_v18 = vmul.f32 1.442695, %v3623_v12  ;;  %v3629_v51 = vmin.f32 %v8320_v21, 20.0 }
 0x50b   : > { %5289 = vpow2.f32 %v3662_v58  ;;  %v3752_v59 = vmul.f32 0.6931472, %v5276_v1  ;;  %v3828_v4 = vand.u32 2147483647, %v8303_v7  ;;  %vm8340_vm10 = vcmp.lt.f32.partialorder %v3756_v60, 0.0004427343 }
 0x50c   : > { %5291 = vpow2.f32 %v3674_v17  ;;  %v8325_v36 = vpop.eup %5277  ;;  %v3705_v17 = vadd.f32 1.0, %v8090_v26  ;;  %v8346_v12 = vadd.f32 %v8146_v2, %v8015_v52  ;;  %vm3582_vm11 = vcmp.gt.f32.partialorder %v8199_v47, 20.0 }
 0x50d   : > { %5293 = vlog2.f32 %v3822_v49  ;;  %v8330_v58 = vpop.eup %5279  ;;  %v3808_v49 = vadd.f32 1.0, %v3807_v33  ;;  %v8353_v33 = vsel %vm3572_vm6, %v8079_v61, %v3740_v22  ;;  %v3826_v14 = vadd.f32 1.0, %v3825_v53 }
 0x50e   : > { %5295 = vpow2.f32 %v3688_v62  ;;  %v8335_v32 = vpop.eup %5281  ;;  %v3876_v20 = vadd.f32 1.0, %v8330_v58  ;;  %v3755_v62 = vmul.f32 %v8228_v27, %v3754_v44  ;;  %9166 = vst [vmem:[#allocation18_spill] sm:$0xff] %v8346_v12  ;;  %v3879_v27 = vmul.f32 -0.5, %v8330_v58 }
 0x50f   : > { %5297 = vpow2.f32 %v3692_v3  ;;  %vm8361_vm0 = vcmp.lt.f32.partialorder %v3810_v6, 0.0004427343  ;;  %v3690_v3 = vmul.f32 1.442695, %v3629_v51  ;;  %v3809_v22 = vmul.f32 %v8291_v43, %v3808_v49 }
 0x510   : > { %5299 = vlog2.f32 %v3705_v17  ;;  %v3758_v52 = vsel %vm8340_vm10, %v3755_v62, %v3752_v59  ;;  %vm8367_vm1 = vcmp.lt.f32.partialorder %v3828_v4, 0.0004427343  ;;  %v3882_v17 = vand.u32 2147483647, %v8330_v58 }
 0x511   : > { %5301 = vlog2.f32 %v3876_v20  ;;  %v3631_v6 = vmin.f32 %v8346_v12, 20.0  ;;  %v3708_v62 = vmul.f32 -0.5, %v8090_v26  ;;  %v8381_v43 = vsel %vm3574_vm8, %v8113_v55, %v3758_v52 }
 0x512   : > { %v8348_v1 = vpop.eup %5283  ;;  %5303 = vpow2.f32 %v3678_v18  ;;  %9171 = vst [vmem:[#allocation16_spill] sm:$0xff] %v8381_v43  ;;  %v3827_v51 = vmul.f32 %v8303_v7, %v3826_v14  ;;  %v3880_v49 = vadd.f32 1.0, %v3879_v27  ;;  %v3777_v18 = vadd.f32 1.0, %v8097_v37 }
 0x513   : > { %v8357_v44 = vpop.eup %5285  ;;  %v3894_v60 = vadd.f32 1.0, %v8348_v1  ;;  %v3900_v41 = vand.u32 2147483647, %v8348_v1  ;;  %vm8394_vm12 = vcmp.lt.f32.partialorder %v3882_v17, 0.0004427343  ;;  %v3723_v14 = vadd.f32 1.0, %v8106_v13 }
 0x514   : > { %v5288_v61 = vpop.eup %5287  ;;  %vm3588_vm13 = vcmp.gt.f32.partialorder %v8238_v30, 20.0  ;;  %vm3569_vm14 = vcmp.gt.f32.partialorder %v7994_v24, 20.0  ;;  %vm3577_vm15 = vcmp.gt.f32.partialorder %v8004_v54, 20.0  ;;  %vm3590_vm3 = vcmp.gt.f32.partialorder %v8275_v39, 20.0 }
 0x515   : > { %v8372_v20 = vpop.eup %5289  ;;  %v3806_v59 = vmul.f32 0.6931472, %v5288_v61  ;;  %5305 = vlog2.f32 %v3894_v60  ;;  %v3897_v61 = vmul.f32 -0.5, %v8348_v1  ;;  %vm8419_vm2 = vcmp.lt.f32.partialorder %v3900_v41, 0.0004427343 }
 0x516   : > { %v8376_v56 = vpop.eup %5291  ;;  %5307 = vpow2.f32 %v3690_v3  ;;  %v3709_v3 = vadd.f32 1.0, %v3708_v62  ;;  %vm3596_vm5 = vcmp.gt.f32.partialorder %v8287_v28, 20.0 }
 0x517   : > { %v5294_v4 = vpop.eup %5293  ;;  %v3812_v60 = vsel %vm8361_vm0, %v3809_v22, %v3806_v59  ;;  %5309 = vlog2.f32 %v3777_v18  ;;  %v3694_v22 = vmul.f32 1.442695, %v3631_v6  ;;  %v3780_v6 = vmul.f32 -0.5, %v8097_v37 }
 0x518   : > { %v5296_v34 = vpop.eup %5295  ;;  %v8392_v55 = vsel %vm3580_vm9, %v8190_v25, %v3812_v60  ;;  %v3824_v52 = vmul.f32 0.6931472, %v5294_v4  ;;  %v3711_v4 = vand.u32 2147483647, %v8090_v26  ;;  %5311 = vlog2.f32 %v3723_v14 }
 0x519   : > { %v3948_v2 = vadd.f32 1.0, %v5296_v34  ;;  %v5298_v59 = vpop.eup %5297  ;;  %v3951_v25 = vmul.f32 -0.5, %v5296_v34  ;;  %v3898_v60 = vadd.f32 1.0, %v3897_v61  ;;  %v3783_v14 = vand.u32 2147483647, %v8097_v37 }
 0x51a   : > { %v3830_v12 = vsel %vm8367_vm1, %v3827_v51, %v3824_v52  ;;  %v5300_v17 = vpop.eup %5299  ;;  %v3966_v51 = vadd.f32 1.0, %v5298_v59  ;;  %v3969_v52 = vmul.f32 -0.5, %v5298_v59  ;;  %v3954_v27 = vand.u32 2147483647, %v5296_v34 }
 0x51b   : > { %v8407_v18 = vsel %vm3582_vm11, %v8199_v47, %v3830_v12  ;;  %5313 = vlog2.f32 %v3948_v2  ;;  %v5302_v62 = vpop.eup %5301  ;;  %v3881_v12 = vmul.f32 %v8330_v58, %v3880_v49  ;;  %v3952_v38 = vadd.f32 1.0, %v3951_v25 }
 0x51c   : > { %9174 = vst [vmem:[#allocation10_spill] sm:$0xff] %v8407_v18  ;;  %v3878_v47 = vmul.f32 0.6931472, %v5302_v62  ;;  %5315 = vpow2.f32 %v3694_v22  ;;  %v8417_v61 = vpop.eup %5303  ;;  %v3707_v53 = vmul.f32 0.6931472, %v5300_v17  ;;  %v3710_v43 = vmul.f32 %v8090_v26, %v3709_v3 }
 0x51d   : > { %5317 = vlog2.f32 %v3966_v51  ;;  %v3972_v31 = vand.u32 2147483647, %v5298_v59  ;;  %v3781_v18 = vadd.f32 1.0, %v3780_v6  ;;  %v3795_v62 = vadd.f32 1.0, %v8138_v9 }
 0x51e   : > { %v3899_v58 = vmul.f32 %v8348_v1, %v3898_v60  ;;  %v3970_v41 = vadd.f32 1.0, %v3969_v52  ;;  %vm8428_vm6 = vcmp.lt.f32.partialorder %v3711_v4, 0.0004427343  ;;  %vm8432_vm7 = vcmp.lt.f32.partialorder %v3783_v14, 0.0004427343 }
 0x51f   : > { %v5306_v21 = vpop.eup %5305  ;;  %v3884_v26 = vsel %vm8394_vm12, %v3881_v12, %v3878_v47  ;;  %vm8440_vm8 = vcmp.lt.f32.partialorder %v3954_v27, 0.0004427343  ;;  %v3726_v1 = vmul.f32 -0.5, %v8106_v13  ;;  %5319 = vlog2.f32 %v3795_v62 }
 0x520   : > { %v8436_v25 = vpop.eup %5307  ;;  %v3896_v17 = vmul.f32 0.6931472, %v5306_v21  ;;  %v3953_v60 = vmul.f32 %v5296_v34, %v3952_v38  ;;  %v3713_v6 = vsel %vm8428_vm6, %v3710_v43, %v3707_v53  ;;  %v3849_v51 = vadd.f32 1.0, %v8162_v11 }
 0x521   : > { %v5310_v4 = vpop.eup %5309  ;;  %vm3598_vm9 = vcmp.gt.f32.partialorder %v8301_v42, 20.0  ;;  %vm8449_vm10 = vcmp.lt.f32.partialorder %v3972_v31, 0.0004427343  ;;  %v3782_v52 = vmul.f32 %v8097_v37, %v3781_v18  ;;  %v3729_v14 = vand.u32 2147483647, %v8106_v13 }
 0x522   : > { %v3779_v27 = vmul.f32 0.6931472, %v5310_v4  ;;  %v5312_v47 = vpop.eup %5311  ;;  %v8458_v34 = vsel %vm3588_vm13, %v8238_v30, %v3884_v26  ;;  %v3971_v38 = vmul.f32 %v5298_v59, %v3970_v41  ;;  %v3798_v21 = vmul.f32 -0.5, %v8138_v9 }
 0x523   : > { %5321 = vlog2.f32 %v3849_v51  ;;  %v3985_v37 = vsel %vm3569_vm14, %v7994_v24, %v3713_v6  ;;  %v3727_v18 = vadd.f32 1.0, %v3726_v1  ;;  %v3921_v53 = vadd.f32 1.0, %v8263_v5 }
 0x524   : > { %v3785_v31 = vsel %vm8432_vm7, %v3782_v52, %v3779_v27  ;;  %vm3571_vm11 = vcmp.gt.f32.partialorder %v8001_v19, 20.0  ;;  %vm3579_vm0 = vcmp.gt.f32.partialorder %v8021_v45, 20.0  ;;  %v3902_v30 = vsel %vm8419_vm2, %v3899_v58, %v3896_v17 }
 0x525   : > { %v5314_v43 = vpop.eup %5313  ;;  %v3993_v12 = vsel %vm3577_vm15, %v8004_v54, %v3785_v31  ;;  %v3801_v62 = vand.u32 2147483647, %v8138_v9  ;;  %vm8477_vm1 = vcmp.lt.f32.partialorder %v3729_v14, 0.0004427343  ;;  %v3852_v22 = vmul.f32 -0.5, %v8162_v11  ;;  %v9191_v31 = vld [vmem:[#allocation15_spill] sm:$0xff] }
 0x526   : > { %v3950_v59 = vmul.f32 0.6931472, %v5314_v43  ;;  %v8475_v41 = vpop.eup %5315  ;;  %v4722_v24 = vpack.c.bf16 %v3993_v12, %v3985_v37  ;;  %5323 = vlog2.f32 %v3921_v53  ;;  %v3725_v58 = vmul.f32 0.6931472, %v5312_v47 }
 0x527   : > { %v5318_v26 = vpop.eup %5317  ;;  %v3799_v1 = vadd.f32 1.0, %v3798_v21  ;;  %v3867_v54 = vadd.f32 1.0, %v8184_v35  ;;  %v8488_v4 = vsel %vm3590_vm3, %v8275_v39, %v3902_v30  ;;  %v3924_v51 = vmul.f32 -0.5, %v8263_v5  ;;  %v9189_v39 = vld [vmem:[#allocation12_spill] sm:$0xff] }
 0x528   : > { %v3956_v2 = vsel %vm8440_vm8, %v3953_v60, %v3950_v59  ;;  %v3968_v6 = vmul.f32 0.6931472, %v5318_v26  ;;  %4723 = vmatprep.subr.bf16.mxu0 %v4722_v24  ;;  %v3728_v60 = vmul.f32 %v8106_v13, %v3727_v18  ;;  %vm8499_vm12 = vcmp.lt.f32.partialorder %v3801_v62, 0.0004427343  ;;  %v9192_v13 = vld [vmem:[#allocation20_spill] sm:$0xff] }
 0x529   : > { %v8493_v17 = vsel %vm3596_vm5, %v8287_v28, %v3956_v2  ;;  %v9190_v52 = vpack.c.bf16 %v8125_v0, %v9189_v39  ;;  %5325 = vlog2.f32 %v3867_v54  ;;  %v5320_v28 = vpop.eup %5319  ;;  %v3853_v47 = vadd.f32 1.0, %v3852_v22 }
 0x52a   : > { %v4744_v3 = vpack.c.bf16 %v8493_v17, %v8458_v34  ;;  %v3974_v14 = vsel %vm8449_vm10, %v3971_v38, %v3968_v6  ;;  %v3855_v21 = vand.u32 2147483647, %v8162_v11  ;;  %v3939_v43 = vadd.f32 1.0, %v8307_v50  ;;  %v4029_v34 = vpop.permute.xlu0 %4028 }
 0x52b   : > { %4725 = vmatpush1.bf16.msra.mxu0 %v9190_v52  ;;  %vm3585_vm13 = vcmp.gt.f32.partialorder %v9191_v31, 20.0  ;;  %vm3593_vm14 = vcmp.gt.f32.partialorder %v9192_v13, 20.0  ;;  %v8515_v37 = vsel %vm3598_vm9, %v8301_v42, %v3974_v14  ;;  %v3731_v0 = vsel %vm8477_vm1, %v3728_v60, %v3725_v58  ;;  %v9197_v60 = vld [vmem:[#allocation13_spill] sm:$0xff] }
 0x52c   : > { %v3797_v18 = vmul.f32 0.6931472, %v5320_v28  ;;  %v3800_v7 = vmul.f32 %v8138_v9, %v3799_v1  ;;  %v4752_v38 = vpack.c.bf16 %v8515_v37, %v8488_v4  ;;  %v3925_v53 = vadd.f32 1.0, %v3924_v51 }
 0x52d   : > { %v3927_v30 = vand.u32 2147483647, %v8263_v5  ;;  %5327 = vlog2.f32 %v3939_v43  ;;  %v5322_v59 = vpop.eup %5321  ;;  %v3870_v42 = vmul.f32 -0.5, %v8184_v35  ;;  %v3873_v62 = vand.u32 2147483647, %v8184_v35 }
 0x52e   : > { %v3803_v12 = vsel %vm8499_vm12, %v3800_v7, %v3797_v18  ;;  %v3741_v24 = vadd.f32 1.0, %v8325_v36  ;;  %v3987_v9 = vsel %vm3571_vm11, %v8001_v19, %v3731_v0  ;;  %v3851_v22 = vmul.f32 0.6931472, %v5322_v59 }
 0x52f   : > { %v3995_v49 = vsel %vm3579_vm0, %v8021_v45, %v3803_v12  ;;  %v3942_v26 = vmul.f32 -0.5, %v8307_v50  ;;  %v3854_v58 = vmul.f32 %v8162_v11, %v3853_v47  ;;  %v3744_v1 = vmul.f32 -0.5, %v8325_v36 }
 0x530   : > { %v4730_v2 = vpack.c.bf16 %v3995_v49, %v3987_v9  ;;  %5329 = vlog2.f32 %v3741_v24  ;;  %v5324_v54 = vpop.eup %5323  ;;  %vm8537_vm15 = vcmp.lt.f32.partialorder %v3855_v21, 0.0004427343  ;;  %v3926_v19 = vmul.f32 %v8263_v5, %v3925_v53 }
 0x531   : > { %vm8542_vm2 = vcmp.lt.f32.partialorder %v3927_v30, 0.0004427343  ;;  %v3813_v45 = vadd.f32 1.0, %v8357_v44  ;;  %vm3587_vm3 = vcmp.gt.f32.partialorder %v9197_v60, 20.0  ;;  %v3857_v11 = vsel %vm8537_vm15, %v3854_v58, %v3851_v22 }
 0x532   : > { %4731 = vmatprep.subr.bf16.mxu1 %v4730_v2  ;;  %v3923_v27 = vmul.f32 0.6931472, %v5324_v54  ;;  %v3871_v39 = vadd.f32 1.0, %v3870_v42  ;;  %vm8550_vm5 = vcmp.lt.f32.partialorder %v3873_v62, 0.0004427343  ;;  %v9200_v5 = vpack.c.bf16 %v8172_v46, %v8167_v48 }
 0x533   : > { %v3943_v28 = vadd.f32 1.0, %v3942_v26  ;;  %v3945_v14 = vand.u32 2147483647, %v8307_v50  ;;  %5331 = vlog2.f32 %v3813_v45  ;;  %v3759_v47 = vadd.f32 1.0, %v8335_v32  ;;  %v5326_v21 = vpop.eup %5325  ;;  %v8590_v26 = vld [vmem:[%s8806_s2 + $0x60] sm:$0xff] }
 0x534   : > { %4733 = vmatpush1.bf16.msra.mxu1 %v9200_v5  ;;  %v3929_v43 = vsel %vm8542_vm2, %v3926_v19, %v3923_v27  ;;  %v3745_v0 = vadd.f32 1.0, %v3744_v1  ;;  %v3816_v18 = vmul.f32 -0.5, %v8357_v44  ;;  %v3831_v7 = vadd.f32 1.0, %v8372_v20 }
 0x535   : > { %v4001_v48 = vsel %vm3585_vm13, %v9191_v31, %v3857_v11  ;;  %v4009_v46 = vsel %vm3593_vm14, %v9192_v13, %v3929_v43  ;;  %v3869_v53 = vmul.f32 0.6931472, %v5326_v21  ;;  %5333 = vlog2.f32 %v3759_v47 }
 0x536   : > { %v4726_v30 = vpack.c.bf16 %v4009_v46, %v4001_v48  ;;  %v3872_v59 = vmul.f32 %v8184_v35, %v3871_v39  ;;  %v3762_v12 = vmul.f32 -0.5, %v8335_v32  ;;  %5335 = vlog2.f32 %v3831_v7  ;;  %v9222_v48 = vld [vmem:[#allocation6_spill] sm:$0xff] }
 0x537   : > { %v5328_v42 = vpop.eup %5327  ;;  %vm3595_vm6 = vcmp.gt.f32.partialorder %v8152_v40, 20.0  ;;  %vm8572_vm7 = vcmp.lt.f32.partialorder %v3945_v14, 0.0004427343  ;;  %v3747_v31 = vand.u32 2147483647, %v8325_v36  ;;  %v3885_v24 = vadd.f32 1.0, %v8376_v56 }
 0x538   : > { %vm3573_vm8 = vcmp.gt.f32.partialorder %v8204_v8, 20.0  ;;  %vm3581_vm9 = vcmp.gt.f32.partialorder %v8234_v63, 20.0  ;;  %4727 = vmatprep.subr.bf16.mxu0 %v4726_v30  ;;  %v3875_v35 = vsel %vm8550_vm5, %v3872_v59, %v3869_v53  ;;  %v3941_v13 = vmul.f32 0.6931472, %v5328_v42 }
 0x539   : > { %v3944_v9 = vmul.f32 %v8307_v50, %v3943_v28  ;;  %v3834_v49 = vmul.f32 -0.5, %v8372_v20  ;;  %v9203_v22 = vpack.c.bf16 %v8248_v10, %v8243_v23  ;;  %v3746_v2 = vmul.f32 %v8325_v36, %v3745_v0 }
 0x53a   : > { %v3817_v58 = vadd.f32 1.0, %v3816_v18  ;;  %v3819_v1 = vand.u32 2147483647, %v8357_v44  ;;  %5337 = vlog2.f32 %v3885_v24  ;;  %v5330_v54 = vpop.eup %5329  ;;  %v3763_v6 = vadd.f32 1.0, %v3762_v12 }
 0x53b   : > { %4729 = vmatpush1.bf16.msra.mxu0 %v9203_v22  ;;  %v3947_v50 = vsel %vm8572_vm7, %v3944_v9, %v3941_v13  ;;  %v3765_v19 = vand.u32 2147483647, %v8335_v32  ;;  %v3957_v23 = vadd.f32 1.0, %v8436_v25  ;;  %vm3575_vm10 = vcmp.gt.f32.partialorder %v8208_v15, 20.0 }
 0x53c   : > { %v4003_v10 = vsel %vm3587_vm3, %v9197_v60, %v3875_v35  ;;  %v4011_v36 = vsel %vm3595_vm6, %v8152_v40, %v3947_v50  ;;  %v3743_v51 = vmul.f32 0.6931472, %v5330_v54  ;;  %v3837_v45 = vand.u32 2147483647, %v8372_v20  ;;  %v8613_v60 = vld [vmem:[%s8806_s2 + $0x68] sm:$0xff] }
 0x53d   : > { %v4734_v11 = vpack.c.bf16 %v4011_v36, %v4003_v10  ;;  %v3835_v27 = vadd.f32 1.0, %v3834_v49  ;;  %v3888_v39 = vmul.f32 -0.5, %v8376_v56  ;;  %5339 = vlog2.f32 %v3957_v23  ;;  %v5332_v52 = vpop.eup %5331  ;;  %v9217_v36 = vld [vmem:[#allocation10_spill] sm:$0xff] }
 0x53e   : > { %4604 = vmatmul.mubr.msk.f32.vlgmr.msra.gmra.mrb[64].mxu0 %vm1102_vm4, %v8590_v26  ;;  %v9204_v5 = vmov 0.0   ;;  %vm8615_vm11 = vcmp.lt.f32.partialorder %v3747_v31, 0.0004427343  ;;  %v3818_v28 = vmul.f32 %v8357_v44, %v3817_v58  ;;  %vm8620_vm0 = vcmp.lt.f32.partialorder %v3819_v1, 0.0004427343  ;;  %v8656_v31 = vld [vmem:[%s8806_s2 + $0x70] sm:$0xff] }
 0x53f   : > { %4125 = vmatprep.mubr.f32.mxu0 %v9204_v5  ;;  %v3903_v47 = vadd.f32 1.0, %v8417_v61  ;;  %4735 = vmatprep.subr.bf16.mxu1 %v4734_v11  ;;  %v3749_v21 = vsel %vm8615_vm11, %v3746_v2, %v3743_v51  ;;  %v3815_v43 = vmul.f32 0.6931472, %v5332_v52  ;;  %v3764_v0 = vmul.f32 %v8335_v32, %v3763_v6  ;;  %v5334_v7 = vpop.eup %5333  ;;  %v4599_v6 = vld [vmem:[%s8806_s2 + $0x78] sm:$0xff]  ;;  %v9221_v52 = vld [vmem:[#allocation5_spill] sm:$0xff] }
 0x540   : > { %vm8628_vm1 = vcmp.lt.f32.partialorder %v3765_v19, 0.0004427343  ;;  %v9211_v44 = vpack.c.bf16 %v8270_v16, %v8261_v29  ;;  %vm8635_vm12 = vcmp.lt.f32.partialorder %v3837_v45, 0.0004427343  ;;  %v3960_v46 = vmul.f32 -0.5, %v8436_v25  ;;  %v5336_v30 = vpop.eup %5335  ;;  %v9218_v51 = vld [vmem:[#allocation16_spill] sm:$0xff] }
 0x541   : > { %5341 = vlog2.f32 %v3903_v47  ;;  %v3975_v53 = vadd.f32 1.0, %v8475_v41  ;;  %v3821_v32 = vsel %vm8620_vm0, %v3818_v28, %v3815_v43  ;;  %v3761_v59 = vmul.f32 0.6931472, %v5334_v7 }
 0x542   : > { %4737 = vmatpush1.bf16.msra.mxu1 %v9211_v44  ;;  %4605 = vmatmul.mubr.msk.f32.gmra.mrb[66].mxu0 %vm1102_vm4, %v8613_v60  ;;  %v3836_v29 = vmul.f32 %v8372_v20, %v3835_v27  ;;  %v3889_v16 = vadd.f32 1.0, %v3888_v39  ;;  %v3989_v12 = vsel %vm3573_vm8, %v8204_v8, %v3749_v21  ;;  %v3997_v42 = vsel %vm3581_vm9, %v8234_v63, %v3821_v32  ;;  %v9220_v39 = vld [vmem:[#allocation19_spill] sm:$0xff] }
 0x543   : > { %v3833_v62 = vmul.f32 0.6931472, %v5336_v30  ;;  %4129 = vmatprep.mubr.f32.mxu0 %v9204_v5  ;;  %5343 = vlog2.f32 %v3975_v53  ;;  %v4738_v20 = vpack.c.bf16 %v3997_v42, %v3989_v12  ;;  %v3767_v8 = vsel %vm8628_vm1, %v3764_v0, %v3761_v59 }
 0x544   : > { %v3891_v24 = vand.u32 2147483647, %v8376_v56  ;;  %v3906_v63 = vmul.f32 -0.5, %v8417_v61  ;;  %v5338_v35 = vpop.eup %5337  ;;  %vm3583_vm13 = vcmp.gt.f32.partialorder %v8256_v57, 20.0  ;;  %v3961_v9 = vadd.f32 1.0, %v3960_v46  ;;  %v9223_v46 = vld [vmem:[#allocation18_spill] sm:$0xff] }
 0x545   : > { %4608 = vmatmul.mubr.msk.f32.vlgmr.msra.gmra.mrb[64].mxu1 %vm1102_vm4, %v8590_v26  ;;  %v3839_v13 = vsel %vm8635_vm12, %v3836_v29, %v3833_v62  ;;  %v3963_v49 = vand.u32 2147483647, %v8436_v25  ;;  %4739 = vmatprep.subr.bf16.mxu0 %v4738_v20  ;;  %v3991_v22 = vsel %vm3575_vm10, %v8208_v15, %v3767_v8  ;;  %v3887_v58 = vmul.f32 0.6931472, %v5338_v35 }
 0x546   : > { %4208 = vmatprep.mubr.f32.mxu1 %v9204_v5  ;;  %v3999_v2 = vsel %vm3583_vm13, %v8256_v57, %v3839_v13  ;;  %4606 = vmatmul.mubr.msk.f32.gmra.mrb[68].mxu0 %vm1102_vm4, %v8656_v31  ;;  %v3978_v1 = vmul.f32 -0.5, %v8475_v41  ;;  %v9214_v50 = vpack.c.bf16 %v8392_v55, %v8353_v33  ;;  %v3890_v15 = vmul.f32 %v8376_v56, %v3889_v16 }
 0x547   : > { %v4746_v54 = vpack.c.bf16 %v3999_v2, %v3991_v22  ;;  %4133 = vmatprep.mubr.f32.mxu0 %v9204_v5  ;;  %v5340_v57 = vpop.eup %5339  ;;  %vm8686_vm14 = vcmp.lt.f32.partialorder %v3891_v24, 0.0004427343  ;;  %v3907_v23 = vadd.f32 1.0, %v3906_v63  ;;  %v3962_v10 = vmul.f32 %v8436_v25, %v3961_v9 }
 0x548   : > { %4741 = vmatpush1.bf16.msra.mxu0 %v9214_v50  ;;  %v3893_v33 = vsel %vm8686_vm14, %v3890_v15, %v3887_v58  ;;  %v3959_v55 = vmul.f32 0.6931472, %v5340_v57  ;;  %v3909_v56 = vand.u32 2147483647, %v8417_v61  ;;  %v9219_v45 = vpack.c.bf16 %v9217_v36, %v9218_v51 }
 0x549   : > { %4609 = vmatmul.mubr.msk.f32.gmra.mrb[66].mxu1 %vm1102_vm4, %v8613_v60  ;;  %4747 = vmatprep.subr.bf16.mxu1 %v4746_v54  ;;  %vm3964_vm15 = vcmp.lt.f32.partialorder %v3963_v49, 0.0004427343  ;;  %v3979_v11 = vadd.f32 1.0, %v3978_v1  ;;  %vm3589_vm2 = vcmp.gt.f32.partialorder %v9220_v39, 20.0  ;;  %vm3597_vm3 = vcmp.gt.f32.partialorder %v9221_v52, 20.0 }
 0x54a   : > { %4212 = vmatprep.mubr.f32.mxu1 %v9204_v5  ;;  %4749 = vmatpush1.bf16.msra.mxu1 %v9219_v45  ;;  %v3965_v40 = vsel %vm3964_vm15, %v3962_v10, %v3959_v55  ;;  %v3981_v28 = vand.u32 2147483647, %v8475_v41  ;;  %v4005_v25 = vsel %vm3589_vm2, %v9220_v39, %v3893_v33  ;;  %v3908_v21 = vmul.f32 %v8417_v61, %v3907_v23 }
 0x54b   : > { %4607 = vmatmul.mubr.msk.f32.gmra.mrb[70].mxu0 %vm1102_vm4, %v4599_v6  ;;  %v5342_v27 = vpop.eup %5341  ;;  %v4013_v14 = vsel %vm3597_vm3, %v9221_v52, %v3965_v40  ;;  %vm3910_vm5 = vcmp.lt.f32.partialorder %v3909_v56, 0.0004427343  ;;  %v3980_v44 = vmul.f32 %v8475_v41, %v3979_v11  ;;  %vm3591_vm7 = vcmp.gt.f32.partialorder %v9222_v48, 20.0 }
 0x54c   : > { %4285 = vmatprep.mubr.f32.mxu0 %v9204_v5  ;;  %v3905_v47 = vmul.f32 0.6931472, %v5342_v27  ;;  %v4742_v0 = vpack.c.bf16 %v4013_v14, %v4005_v25  ;;  %vm3982_vm6 = vcmp.lt.f32.partialorder %v3981_v28, 0.0004427343  ;;  %vm3599_vm8 = vcmp.gt.f32.partialorder %v9223_v46, 20.0 }
 0x54d   : > { %4610 = vmatmul.mubr.msk.f32.gmra.mrb[68].mxu1 %vm1102_vm4, %v8656_v31  ;;  %v5344_v43 = vpop.eup %5343 }
 0x54e   : > { %4216 = vmatprep.mubr.f32.mxu1 %v9204_v5  ;;  %v3911_v18 = vsel %vm3910_vm5, %v3908_v21, %v3905_v47  ;;  %v3977_v7 = vmul.f32 0.6931472, %v5344_v43  ;;  %4743 = vmatprep.subr.bf16.mxu0 %v4742_v0 }
 0x54f   : > { %4745 = vmatpush1.bf16.msra.mxu0 %v4744_v3  ;;  %v4007_v61 = vsel %vm3591_vm7, %v9222_v48, %v3911_v18 }
 0x550   : > { %v3983_v53 = vsel %vm3982_vm6, %v3980_v44, %v3977_v7 }
 0x551   : > { %4611 = vmatmul.mubr.msk.f32.gmra.mrb[70].mxu1 %vm1102_vm4, %v4599_v6  ;;  %v4015_v30 = vsel %vm3599_vm8, %v9223_v46, %v3983_v53 }
 0x552   : > { %4368 = vmatprep.mubr.f32.mxu1 %v9204_v5  ;;  %v4750_v41 = vpack.c.bf16 %v4015_v30, %v4007_v61  ;;  %4612 = vmatmul.mubr.msk.f32.vlgmr.msra.gmra.mrb[72].mxu0 %vm1102_vm4, %v8590_v26 }
 0x553   : > { %4291 = vmatprep.mubr.f32.mxu0 %v9204_v5 }
 0x554   : > { %4751 = vmatprep.subr.bf16.mxu1 %v4750_v41 }
 0x555   : > { %4753 = vmatpush1.bf16.msra.mxu1 %v4752_v38 }
 0x556   : > { %4613 = vmatmul.mubr.msk.f32.gmra.mrb[74].mxu0 %vm1102_vm4, %v8613_v60 }
 0x557   : > { %4295 = vmatprep.mubr.f32.mxu0 %v9204_v5 }
 0x558   : > { %4616 = vmatmul.mubr.msk.f32.vlgmr.msra.gmra.mrb[72].mxu1 %vm1102_vm4, %v8590_v26 }
 0x559   : > { %4374 = vmatprep.mubr.f32.mxu1 %v9204_v5 }
 0x55a   : > { %4614 = vmatmul.mubr.msk.f32.gmra.mrb[76].mxu0 %vm1102_vm4, %v8656_v31 }
 0x55b   : > { %4299 = vmatprep.mubr.f32.mxu0 %v9204_v5 }
 0x55c   : > { %4617 = vmatmul.mubr.msk.f32.gmra.mrb[74].mxu1 %vm1102_vm4, %v8613_v60 }
 0x55d   : > { %4378 = vmatprep.mubr.f32.mxu1 %v9204_v5 }
 0x55e   : > { %4615 = vmatmul.mubr.msk.f32.gmra.mrb[78].mxu0 %vm1102_vm4, %v4599_v6 }
 0x560   : > { %4618 = vmatmul.mubr.msk.f32.gmra.mrb[76].mxu1 %vm1102_vm4, %v8656_v31 }
 0x561   : > { %4382 = vmatprep.mubr.f32.mxu1 %v9204_v5 }
 0x564   : > { %4619 = vmatmul.mubr.msk.f32.gmra.mrb[78].mxu1 %vm1102_vm4, %v4599_v6 }
 0x611   : > { %v4121_v4 = vpop.f32.mrb[64].mxu0 }
 0x612   : > { %v4122_v17 = vadd.f32 %v4121_v4, %v4029_v34  ;;  %v4123_v3 = vpop.f32.mrb[65].mxu0 }
 0x613   : > { %v4124_v37 = vadd.f32 %v4123_v3, %v4029_v34 }
 0x614   : > { %4387 = vst [vmem:[%s8745_s7] sm:$0x1f] %v4122_v17 }
 0x615   : > { %4388 = vst [vmem:[%s8745_s7 + $0x8] sm:$0x1f] %v4124_v37  ;;  %v4127_v38 = vpop.f32.mrb[66].mxu0 }
 0x616   : > { %v4128_v26 = vpop.f32.mrb[67].mxu0 }
 0x618   : > { %v4204_v5 = vpop.f32.mrb[64].mxu1 }
 0x619   : > { %v4205_v60 = vadd.f32 %v4204_v5, %v4029_v34  ;;  %v4206_v32 = vpop.f32.mrb[65].mxu1  ;;  %v4131_v29 = vpop.f32.mrb[68].mxu0 }
 0x61a   : > { %v4207_v59 = vadd.f32 %v4206_v32, %v4029_v34  ;;  %v4132_v16 = vpop.f32.mrb[69].mxu0 }
 0x61b   : > { %4389 = vst [vmem:[%s8745_s7 + $0x10] sm:$0x1f] %v4205_v60 }
 0x61c   : > { %4390 = vst [vmem:[%s8745_s7 + $0x18] sm:$0x1f] %v4207_v59  ;;  %v4210_v12 = vpop.f32.mrb[66].mxu1 }
 0x61d   : > { %v4211_v42 = vpop.f32.mrb[67].mxu1 }
 0x61e   : > { %v4135_v62 = vpop.f32.mrb[70].mxu0 }
 0x61f   : > { %v4136_v31 = vpop.f32.mrb[71].mxu0 }
 0x620   : > { %v4214_v20 = vpop.f32.mrb[68].mxu1 }
 0x621   : > { %v4215_v8 = vpop.f32.mrb[69].mxu1 }
 0x624   : > { %v4218_v24 = vpop.f32.mrb[70].mxu1 }
 0x625   : > { %v4219_v63 = vpop.f32.mrb[71].mxu1  ;;  %v4287_v35 = vpop.f32.mrb[72].mxu0 }
 0x626   : > { %v4288_v13 = vadd.f32 %v4287_v35, %v4029_v34  ;;  %v4289_v9 = vpop.f32.mrb[73].mxu0 }
 0x627   : > { %v4290_v49 = vadd.f32 %v4289_v9, %v4029_v34 }
 0x628   : > { %4391 = vst [vmem:[%s8745_s7 + $0x20] sm:$0x1f] %v4288_v13 }
 0x629   : > { %4392 = vst [vmem:[%s8745_s7 + $0x28] sm:$0x1f] %v4290_v49  ;;  %v4293_v22 = vpop.f32.mrb[74].mxu0 }
 0x62a   : > { %v4294_v58 = vpop.f32.mrb[75].mxu0 }
 0x62b   : > { %v4370_v2 = vpop.f32.mrb[72].mxu1 }
 0x62c   : > { %v4371_v1 = vadd.f32 %v4370_v2, %v4029_v34  ;;  %v4372_v54 = vpop.f32.mrb[73].mxu1 }
 0x62d   : > { %v4373_v50 = vadd.f32 %v4372_v54, %v4029_v34  ;;  %v4297_v6 = vpop.f32.mrb[76].mxu0 }
 0x62e   : > { %4393 = vst [vmem:[%s8745_s7 + $0x30] sm:$0x1f] %v4371_v1  ;;  %v4298_v57 = vpop.f32.mrb[77].mxu0 }
 0x62f   : > { %4394 = vst [vmem:[%s8745_s7 + $0x38] sm:$0x1f] %v4373_v50  ;;  %v4376_v15 = vpop.f32.mrb[74].mxu1 }
 0x630   : > { %v4377_v19 = vpop.f32.mrb[75].mxu1 }
 0x631   : > { %5362 = shalt.err (!%p5359_p3)
}
 0x632   : > { %s5363_s23 = scalar_lea.hbm %s8758_s12, 1024  ;;  %s5367_s29 = scalar_lea.hbm %s8808_s4, 2048 }
 0x633   : > { %p5364_p4 = scmp.ne.s32.totalorder %s8758_s12, %s5363_s23  ;;  %p5368_p9 = scmp.lt.u32.totalorder %s8758_s12, %s8808_s4 }
 0x634   : > { %p5369_p10 = scmp.lt.u32.totalorder %s5367_s29, %s5363_s23  ;;  %p5371_p12 = scmp.lt.u32.totalorder %s5363_s23, %s8758_s12 }
 0x635   : > { %p5365_p7 = pnand %p5364_p4, %p5479_p5 }
 0x636   : > { %p5370_p11 = por %p5369_p10, %p5368_p9 }
 0x637   : > { %p5366_p8 = pneg %p5365_p7 }
 0x638   : > { %p5372_p13 = por %p5371_p12, %p5370_p11 }
 0x63a   : > { %p5373_p0 = pnand %p5372_p13, %p5366_p8 }
 0x63c   : > { %5376 = shalt.err (!%p5373_p0)
}
 0x63d   : > { %4786 = dma.vmem_to_hbm [thread:$0]  (%p5479_p5), %s8760_s9, 1024, %s8758_s12, %s4396_s19   ;;  %v4301_v23 = vpop.f32.mrb[78].mxu0  ;;  %v4380_v33 = vpop.f32.mrb[76].mxu1 }
 0x63e   : > { %v4302_v55 = vpop.f32.mrb[79].mxu0  ;;  %v4381_v10 = vpop.f32.mrb[77].mxu1 }
 0x63f   : > { %v4384_v56 = vpop.f32.mrb[78].mxu1 }
 0x640   : > { %v4385_v36 = vpop.f32.mrb[79].mxu1 }
 0x641 PF: > { %p4792_p1 = scmp.ge.s32.totalorder %s5411_s18, 2  ;;  %s4422_s6 = sand.u32 1, %s5399_s15  }
 0x642   : > { %s4423_s7 = scalar_lea.sflag [#allocation3], %s4422_s6 }
 0x643   : > { %p4789_p2 = pnand %p4792_p1, %p5483_p6 }
 0x645   : > { %5394 = dma.done.wait (!%p4789_p2), %s4423_s7, 1024  }
 0x646   : > { %5396 = vsyncadd (!%p4789_p2), %s4423_s7, 4294966272  ;;  %p14_p5 = scmp.ge.s32.totalorder %s5466_s21, 4   ;;  %s9224_s15 = smov %s5403_s16 }
 0x647   : > { %s9225_s16 = smov %s5407_s17  ;;  %s9226_s17 = smov %s5477_s24 }
 0x648   : > { %s9227_s18 = smov %s5466_s21  ;;  %16 = sbr.rel (!%p14_p5) target bundleno = 3 (0x3), region = 79 }
 0x64f   :  { %4428 = vsyncpa [#allocation3], 1 }
 0x650   :  { %4430 = vsyncpa [#allocation3 + $0x1], 1 }

</bundles_post_ra>
